<compile_context>
chip_gen: v7x
topology: tpu7x:2x2x1
jax: 0.10.0
libtpu: 0.0.40
codegen_flags: <defaults>
</compile_context>

<pallas_src>
import math

import jax
import jax.numpy as jnp
from jax.experimental import pallas as pl
from jax.experimental.pallas import tpu as pltpu

# ----- scaled-down codet5p (T5) encoder config (lane-dense last dims) -----
VOCAB = 128
D_MODEL = 128
N_HEADS = 4
D_KV = 32          # N_HEADS * D_KV == D_MODEL (as in T5)
D_FF = 256
N_LAYERS = 2
REL_BUCKETS = 32
REL_MAX_DIST = 128
EPS = 1e-6
OUT_PAD = 128      # lane-padded width for the (D_MODEL -> 2) output projection


# ---------------- Pallas kernels ----------------
def _layer_kernel(x_ref, ln_a_ref, wqkv_ref, wo_ref, bias_ref, mask_ref,
                  ln_f_ref, wi_ref, wo_ff_ref, o_ref):
    """One full T5 encoder layer for a single batch element (grid over B).

    Attention: T5 has NO 1/sqrt(d_kv) scaling.  Heads are folded in-kernel via
    static lane slices of the concatenated QKV, and the output projection is
    accumulated per head (attn @ Wo == sum_h o_h @ Wo[h*Dk:(h+1)*Dk, :]), so no
    (B,H,S,Dk) transposes ever hit HBM.
    """
    x = x_ref[...]                                            # (S, D) f32 residual

    # --- self-attention sub-block: RMSNorm + QKV projection ---
    var = jnp.mean(x * x, axis=-1, keepdims=True)
    normed = x * jax.lax.rsqrt(var + EPS) * ln_a_ref[...]
    qkv = jnp.dot(normed.astype(jnp.bfloat16), wqkv_ref[...],
                  preferred_element_type=jnp.float32).astype(jnp.bfloat16)  # (S, 3*H*Dk)

    mask_add = mask_ref[...]                                  # (1, S) f32
    hd = N_HEADS * D_KV
    acc = x                                                   # residual accumulator (f32)
    for h in range(N_HEADS):
        q = qkv[:, h * D_KV:(h + 1) * D_KV]                   # (S, Dk) bf16
        k = qkv[:, hd + h * D_KV: hd + (h + 1) * D_KV]
        v = qkv[:, 2 * hd + h * D_KV: 2 * hd + (h + 1) * D_KV]
        scores = jnp.dot(q, k.T, preferred_element_type=jnp.float32)   # (S, S) f32
        scores = scores + bias_ref[h] + mask_add
        m = jnp.max(scores, axis=-1, keepdims=True)
        p = jnp.exp(scores - m)
        p = p * pl.reciprocal(jnp.sum(p, axis=-1, keepdims=True), approx=True)
        o_h = jnp.dot(p.astype(jnp.bfloat16), v,
                      preferred_element_type=jnp.float32)     # (S, Dk) f32
        acc = acc + jnp.dot(o_h.astype(jnp.bfloat16),
                            wo_ref[h * D_KV:(h + 1) * D_KV, :],
                            preferred_element_type=jnp.float32)
    x = acc

    # --- feed-forward sub-block (T5 v1.0 ReLU MLP): RMSNorm -> wi -> ReLU -> wo ---
    var = jnp.mean(x * x, axis=-1, keepdims=True)
    normed = x * jax.lax.rsqrt(var + EPS) * ln_f_ref[...]
    h_ff = jnp.dot(normed.astype(jnp.bfloat16), wi_ref[...],
                   preferred_element_type=jnp.float32)
    h_ff = jnp.maximum(h_ff, 0.0)
    o_ref[...] = x + jnp.dot(h_ff.astype(jnp.bfloat16), wo_ff_ref[...],
                             preferred_element_type=jnp.float32)


def _final_kernel(x_ref, g_ref, w_ref, b_ref, emb_ref, out_ref):
    """Final RMSNorm on the last-token rows + lane-padded (D -> OUT_PAD) projection."""
    x = x_ref[...]                                            # (B, D) f32
    var = jnp.mean(x * x, axis=-1, keepdims=True)
    emb = x * jax.lax.rsqrt(var + EPS) * g_ref[...]
    emb_ref[...] = emb
    out_ref[...] = jnp.dot(emb.astype(jnp.bfloat16), w_ref[...],
                           preferred_element_type=jnp.float32) + b_ref[...]


# ---------------- pallas_call wrappers ----------------
def encoder_layer(x, pos_bias, mask_add, lyr):
    B, S, D = x.shape
    H = pos_bias.shape[0]
    hd = N_HEADS * D_KV
    F = lyr["wi"].shape[1]
    return pl.pallas_call(
        _layer_kernel,
        out_shape=jax.ShapeDtypeStruct((B, S, D), jnp.float32),
        grid=(B,),
        in_specs=[
            pl.BlockSpec((None, S, D), lambda b: (b, 0, 0)),      # residual stream
            pl.BlockSpec((1, D), lambda b: (0, 0)),               # ln_attn gamma
            pl.BlockSpec((D, 3 * hd), lambda b: (0, 0)),          # Wq|Wk|Wv (bf16)
            pl.BlockSpec((hd, D), lambda b: (0, 0)),              # Wo (bf16)
            # bias shared across batch: index_map ignores b -> no (B,H,S,S) in HBM
            pl.BlockSpec((H, S, S), lambda b: (0, 0, 0)),
            pl.BlockSpec((None, 1, S), lambda b: (b, 0, 0)),      # additive mask
            pl.BlockSpec((1, D), lambda b: (0, 0)),               # ln_ff gamma
            pl.BlockSpec((D, F), lambda b: (0, 0)),               # wi (bf16)
            pl.BlockSpec((F, D), lambda b: (0, 0)),               # wo_ff (bf16)
        ],
        out_specs=pl.BlockSpec((None, S, D), lambda b: (b, 0, 0)),
        compiler_params=pltpu.CompilerParams(dimension_semantics=("parallel",)),
    )(x, lyr["ln_attn"], lyr["wqkv"], lyr["wo"], pos_bias, mask_add,
      lyr["ln_ff"], lyr["wi"], lyr["wo_ff"])


def final_norm_out(x_last, g, w_pad, b_pad):
    B, D = x_last.shape
    NP = w_pad.shape[1]
    return pl.pallas_call(
        _final_kernel,
        out_shape=(jax.ShapeDtypeStruct((B, D), jnp.float32),
                   jax.ShapeDtypeStruct((B, NP), jnp.float32)),
        grid=(1,),
        in_specs=[pl.BlockSpec((B, D), lambda i: (0, 0)),
                  pl.BlockSpec((1, D), lambda i: (0, 0)),
                  pl.BlockSpec((D, NP), lambda i: (0, 0)),
                  pl.BlockSpec((1, NP), lambda i: (0, 0))],
        out_specs=(pl.BlockSpec((B, D), lambda i: (0, 0)),
                   pl.BlockSpec((B, NP), lambda i: (0, 0))),
    )(x_last, g, w_pad, b_pad)


# ---------------- plain-JAX glue ----------------
def relative_position_bucket(relative_position, num_buckets, max_distance):
    # Bidirectional (encoder) bucketing, as in HF T5.
    num_buckets //= 2
    relative_buckets = (relative_position > 0).astype(jnp.int32) * num_buckets
    relative_position = jnp.abs(relative_position)
    max_exact = num_buckets // 2
    is_small = relative_position < max_exact
    # clamp to >=1 before log so the masked branch never produces -inf
    rel_clamped = jnp.maximum(relative_position, 1).astype(jnp.float32)
    rel_if_large = max_exact + (
        jnp.log(rel_clamped / max_exact)
        / math.log(max_distance / max_exact)
        * (num_buckets - max_exact)
    ).astype(jnp.int32)
    rel_if_large = jnp.minimum(rel_if_large, num_buckets - 1)
    relative_buckets += jnp.where(is_small, relative_position, rel_if_large)
    return relative_buckets


def make_pos_bucket_table(seq_len):
    ctx = jnp.arange(seq_len)[:, None]
    mem = jnp.arange(seq_len)[None, :]
    return relative_position_bucket(mem - ctx, REL_BUCKETS, REL_MAX_DIST)  # (S, S) int32


def init_params(key, seq_len):
    keys = iter(jax.random.split(key, 3 + 4 * N_LAYERS))

    def nrm(shape, scale=0.02, dtype=jnp.float32):
        return (scale * jax.random.normal(next(keys), shape)).astype(dtype)

    hd = N_HEADS * D_KV
    out_w = nrm((D_MODEL, 2))
    out_w_pad = jnp.zeros((D_MODEL, OUT_PAD), jnp.float32).at[:, :2].set(out_w)
    params = {
        "embed": nrm((VOCAB, D_MODEL), 1.0),
        "rel_bias": nrm((N_HEADS, REL_BUCKETS), 0.1),           # (H, buckets): gather -> (H,S,S)
        "pos_buckets": make_pos_bucket_table(seq_len),          # precomputed once
        "final_ln": jnp.ones((1, D_MODEL), jnp.float32),
        "out_w_pad": out_w_pad.astype(jnp.bfloat16),
        "out_b_pad": jnp.zeros((1, OUT_PAD), jnp.float32),
        "layers": [],
    }
    for _ in range(N_LAYERS):
        params["layers"].append({
            "ln_attn": jnp.ones((1, D_MODEL), jnp.float32),
            "wqkv": nrm((D_MODEL, 3 * hd), dtype=jnp.bfloat16),  # concatenated Wq|Wk|Wv
            "wo": nrm((hd, D_MODEL), dtype=jnp.bfloat16),
            "ln_ff": jnp.ones((1, D_MODEL), jnp.float32),
            "wi": nrm((D_MODEL, D_FF), dtype=jnp.bfloat16),
            "wo_ff": nrm((D_FF, D_MODEL), dtype=jnp.bfloat16),
        })
    return params


def codet5p_enc_forward(params, ids, mask):
    """Returns (out, emb): out = Linear(emb[:, -1]) of shape (B, 2), emb of shape (B, D)."""
    B, S = ids.shape

    # token embedding lookup (XLA gather)
    # TODO(synk): embedding gather + bucket-table lookup stay in XLA (no clean Pallas win).
    x = params["embed"][ids].astype(jnp.float32)                      # (B, S, D)

    # relative position bias: one (H, S, S) copy shared across batch (T5: first
    # layer's bias reused by every layer); additive mask kept separately per batch.
    pos_bias = jnp.take(params["rel_bias"], params["pos_buckets"], axis=1)  # (H, S, S)
    mask_add = ((1.0 - mask.astype(jnp.float32)) * -1e9).reshape(B, 1, S)

    for lyr in params["layers"]:
        x = encoder_layer(x, pos_bias, mask_add, lyr)                 # (B, S, D) f32

    # final_layer_norm only needs the last-token rows for this module's outputs
    x_last = x[:, -1]                                                 # (B, D)
    emb, out_pad = final_norm_out(x_last, params["final_ln"],
                                  params["out_w_pad"], params["out_b_pad"])
    out = out_pad[:, :2]                                              # self.out(emb)
    return out, emb


if __name__ == "__main__":
    key = jax.random.PRNGKey(0)
    pkey, ikey = jax.random.split(key)

    B, S = 2, 128
    params = init_params(pkey, S)
    ids = jax.random.randint(ikey, (B, S), 0, VOCAB, dtype=jnp.int32)
    mask = jnp.ones((B, S), dtype=jnp.int32)

    fwd = jax.jit(codet5p_enc_forward)
    out, emb = fwd(params, ids, mask)
    jax.block_until_ready((out, emb))

    assert out.shape == (B, 2) and out.dtype == jnp.float32
    assert emb.shape == (B, D_MODEL) and emb.dtype == jnp.float32
    assert bool(jnp.all(jnp.isfinite(out))) and bool(jnp.all(jnp.isfinite(emb)))
    print("KERNEL_OK")
</pallas_src>

<mosaic_0001>
module attributes {stable_mosaic.version = 11 : i64} {
  func.func @_layer_kernel(%arg0: i32, %arg1: memref<1x128x128xf32, #tpu.memory_space<vmem>>, %arg2: memref<1x128xf32, #tpu.memory_space<vmem>>, %arg3: memref<128x384xbf16, #tpu.memory_space<vmem>>, %arg4: memref<128x128xbf16, #tpu.memory_space<vmem>>, %arg5: memref<4x128x128xf32, #tpu.memory_space<vmem>>, %arg6: memref<1x1x128xf32, #tpu.memory_space<vmem>>, %arg7: memref<1x128xf32, #tpu.memory_space<vmem>>, %arg8: memref<128x256xbf16, #tpu.memory_space<vmem>>, %arg9: memref<256x128xbf16, #tpu.memory_space<vmem>>, %arg10: memref<1x128x128xf32, #tpu.memory_space<vmem>>) attributes {dimension_semantics = [#tpu.dimension_semantics<parallel>], iteration_bounds = array<i64: 2>, scalar_prefetch = 0 : i64, scratch_operands = 0 : i64, tpu.core_type = #tpu.core_type<tc>, window_params = [{transform_indices = @transform_0, window_bounds = array<i64: 1, 128, 128>}, {pipeline_mode = #tpu.pipeline_mode<synchronous>, transform_indices = @transform_1, window_bounds = array<i64: 1, 128>}, {pipeline_mode = #tpu.pipeline_mode<synchronous>, transform_indices = @transform_2, window_bounds = array<i64: 128, 384>}, {pipeline_mode = #tpu.pipeline_mode<synchronous>, transform_indices = @transform_3, window_bounds = array<i64: 128, 128>}, {pipeline_mode = #tpu.pipeline_mode<synchronous>, transform_indices = @transform_4, window_bounds = array<i64: 4, 128, 128>}, {transform_indices = @transform_5, window_bounds = array<i64: 1, 1, 128>}, {pipeline_mode = #tpu.pipeline_mode<synchronous>, transform_indices = @transform_6, window_bounds = array<i64: 1, 128>}, {pipeline_mode = #tpu.pipeline_mode<synchronous>, transform_indices = @transform_7, window_bounds = array<i64: 128, 256>}, {pipeline_mode = #tpu.pipeline_mode<synchronous>, transform_indices = @transform_8, window_bounds = array<i64: 256, 128>}, {transform_indices = @transform_9, window_bounds = array<i64: 1, 128, 128>}]} {
    %c0 = arith.constant 0 : index
    %c0_0 = arith.constant 0 : index
    %c0_1 = arith.constant 0 : index
    %0 = vector.load %arg1[%c0, %c0_0, %c0_1] : memref<1x128x128xf32, #tpu.memory_space<vmem>>, vector<1x128x128xf32>
    %1 = vector.shape_cast %0 : vector<1x128x128xf32> to vector<128x128xf32>
    %2 = arith.mulf %1, %1 : vector<128x128xf32>
    %cst = arith.constant dense<0.000000e+00> : vector<128xf32>
    %3 = vector.multi_reduction <add>, %2, %cst [1] : vector<128x128xf32> to vector<128xf32>
    %4 = vector.shape_cast %3 : vector<128xf32> to vector<128x1xf32>
    %cst_2 = arith.constant 1.280000e+02 : f32
    %5 = vector.broadcast %cst_2 : f32 to vector<128x1xf32>
    %6 = arith.divf %4, %5 : vector<128x1xf32>
    %cst_3 = arith.constant 9.99999997E-7 : f32
    %7 = vector.broadcast %cst_3 : f32 to vector<128x1xf32>
    %8 = arith.addf %6, %7 : vector<128x1xf32>
    %9 = math.rsqrt %8 : vector<128x1xf32>
    %10 = vector.broadcast %9 : vector<128x1xf32> to vector<128x128xf32>
    %11 = arith.mulf %1, %10 : vector<128x128xf32>
    %c0_4 = arith.constant 0 : index
    %c0_5 = arith.constant 0 : index
    %12 = vector.load %arg2[%c0_4, %c0_5] : memref<1x128xf32, #tpu.memory_space<vmem>>, vector<1x128xf32>
    %13 = vector.broadcast %12 : vector<1x128xf32> to vector<128x128xf32>
    %14 = arith.mulf %11, %13 : vector<128x128xf32>
    %15 = arith.truncf %14 : vector<128x128xf32> to vector<128x128xbf16>
    %c0_6 = arith.constant 0 : index
    %c0_7 = arith.constant 0 : index
    %16 = vector.load %arg3[%c0_6, %c0_7] : memref<128x384xbf16, #tpu.memory_space<vmem>>, vector<128x384xbf16>
    %cst_8 = arith.constant dense<0.000000e+00> : vector<128x384xf32>
    %17 = tpu.matmul %15, %16, %cst_8 {dimension_numbers = #tpu.dot_dimension_numbers<[1], [0], [0], [1], [0, 0, 1, 1], [], []>} : vector<128x128xbf16>, vector<128x384xbf16>, vector<128x384xf32> -> vector<128x384xf32>
    %18 = arith.truncf %17 : vector<128x384xf32> to vector<128x384xbf16>
    %c0_9 = arith.constant 0 : index
    %c0_10 = arith.constant 0 : index
    %c0_11 = arith.constant 0 : index
    %19 = vector.load %arg6[%c0_9, %c0_10, %c0_11] : memref<1x1x128xf32, #tpu.memory_space<vmem>>, vector<1x1x128xf32>
    %20 = vector.shape_cast %19 : vector<1x1x128xf32> to vector<1x128xf32>
    %21 = vector.extract_strided_slice %18 {offsets = [0, 0], sizes = [128, 32], strides = [1, 1]} : vector<128x384xbf16> to vector<128x32xbf16>
    %22 = vector.extract_strided_slice %18 {offsets = [0, 128], sizes = [128, 32], strides = [1, 1]} : vector<128x384xbf16> to vector<128x32xbf16>
    %23 = vector.extract_strided_slice %18 {offsets = [0, 256], sizes = [128, 32], strides = [1, 1]} : vector<128x384xbf16> to vector<128x32xbf16>
    %24 = tpu.transpose %22, [1, 0] : vector<128x32xbf16> -> vector<32x128xbf16>
    %cst_12 = arith.constant dense<0.000000e+00> : vector<128x128xf32>
    %25 = tpu.matmul %21, %24, %cst_12 {dimension_numbers = #tpu.dot_dimension_numbers<[1], [0], [0], [1], [0, 0, 1, 1], [], []>} : vector<128x32xbf16>, vector<32x128xbf16>, vector<128x128xf32> -> vector<128x128xf32>
    %c0_13 = arith.constant 0 : index
    %c0_14 = arith.constant 0 : index
    %c0_15 = arith.constant 0 : index
    %26 = vector.load %arg5[%c0_13, %c0_14, %c0_15] : memref<4x128x128xf32, #tpu.memory_space<vmem>>, vector<1x128x128xf32>
    %27 = vector.shape_cast %26 : vector<1x128x128xf32> to vector<128x128xf32>
    %28 = arith.addf %25, %27 : vector<128x128xf32>
    %29 = vector.broadcast %20 : vector<1x128xf32> to vector<128x128xf32>
    %30 = arith.addf %28, %29 : vector<128x128xf32>
    %cst_16 = arith.constant dense<0xFF800000> : vector<128xf32>
    %31 = vector.multi_reduction <maximumf>, %30, %cst_16 [1] : vector<128x128xf32> to vector<128xf32>
    %32 = vector.shape_cast %31 : vector<128xf32> to vector<128x1xf32>
    %33 = vector.broadcast %32 : vector<128x1xf32> to vector<128x128xf32>
    %34 = arith.subf %30, %33 : vector<128x128xf32>
    %35 = math.exp %34 : vector<128x128xf32>
    %cst_17 = arith.constant dense<0.000000e+00> : vector<128xf32>
    %36 = vector.multi_reduction <add>, %35, %cst_17 [1] : vector<128x128xf32> to vector<128xf32>
    %37 = vector.shape_cast %36 : vector<128xf32> to vector<128x1xf32>
    %38 = tpu.reciprocal %37 {approx = true} : vector<128x1xf32> -> vector<128x1xf32>
    %39 = vector.broadcast %38 : vector<128x1xf32> to vector<128x128xf32>
    %40 = arith.mulf %35, %39 : vector<128x128xf32>
    %41 = arith.truncf %40 : vector<128x128xf32> to vector<128x128xbf16>
    %cst_18 = arith.constant dense<0.000000e+00> : vector<128x32xf32>
    %42 = tpu.matmul %41, %23, %cst_18 {dimension_numbers = #tpu.dot_dimension_numbers<[1], [0], [0], [1], [0, 0, 1, 1], [], []>} : vector<128x128xbf16>, vector<128x32xbf16>, vector<128x32xf32> -> vector<128x32xf32>
    %43 = arith.truncf %42 : vector<128x32xf32> to vector<128x32xbf16>
    %c0_19 = arith.constant 0 : index
    %c0_20 = arith.constant 0 : index
    %44 = vector.load %arg4[%c0_19, %c0_20] : memref<128x128xbf16, #tpu.memory_space<vmem>>, vector<32x128xbf16>
    %cst_21 = arith.constant dense<0.000000e+00> : vector<128x128xf32>
    %45 = tpu.matmul %43, %44, %cst_21 {dimension_numbers = #tpu.dot_dimension_numbers<[1], [0], [0], [1], [0, 0, 1, 1], [], []>} : vector<128x32xbf16>, vector<32x128xbf16>, vector<128x128xf32> -> vector<128x128xf32>
    %46 = arith.addf %1, %45 : vector<128x128xf32>
    %47 = vector.extract_strided_slice %18 {offsets = [0, 32], sizes = [128, 32], strides = [1, 1]} : vector<128x384xbf16> to vector<128x32xbf16>
    %48 = vector.extract_strided_slice %18 {offsets = [0, 160], sizes = [128, 32], strides = [1, 1]} : vector<128x384xbf16> to vector<128x32xbf16>
    %49 = vector.extract_strided_slice %18 {offsets = [0, 288], sizes = [128, 32], strides = [1, 1]} : vector<128x384xbf16> to vector<128x32xbf16>
    %50 = tpu.transpose %48, [1, 0] : vector<128x32xbf16> -> vector<32x128xbf16>
    %cst_22 = arith.constant dense<0.000000e+00> : vector<128x128xf32>
    %51 = tpu.matmul %47, %50, %cst_22 {dimension_numbers = #tpu.dot_dimension_numbers<[1], [0], [0], [1], [0, 0, 1, 1], [], []>} : vector<128x32xbf16>, vector<32x128xbf16>, vector<128x128xf32> -> vector<128x128xf32>
    %c1 = arith.constant 1 : index
    %c0_23 = arith.constant 0 : index
    %c0_24 = arith.constant 0 : index
    %52 = vector.load %arg5[%c1, %c0_23, %c0_24] : memref<4x128x128xf32, #tpu.memory_space<vmem>>, vector<1x128x128xf32>
    %53 = vector.shape_cast %52 : vector<1x128x128xf32> to vector<128x128xf32>
    %54 = arith.addf %51, %53 : vector<128x128xf32>
    %55 = vector.broadcast %20 : vector<1x128xf32> to vector<128x128xf32>
    %56 = arith.addf %54, %55 : vector<128x128xf32>
    %cst_25 = arith.constant dense<0xFF800000> : vector<128xf32>
    %57 = vector.multi_reduction <maximumf>, %56, %cst_25 [1] : vector<128x128xf32> to vector<128xf32>
    %58 = vector.shape_cast %57 : vector<128xf32> to vector<128x1xf32>
    %59 = vector.broadcast %58 : vector<128x1xf32> to vector<128x128xf32>
    %60 = arith.subf %56, %59 : vector<128x128xf32>
    %61 = math.exp %60 : vector<128x128xf32>
    %cst_26 = arith.constant dense<0.000000e+00> : vector<128xf32>
    %62 = vector.multi_reduction <add>, %61, %cst_26 [1] : vector<128x128xf32> to vector<128xf32>
    %63 = vector.shape_cast %62 : vector<128xf32> to vector<128x1xf32>
    %64 = tpu.reciprocal %63 {approx = true} : vector<128x1xf32> -> vector<128x1xf32>
    %65 = vector.broadcast %64 : vector<128x1xf32> to vector<128x128xf32>
    %66 = arith.mulf %61, %65 : vector<128x128xf32>
    %67 = arith.truncf %66 : vector<128x128xf32> to vector<128x128xbf16>
    %cst_27 = arith.constant dense<0.000000e+00> : vector<128x32xf32>
    %68 = tpu.matmul %67, %49, %cst_27 {dimension_numbers = #tpu.dot_dimension_numbers<[1], [0], [0], [1], [0, 0, 1, 1], [], []>} : vector<128x128xbf16>, vector<128x32xbf16>, vector<128x32xf32> -> vector<128x32xf32>
    %69 = arith.truncf %68 : vector<128x32xf32> to vector<128x32xbf16>
    %c32 = arith.constant 32 : index
    %c0_28 = arith.constant 0 : index
    %70 = vector.load %arg4[%c32, %c0_28] : memref<128x128xbf16, #tpu.memory_space<vmem>>, vector<32x128xbf16>
    %cst_29 = arith.constant dense<0.000000e+00> : vector<128x128xf32>
    %71 = tpu.matmul %69, %70, %cst_29 {dimension_numbers = #tpu.dot_dimension_numbers<[1], [0], [0], [1], [0, 0, 1, 1], [], []>} : vector<128x32xbf16>, vector<32x128xbf16>, vector<128x128xf32> -> vector<128x128xf32>
    %72 = arith.addf %46, %71 : vector<128x128xf32>
    %73 = vector.extract_strided_slice %18 {offsets = [0, 64], sizes = [128, 32], strides = [1, 1]} : vector<128x384xbf16> to vector<128x32xbf16>
    %74 = vector.extract_strided_slice %18 {offsets = [0, 192], sizes = [128, 32], strides = [1, 1]} : vector<128x384xbf16> to vector<128x32xbf16>
    %75 = vector.extract_strided_slice %18 {offsets = [0, 320], sizes = [128, 32], strides = [1, 1]} : vector<128x384xbf16> to vector<128x32xbf16>
    %76 = tpu.transpose %74, [1, 0] : vector<128x32xbf16> -> vector<32x128xbf16>
    %cst_30 = arith.constant dense<0.000000e+00> : vector<128x128xf32>
    %77 = tpu.matmul %73, %76, %cst_30 {dimension_numbers = #tpu.dot_dimension_numbers<[1], [0], [0], [1], [0, 0, 1, 1], [], []>} : vector<128x32xbf16>, vector<32x128xbf16>, vector<128x128xf32> -> vector<128x128xf32>
    %c2 = arith.constant 2 : index
    %c0_31 = arith.constant 0 : index
    %c0_32 = arith.constant 0 : index
    %78 = vector.load %arg5[%c2, %c0_31, %c0_32] : memref<4x128x128xf32, #tpu.memory_space<vmem>>, vector<1x128x128xf32>
    %79 = vector.shape_cast %78 : vector<1x128x128xf32> to vector<128x128xf32>
    %80 = arith.addf %77, %79 : vector<128x128xf32>
    %81 = vector.broadcast %20 : vector<1x128xf32> to vector<128x128xf32>
    %82 = arith.addf %80, %81 : vector<128x128xf32>
    %cst_33 = arith.constant dense<0xFF800000> : vector<128xf32>
    %83 = vector.multi_reduction <maximumf>, %82, %cst_33 [1] : vector<128x128xf32> to vector<128xf32>
    %84 = vector.shape_cast %83 : vector<128xf32> to vector<128x1xf32>
    %85 = vector.broadcast %84 : vector<128x1xf32> to vector<128x128xf32>
    %86 = arith.subf %82, %85 : vector<128x128xf32>
    %87 = math.exp %86 : vector<128x128xf32>
    %cst_34 = arith.constant dense<0.000000e+00> : vector<128xf32>
    %88 = vector.multi_reduction <add>, %87, %cst_34 [1] : vector<128x128xf32> to vector<128xf32>
    %89 = vector.shape_cast %88 : vector<128xf32> to vector<128x1xf32>
    %90 = tpu.reciprocal %89 {approx = true} : vector<128x1xf32> -> vector<128x1xf32>
    %91 = vector.broadcast %90 : vector<128x1xf32> to vector<128x128xf32>
    %92 = arith.mulf %87, %91 : vector<128x128xf32>
    %93 = arith.truncf %92 : vector<128x128xf32> to vector<128x128xbf16>
    %cst_35 = arith.constant dense<0.000000e+00> : vector<128x32xf32>
    %94 = tpu.matmul %93, %75, %cst_35 {dimension_numbers = #tpu.dot_dimension_numbers<[1], [0], [0], [1], [0, 0, 1, 1], [], []>} : vector<128x128xbf16>, vector<128x32xbf16>, vector<128x32xf32> -> vector<128x32xf32>
    %95 = arith.truncf %94 : vector<128x32xf32> to vector<128x32xbf16>
    %c64 = arith.constant 64 : index
    %c0_36 = arith.constant 0 : index
    %96 = vector.load %arg4[%c64, %c0_36] : memref<128x128xbf16, #tpu.memory_space<vmem>>, vector<32x128xbf16>
    %cst_37 = arith.constant dense<0.000000e+00> : vector<128x128xf32>
    %97 = tpu.matmul %95, %96, %cst_37 {dimension_numbers = #tpu.dot_dimension_numbers<[1], [0], [0], [1], [0, 0, 1, 1], [], []>} : vector<128x32xbf16>, vector<32x128xbf16>, vector<128x128xf32> -> vector<128x128xf32>
    %98 = arith.addf %72, %97 : vector<128x128xf32>
    %99 = vector.extract_strided_slice %18 {offsets = [0, 96], sizes = [128, 32], strides = [1, 1]} : vector<128x384xbf16> to vector<128x32xbf16>
    %100 = vector.extract_strided_slice %18 {offsets = [0, 224], sizes = [128, 32], strides = [1, 1]} : vector<128x384xbf16> to vector<128x32xbf16>
    %101 = vector.extract_strided_slice %18 {offsets = [0, 352], sizes = [128, 32], strides = [1, 1]} : vector<128x384xbf16> to vector<128x32xbf16>
    %102 = tpu.transpose %100, [1, 0] : vector<128x32xbf16> -> vector<32x128xbf16>
    %cst_38 = arith.constant dense<0.000000e+00> : vector<128x128xf32>
    %103 = tpu.matmul %99, %102, %cst_38 {dimension_numbers = #tpu.dot_dimension_numbers<[1], [0], [0], [1], [0, 0, 1, 1], [], []>} : vector<128x32xbf16>, vector<32x128xbf16>, vector<128x128xf32> -> vector<128x128xf32>
    %c3 = arith.constant 3 : index
    %c0_39 = arith.constant 0 : index
    %c0_40 = arith.constant 0 : index
    %104 = vector.load %arg5[%c3, %c0_39, %c0_40] : memref<4x128x128xf32, #tpu.memory_space<vmem>>, vector<1x128x128xf32>
    %105 = vector.shape_cast %104 : vector<1x128x128xf32> to vector<128x128xf32>
    %106 = arith.addf %103, %105 : vector<128x128xf32>
    %107 = vector.broadcast %20 : vector<1x128xf32> to vector<128x128xf32>
    %108 = arith.addf %106, %107 : vector<128x128xf32>
    %cst_41 = arith.constant dense<0xFF800000> : vector<128xf32>
    %109 = vector.multi_reduction <maximumf>, %108, %cst_41 [1] : vector<128x128xf32> to vector<128xf32>
    %110 = vector.shape_cast %109 : vector<128xf32> to vector<128x1xf32>
    %111 = vector.broadcast %110 : vector<128x1xf32> to vector<128x128xf32>
    %112 = arith.subf %108, %111 : vector<128x128xf32>
    %113 = math.exp %112 : vector<128x128xf32>
    %cst_42 = arith.constant dense<0.000000e+00> : vector<128xf32>
    %114 = vector.multi_reduction <add>, %113, %cst_42 [1] : vector<128x128xf32> to vector<128xf32>
    %115 = vector.shape_cast %114 : vector<128xf32> to vector<128x1xf32>
    %116 = tpu.reciprocal %115 {approx = true} : vector<128x1xf32> -> vector<128x1xf32>
    %117 = vector.broadcast %116 : vector<128x1xf32> to vector<128x128xf32>
    %118 = arith.mulf %113, %117 : vector<128x128xf32>
    %119 = arith.truncf %118 : vector<128x128xf32> to vector<128x128xbf16>
    %cst_43 = arith.constant dense<0.000000e+00> : vector<128x32xf32>
    %120 = tpu.matmul %119, %101, %cst_43 {dimension_numbers = #tpu.dot_dimension_numbers<[1], [0], [0], [1], [0, 0, 1, 1], [], []>} : vector<128x128xbf16>, vector<128x32xbf16>, vector<128x32xf32> -> vector<128x32xf32>
    %121 = arith.truncf %120 : vector<128x32xf32> to vector<128x32xbf16>
    %c96 = arith.constant 96 : index
    %c0_44 = arith.constant 0 : index
    %122 = vector.load %arg4[%c96, %c0_44] : memref<128x128xbf16, #tpu.memory_space<vmem>>, vector<32x128xbf16>
    %cst_45 = arith.constant dense<0.000000e+00> : vector<128x128xf32>
    %123 = tpu.matmul %121, %122, %cst_45 {dimension_numbers = #tpu.dot_dimension_numbers<[1], [0], [0], [1], [0, 0, 1, 1], [], []>} : vector<128x32xbf16>, vector<32x128xbf16>, vector<128x128xf32> -> vector<128x128xf32>
    %124 = arith.addf %98, %123 : vector<128x128xf32>
    %125 = arith.mulf %124, %124 : vector<128x128xf32>
    %cst_46 = arith.constant dense<0.000000e+00> : vector<128xf32>
    %126 = vector.multi_reduction <add>, %125, %cst_46 [1] : vector<128x128xf32> to vector<128xf32>
    %127 = vector.shape_cast %126 : vector<128xf32> to vector<128x1xf32>
    %cst_47 = arith.constant 1.280000e+02 : f32
    %128 = vector.broadcast %cst_47 : f32 to vector<128x1xf32>
    %129 = arith.divf %127, %128 : vector<128x1xf32>
    %cst_48 = arith.constant 9.99999997E-7 : f32
    %130 = vector.broadcast %cst_48 : f32 to vector<128x1xf32>
    %131 = arith.addf %129, %130 : vector<128x1xf32>
    %132 = math.rsqrt %131 : vector<128x1xf32>
    %133 = vector.broadcast %132 : vector<128x1xf32> to vector<128x128xf32>
    %134 = arith.mulf %124, %133 : vector<128x128xf32>
    %c0_49 = arith.constant 0 : index
    %c0_50 = arith.constant 0 : index
    %135 = vector.load %arg7[%c0_49, %c0_50] : memref<1x128xf32, #tpu.memory_space<vmem>>, vector<1x128xf32>
    %136 = vector.broadcast %135 : vector<1x128xf32> to vector<128x128xf32>
    %137 = arith.mulf %134, %136 : vector<128x128xf32>
    %138 = arith.truncf %137 : vector<128x128xf32> to vector<128x128xbf16>
    %c0_51 = arith.constant 0 : index
    %c0_52 = arith.constant 0 : index
    %139 = vector.load %arg8[%c0_51, %c0_52] : memref<128x256xbf16, #tpu.memory_space<vmem>>, vector<128x256xbf16>
    %cst_53 = arith.constant dense<0.000000e+00> : vector<128x256xf32>
    %140 = tpu.matmul %138, %139, %cst_53 {dimension_numbers = #tpu.dot_dimension_numbers<[1], [0], [0], [1], [0, 0, 1, 1], [], []>} : vector<128x128xbf16>, vector<128x256xbf16>, vector<128x256xf32> -> vector<128x256xf32>
    %cst_54 = arith.constant 0.000000e+00 : f32
    %141 = vector.broadcast %cst_54 : f32 to vector<128x256xf32>
    %142 = arith.maximumf %140, %141 : vector<128x256xf32>
    %143 = arith.truncf %142 : vector<128x256xf32> to vector<128x256xbf16>
    %c0_55 = arith.constant 0 : index
    %c0_56 = arith.constant 0 : index
    %144 = vector.load %arg9[%c0_55, %c0_56] : memref<256x128xbf16, #tpu.memory_space<vmem>>, vector<256x128xbf16>
    %cst_57 = arith.constant dense<0.000000e+00> : vector<128x128xf32>
    %145 = tpu.matmul %143, %144, %cst_57 {dimension_numbers = #tpu.dot_dimension_numbers<[1], [0], [0], [1], [0, 0, 1, 1], [], []>} : vector<128x256xbf16>, vector<256x128xbf16>, vector<128x128xf32> -> vector<128x128xf32>
    %146 = arith.addf %124, %145 : vector<128x128xf32>
    %c0_58 = arith.constant 0 : index
    %c0_59 = arith.constant 0 : index
    %c0_60 = arith.constant 0 : index
    %147 = vector.load %arg10[%c0_58, %c0_59, %c0_60] : memref<1x128x128xf32, #tpu.memory_space<vmem>>, vector<1x128x128xf32>
    %148 = vector.shape_cast %147 : vector<1x128x128xf32> to vector<128x128xf32>
    %149 = vector.shape_cast %146 : vector<128x128xf32> to vector<1x128x128xf32>
    tpu.vector_store %arg10[%c0_58, %c0_59, %c0_60], %149 {strides = array<i32>} : memref<1x128x128xf32, #tpu.memory_space<vmem>>, vector<1x128x128xf32>,
    return
  }
  func.func @transform_0(%arg0: i32) -> (i32, i32, i32) {
    %c0_i32 = arith.constant 0 : i32
    %c0_i32_0 = arith.constant 0 : i32
    %c0_i32_1 = arith.constant 0 : i32
    return %arg0, %c0_i32, %c0_i32_0 : i32, i32, i32
  }
  func.func @transform_1(%arg0: i32) -> (i32, i32) {
    %c0_i32 = arith.constant 0 : i32
    %c0_i32_0 = arith.constant 0 : i32
    %c0_i32_1 = arith.constant 0 : i32
    return %c0_i32, %c0_i32_0 : i32, i32
  }
  func.func @transform_2(%arg0: i32) -> (i32, i32) {
    %c0_i32 = arith.constant 0 : i32
    %c0_i32_0 = arith.constant 0 : i32
    %c0_i32_1 = arith.constant 0 : i32
    return %c0_i32, %c0_i32_0 : i32, i32
  }
  func.func @transform_3(%arg0: i32) -> (i32, i32) {
    %c0_i32 = arith.constant 0 : i32
    %c0_i32_0 = arith.constant 0 : i32
    %c0_i32_1 = arith.constant 0 : i32
    return %c0_i32, %c0_i32_0 : i32, i32
  }
  func.func @transform_4(%arg0: i32) -> (i32, i32, i32) {
    %c0_i32 = arith.constant 0 : i32
    %c0_i32_0 = arith.constant 0 : i32
    %c0_i32_1 = arith.constant 0 : i32
    %c0_i32_2 = arith.constant 0 : i32
    return %c0_i32, %c0_i32_0, %c0_i32_1 : i32, i32, i32
  }
  func.func @transform_5(%arg0: i32) -> (i32, i32, i32) {
    %c0_i32 = arith.constant 0 : i32
    %c0_i32_0 = arith.constant 0 : i32
    %c0_i32_1 = arith.constant 0 : i32
    return %arg0, %c0_i32, %c0_i32_0 : i32, i32, i32
  }
  func.func @transform_6(%arg0: i32) -> (i32, i32) {
    %c0_i32 = arith.constant 0 : i32
    %c0_i32_0 = arith.constant 0 : i32
    %c0_i32_1 = arith.constant 0 : i32
    return %c0_i32, %c0_i32_0 : i32, i32
  }
  func.func @transform_7(%arg0: i32) -> (i32, i32) {
    %c0_i32 = arith.constant 0 : i32
    %c0_i32_0 = arith.constant 0 : i32
    %c0_i32_1 = arith.constant 0 : i32
    return %c0_i32, %c0_i32_0 : i32, i32
  }
  func.func @transform_8(%arg0: i32) -> (i32, i32) {
    %c0_i32 = arith.constant 0 : i32
    %c0_i32_0 = arith.constant 0 : i32
    %c0_i32_1 = arith.constant 0 : i32
    return %c0_i32, %c0_i32_0 : i32, i32
  }
  func.func @transform_9(%arg0: i32) -> (i32, i32, i32) {
    %c0_i32 = arith.constant 0 : i32
    %c0_i32_0 = arith.constant 0 : i32
    %c0_i32_1 = arith.constant 0 : i32
    return %arg0, %c0_i32, %c0_i32_0 : i32, i32, i32
  }
}

module attributes {stable_mosaic.version = 11 : i64} {
  func.func @_final_kernel(%arg0: i32, %arg1: memref<2x128xf32, #tpu.memory_space<vmem>>, %arg2: memref<1x128xf32, #tpu.memory_space<vmem>>, %arg3: memref<128x128xbf16, #tpu.memory_space<vmem>>, %arg4: memref<1x128xf32, #tpu.memory_space<vmem>>, %arg5: memref<2x128xf32, #tpu.memory_space<vmem>>, %arg6: memref<2x128xf32, #tpu.memory_space<vmem>>) attributes {dimension_semantics = [#tpu.dimension_semantics<arbitrary>], iteration_bounds = array<i64: 1>, scalar_prefetch = 0 : i64, scratch_operands = 0 : i64, tpu.core_type = #tpu.core_type<tc>, window_params = [{pipeline_mode = #tpu.pipeline_mode<synchronous>, transform_indices = @transform_0, window_bounds = array<i64: 2, 128>}, {pipeline_mode = #tpu.pipeline_mode<synchronous>, transform_indices = @transform_1, window_bounds = array<i64: 1, 128>}, {pipeline_mode = #tpu.pipeline_mode<synchronous>, transform_indices = @transform_2, window_bounds = array<i64: 128, 128>}, {pipeline_mode = #tpu.pipeline_mode<synchronous>, transform_indices = @transform_3, window_bounds = array<i64: 1, 128>}, {pipeline_mode = #tpu.pipeline_mode<synchronous>, transform_indices = @transform_4, window_bounds = array<i64: 2, 128>}, {pipeline_mode = #tpu.pipeline_mode<synchronous>, transform_indices = @transform_5, window_bounds = array<i64: 2, 128>}]} {
    %c0 = arith.constant 0 : index
    %c0_0 = arith.constant 0 : index
    %0 = vector.load %arg1[%c0, %c0_0] : memref<2x128xf32, #tpu.memory_space<vmem>>, vector<2x128xf32>
    %1 = arith.mulf %0, %0 : vector<2x128xf32>
    %cst = arith.constant dense<0.000000e+00> : vector<2xf32>
    %2 = vector.multi_reduction <add>, %1, %cst [1] : vector<2x128xf32> to vector<2xf32>
    %3 = vector.shape_cast %2 : vector<2xf32> to vector<2x1xf32>
    %cst_1 = arith.constant 1.280000e+02 : f32
    %4 = vector.broadcast %cst_1 : f32 to vector<2x1xf32>
    %5 = arith.divf %3, %4 : vector<2x1xf32>
    %cst_2 = arith.constant 9.99999997E-7 : f32
    %6 = vector.broadcast %cst_2 : f32 to vector<2x1xf32>
    %7 = arith.addf %5, %6 : vector<2x1xf32>
    %8 = math.rsqrt %7 : vector<2x1xf32>
    %9 = vector.broadcast %8 : vector<2x1xf32> to vector<2x128xf32>
    %10 = arith.mulf %0, %9 : vector<2x128xf32>
    %c0_3 = arith.constant 0 : index
    %c0_4 = arith.constant 0 : index
    %11 = vector.load %arg2[%c0_3, %c0_4] : memref<1x128xf32, #tpu.memory_space<vmem>>, vector<1x128xf32>
    %12 = vector.broadcast %11 : vector<1x128xf32> to vector<2x128xf32>
    %13 = arith.mulf %10, %12 : vector<2x128xf32>
    %c0_5 = arith.constant 0 : index
    %c0_6 = arith.constant 0 : index
    %14 = vector.load %arg5[%c0_5, %c0_6] : memref<2x128xf32, #tpu.memory_space<vmem>>, vector<2x128xf32>
    tpu.vector_store %arg5[%c0_5, %c0_6], %13 {strides = array<i32>} : memref<2x128xf32, #tpu.memory_space<vmem>>, vector<2x128xf32>,
    %15 = arith.truncf %13 : vector<2x128xf32> to vector<2x128xbf16>
    %c0_7 = arith.constant 0 : index
    %c0_8 = arith.constant 0 : index
    %16 = vector.load %arg3[%c0_7, %c0_8] : memref<128x128xbf16, #tpu.memory_space<vmem>>, vector<128x128xbf16>
    %cst_9 = arith.constant dense<0.000000e+00> : vector<2x128xf32>
    %17 = tpu.matmul %15, %16, %cst_9 {dimension_numbers = #tpu.dot_dimension_numbers<[1], [0], [0], [1], [0, 0, 1, 1], [], []>} : vector<2x128xbf16>, vector<128x128xbf16>, vector<2x128xf32> -> vector<2x128xf32>
    %c0_10 = arith.constant 0 : index
    %c0_11 = arith.constant 0 : index
    %18 = vector.load %arg4[%c0_10, %c0_11] : memref<1x128xf32, #tpu.memory_space<vmem>>, vector<1x128xf32>
    %19 = vector.broadcast %18 : vector<1x128xf32> to vector<2x128xf32>
    %20 = arith.addf %17, %19 : vector<2x128xf32>
    %c0_12 = arith.constant 0 : index
    %c0_13 = arith.constant 0 : index
    %21 = vector.load %arg6[%c0_12, %c0_13] : memref<2x128xf32, #tpu.memory_space<vmem>>, vector<2x128xf32>
    tpu.vector_store %arg6[%c0_12, %c0_13], %20 {strides = array<i32>} : memref<2x128xf32, #tpu.memory_space<vmem>>, vector<2x128xf32>,
    return
  }
  func.func @transform_0(%arg0: i32) -> (i32, i32) {
    %c0_i32 = arith.constant 0 : i32
    %c0_i32_0 = arith.constant 0 : i32
    %c0_i32_1 = arith.constant 0 : i32
    return %c0_i32, %c0_i32_0 : i32, i32
  }
  func.func @transform_1(%arg0: i32) -> (i32, i32) {
    %c0_i32 = arith.constant 0 : i32
    %c0_i32_0 = arith.constant 0 : i32
    %c0_i32_1 = arith.constant 0 : i32
    return %c0_i32, %c0_i32_0 : i32, i32
  }
  func.func @transform_2(%arg0: i32) -> (i32, i32) {
    %c0_i32 = arith.constant 0 : i32
    %c0_i32_0 = arith.constant 0 : i32
    %c0_i32_1 = arith.constant 0 : i32
    return %c0_i32, %c0_i32_0 : i32, i32
  }
  func.func @transform_3(%arg0: i32) -> (i32, i32) {
    %c0_i32 = arith.constant 0 : i32
    %c0_i32_0 = arith.constant 0 : i32
    %c0_i32_1 = arith.constant 0 : i32
    return %c0_i32, %c0_i32_0 : i32, i32
  }
  func.func @transform_4(%arg0: i32) -> (i32, i32) {
    %c0_i32 = arith.constant 0 : i32
    %c0_i32_0 = arith.constant 0 : i32
    %c0_i32_1 = arith.constant 0 : i32
    return %c0_i32, %c0_i32_0 : i32, i32
  }
  func.func @transform_5(%arg0: i32) -> (i32, i32) {
    %c0_i32 = arith.constant 0 : i32
    %c0_i32_0 = arith.constant 0 : i32
    %c0_i32_1 = arith.constant 0 : i32
    return %c0_i32, %c0_i32_0 : i32, i32
  }
}

</mosaic_0001>

<bundles_post_ra>
// kernel: codet5p_enc_forward.5
= control target key start
LH: loop header
LB: loop body
LE: loop exit
PB: predicated region body
PF: predicated region fallthrough
CT: control target
= control target key end

     0   :  { %11 = vsyncpa [#allocation3], 0  ;;  %vm24_vm0 = vcmask 1041408   ;;  %v284_v2 = vmov 0.0   ;;  %s375_s0 = inlined_call_operand.vmem [shape: f32[2,128], index: 0, kind: input, shape index: {}]   ;;  %s376_s1 = inlined_call_operand.vmem [shape: f32[1,128], index: 1, kind: input, shape index: {}]   ;;  %s377_s2 = inlined_call_operand.vmem [shape: bf16[128,128], index: 2, kind: input, shape index: {}]   ;;  %s378_s3 = inlined_call_operand.vmem [shape: f32[1,128], index: 3, kind: input, shape index: {}]   ;;  %s379_s4 = inlined_call_operand.hbm [shape: f32[2,128], index: 4, kind: output, shape index: {0}]   ;;  %s380_s5 = inlined_call_operand.hbm [shape: f32[2,128], index: 5, kind: output, shape index: {1}]  }
   0x1   :  { %v22_v0 = vld [vmem:[%s375_s0] sm:$0x3]  ;;  %202 = vmatprep.subr.bf16.mxu0 %v284_v2  ;;  %v227_v5 = vld [vmem:[%s377_s2 + $0x8] sm:$0xff]   ;;  %v228_v6 = vld [vmem:[%s377_s2 + $0x10] sm:$0xff]  }
   0x2   :  { %v23_v1 = vmul.f32 %v22_v0, %v22_v0  ;;  %v226_v3 = vld [vmem:[%s377_s2] sm:$0xff]  }
   0x3   :  { %203 = vmatpush3.bf16.msra.mxu0 %v226_v3 }
   0x4   :  { %v25_v4 = vsel %vm24_vm0, %v23_v1, 0.0  ;;  %204 = vmatprep.subr.bf16.mxu0 %v284_v2 }
   0x5   :  { %26 = vadd.xlane.f32.xlu0 %v25_v4 }
   0x7   :  { %205 = vmatpush3.bf16.msra.mxu0 %v227_v5 }
   0x8   :  { %12 = vsyncpa [#allocation5], 0  ;;  %206 = vmatprep.subr.bf16.mxu0 %v284_v2  ;;  %v229_v7 = vld [vmem:[%s377_s2 + $0x18] sm:$0xff]   ;;  %v230_v8 = vld [vmem:[%s377_s2 + $0x20] sm:$0xff]   ;;  %vm285_vm1 = vmmov 0   ;;  %s286_s12 = smov [#allocation2]  }
   0x9   :  { %218 = vmatprep.mubr.msk.bf16.mxu0 %vm285_vm1, %v284_v2  ;;  %v231_v9 = vld [vmem:[%s377_s2 + $0x28] sm:$0xff]   ;;  %v232_v10 = vld [vmem:[%s377_s2 + $0x30] sm:$0xff]   ;;  %v233_v11 = vld [vmem:[%s377_s2 + $0x38] sm:$0xff]   ;;  %s161_s13 = sshll.u32 %s286_s12, 4  ;;  %s162_s13 = int_to_ptr.vmem [resolvable:$true] %s161_s13 }
   0xa   :  { %v183_v16 = vld [vmem:[%s376_s1] ss:$0 sm:$0xff]  ;;  %s236_s2 = scalar_lea.vmem %s162_s13, 32  ;;  %p241_p1 = scmp.lt.s32.totalorder %s162_s13, %s162_s13 }
   0xb   :  { %207 = vmatpush3.bf16.msra.mxu0 %v228_v6  ;;  %p237_p0 = scmp.ne.s32.totalorder %s162_s13, %s236_s2  ;;  %p242_p2 = scmp.lt.s32.totalorder %s236_s2, %s236_s2 }
   0xc   :  { %208 = vmatprep.subr.bf16.mxu0 %v284_v2 }
   0xd   :  { %p243_p3 = por %p242_p2, %p241_p1 }
   0xf   :  { %209 = vmatpush3.bf16.msra.mxu0 %v229_v7  ;;  %p244_p4 = pnand %p243_p3, %p237_p0 }
  0x10   :  { %210 = vmatprep.subr.bf16.mxu0 %v284_v2 }
  0x13   :  { %211 = vmatpush3.bf16.msra.mxu0 %v230_v8 }
  0x14   :  { %212 = vmatprep.subr.bf16.mxu0 %v284_v2 }
  0x17   :  { %213 = vmatpush3.bf16.msra.mxu0 %v231_v9 }
  0x18   :  { %214 = vmatprep.subr.bf16.mxu0 %v284_v2 }
  0x1b   :  { %215 = vmatpush3.bf16.msra.mxu0 %v232_v10 }
  0x1c   :  { %216 = vmatprep.subr.bf16.mxu0 %v284_v2 }
  0x1f   :  { %217 = vmatpush3.bf16.msra.mxu0 %v233_v11 }
  0x92   :  { %v27_v12 = vpop.xlane.xlu0 %26 }
  0x93   :  { %v29_v13 = vmul.f32 0.0078125, %v27_v12 }
  0x95   :  { %v30_v14 = vadd.f32 1e-06, %v29_v13 }
  0x97   :  { %234 = vrsqrt.f32 %v30_v14 }
  0xa1   :  { %v235_v15 = vpop.eup %234 }
  0xa2   :  { %v32_v17 = vmul.f32 %v235_v15, %v22_v0 }
  0xa4   :  { %v40_v18 = vmul.f32 %v183_v16, %v32_v17 }
  0xa6   :  { %v42_v19 = vpack.c.bf16 %v40_v18, %v40_v18  ;;  %41 = vst [vmem:[#allocation2] sm:$0x3] %v40_v18 }
  0xa8   :  { %219 = vmatmul.mubr.bf16.vlgmr.msra.gmra.mrb[0].mxu0 %v42_v19 }
  0xa9   :  { %247 = shalt.err (!%p244_p4)
}
  0xaa   :  { %s248_s16 = scalar_lea.hbm %s379_s4, 32 }
  0xab   :  { %p249_p5 = scmp.ne.s32.totalorder %s379_s4, %s248_s16  ;;  %p252_p6 = scmp.lt.u32.totalorder %s248_s16, %s379_s4 }
  0xad   :  { %p254_p7 = pnand %p252_p6, %p249_p5 }
  0xaf   :  { %257 = shalt.err (!%p254_p7)
}
  0xb0   :  { %164 = dma.vmem_to_hbm [thread:$0]  %s162_s13, 32, %s379_s4, [#allocation3]   ;;  %v184_v20 = vld [vmem:[%s378_s3] ss:$0 sm:$0xff] }
  0xb1   :  { %s287_s24 = smov [#allocation4]  }
  0xb2   :  { %s171_s25 = sshll.u32 %s287_s24, 4  ;;  %s172_s25 = int_to_ptr.vmem [resolvable:$true] %s171_s25 }
  0xb3   :  { %s258_s0 = scalar_lea.vmem %s172_s25, 32  ;;  %p263_p9 = scmp.lt.s32.totalorder %s172_s25, %s172_s25 }
  0xb4   :  { %p259_p8 = scmp.ne.s32.totalorder %s172_s25, %s258_s0  ;;  %p264_p10 = scmp.lt.s32.totalorder %s258_s0, %s258_s0 }
  0xb6   :  { %p265_p11 = por %p264_p10, %p263_p9 }
  0xb8   :  { %p266_p12 = pnand %p265_p11, %p259_p8 }
 0x17b   :  { %v148_v21 = vpop.f32.mrb[0].mxu0 }
 0x17c   :  { %v149_v22 = vadd.f32 %v184_v20, %v148_v21  ;;  %v220_v23 = vpop.f32.mrb[1].mxu0 }
 0x17d   :  { %v151_v24 = vpop.f32.mrb[2].mxu0 }
 0x17e   :  { %154 = vst [vmem:[#allocation4] sm:$0x3] %v149_v22  ;;  %v221_v25 = vpop.f32.mrb[3].mxu0 }
 0x17f   :  { %269 = shalt.err (!%p266_p12)
}
 0x180   :  { %s270_s3 = scalar_lea.hbm %s380_s5, 32 }
 0x181   :  { %p271_p13 = scmp.ne.s32.totalorder %s380_s5, %s270_s3  ;;  %p274_p0 = scmp.lt.u32.totalorder %s270_s3, %s380_s5 }
 0x183   :  { %p276_p1 = pnand %p274_p0, %p271_p13 }
 0x185   :  { %279 = shalt.err (!%p276_p1)
}
 0x186   :  { %174 = dma.vmem_to_hbm [thread:$0]  %s172_s25, 32, %s380_s5, [#allocation5]  }
 0x187   :  { %280 = dma.done.wait [#allocation3], 32  }
 0x188   :  { %281 = vsyncadd [#allocation3], 4294967264 }
 0x189   :  { %282 = dma.done.wait [#allocation5], 32  }
 0x18a   :  { %283 = vsyncadd [#allocation5], 4294967264 }
 0x18b   :  { %181 = vsyncpa [#allocation3], 1 }
 0x18c   :  { %182 = vsyncpa [#allocation5], 1 }

// kernel: codet5p_enc_forward.3
= control target key start
LH: loop header
LB: loop body
LE: loop exit
PB: predicated region body
PF: predicated region fallthrough
CT: control target
= control target key end

     0   :  { %s5569_s30 = smov 0   ;;  %s7376_s0 = inlined_call_operand.vmem [shape: f32[2,128,128], index: 0, kind: input, shape index: {}]   ;;  %s7377_s1 = inlined_call_operand.vmem [shape: f32[1,128], index: 1, kind: input, shape index: {}]   ;;  %s7378_s2 = inlined_call_operand.vmem [shape: bf16[128,384], index: 2, kind: input, shape index: {}]   ;;  %s7379_s3 = inlined_call_operand.vmem [shape: bf16[128,128], index: 3, kind: input, shape index: {}]   ;;  %s7380_s4 = inlined_call_operand.vmem [shape: f32[4,128,128], index: 4, kind: input, shape index: {}]   ;;  %s7381_s5 = inlined_call_operand.vmem [shape: f32[2,1,128], index: 5, kind: input, shape index: {}]   ;;  %s7382_s6 = inlined_call_operand.vmem [shape: f32[1,128], index: 6, kind: input, shape index: {}]   ;;  %s7383_s7 = inlined_call_operand.vmem [shape: bf16[128,256], index: 7, kind: input, shape index: {}]   ;;  %s7384_s8 = inlined_call_operand.vmem [shape: bf16[256,128], index: 8, kind: input, shape index: {}]   ;;  %s7385_s9 = inlined_call_operand.vmem [shape: f32[2,128,128], index: 9, kind: output, shape index: {}]  }
   0x1 LB: > { %s4174_s10 = sadd.s32 4294967295, %s5513_s30   ;;  %p4178_p0 = scmp.ge.s32.totalorder %s5513_s30, 1  ;;  %s5513_s30 = sphi %s5569_s30, %s19_s30  }
   0x2   : > { %p295_p1 = scmp.lt.s32.totalorder %s5513_s30, 3 }
   0x4   : > { %p296_p2 = pnand %p4178_p0, %p295_p1 }
   0x6   : > { %299 = sbr.rel (%p296_p2) target bundleno = 3118 (0xc2e), region = 56 }
   0xd   : > { %p334_p3 = scmp.lt.s32.totalorder %s4174_s10, 1  ;;  %v5090_v0 = vld [vmem:[%s7378_s2 + $0x4] ss:$12 sps:$4 sm:$0xff]   ;;  %v5092_v1 = vld [vmem:[%s7378_s2] ss:$12 sps:$4 sm:$0xff]   ;;  %v7386_v56 = vmov 0  }
   0xe   : > { %668 = vmatprep.subr.bf16.mxu0 %v5090_v0  ;;  %v5093_v2 = vld [vmem:[%s7378_s2 + $0x8] ss:$12 sps:$4 sm:$0xff]   ;;  %v5096_v4 = vld [vmem:[%s7378_s2 + $0x18] ss:$12 sps:$4 sm:$0xff]   ;;  %v5097_v5 = vld [vmem:[%s7378_s2 + $0x20] ss:$12 sps:$4 sm:$0xff]   ;;  %700 = vmatprep.mubr.bf16.mxu0 %v7386_v56 }
   0xf   : > { %s7420_s10 = smov (!%p334_p3, %s4174_s10), 1  ;;  %669 = vmatpush1.bf16.msra.mxu0 %v5092_v1  ;;  %v5094_v3 = vld [vmem:[%s7378_s2 + $0x1c] ss:$12 sps:$4 sm:$0xff]   ;;  %4614 = vmatprep.subr.bf16.mxu1 %v5093_v2  ;;  %v5098_v28 = vld [vmem:[%s7378_s2 + $0x34] ss:$12 sps:$4 sm:$0xff]   ;;  %vm919_vm0 = vcmask 261120  }
  0x10   : > { %s4364_s21 = sshll.u32 %s7420_s10, 7  ;;  %4615 = vmatpush3.bf16.msra.mxu1 %v5093_v2  ;;  %670 = vmatprep.subr.bf16.mxu0 %v5094_v3  ;;  %v5100_v29 = vld [vmem:[%s7378_s2 + $0x30] ss:$12 sps:$4 sm:$0xff]   ;;  %v5101_v30 = vld [vmem:[%s7378_s2 + $0x38] ss:$12 sps:$4 sm:$0xff]   ;;  %s5516_s12 = smov 96  }
  0x11   : > { %s5603_s26 = scalar_lea.vmem %s7376_s0, %s4364_s21  ;;  %4616 = vmatprep.subr.bf16.mxu1 %v5097_v5  ;;  %v5102_v35 = vld [vmem:[%s7378_s2 + $0x4c] ss:$12 sps:$4 sm:$0xff]   ;;  %v5104_v36 = vld [vmem:[%s7378_s2 + $0x48] ss:$12 sps:$4 sm:$0xff]   ;;  %v5105_v37 = vld [vmem:[%s7378_s2 + $0x50] ss:$12 sps:$4 sm:$0xff]   ;;  %s5956_s15 = scalar_lea.vmem %s7381_s5, %s7420_s10 }
  0x12   : > { %v5606_v6 = vld [vmem:[%s5603_s26] sm:$0xff]  ;;  %v5609_v7 = vld [vmem:[%s5603_s26 + $0x10] sm:$0xff]  ;;  %v5612_v8 = vld [vmem:[%s5603_s26 + $0x8] sm:$0xff]  ;;  %s5517_s18 = smov 64   ;;  %s5518_s27 = smov 32  }
  0x13   : > { %v364_v9 = vmul.f32 %v5606_v6, %v5606_v6  ;;  %v366_v10 = vmul.f32 %v5609_v7, %v5609_v7  ;;  %v5619_v11 = vld [vmem:[%s5603_s26 + $0x18] sm:$0xff]  ;;  %671 = vmatpush1.bf16.msra.mxu0 %v5096_v4  ;;  %v365_v12 = vmul.f32 %v5612_v8, %v5612_v8  ;;  %v5626_v14 = vld [vmem:[%s5603_s26 + $0x28] sm:$0xff]  ;;  %v5629_v15 = vld [vmem:[%s5603_s26 + $0x20] sm:$0xff]  ;;  %s7339_s24 = scalar_lea.vmem %s7385_s9, %s4364_s21 }
  0x14   : > { %v367_v13 = vmul.f32 %v5619_v11, %v5619_v11  ;;  %4617 = vmatpush3.bf16.msra.mxu1 %v5097_v5  ;;  %v5632_v16 = vld [vmem:[%s5603_s26 + $0x38] sm:$0xff]  ;;  %v5635_v17 = vld [vmem:[%s5603_s26 + $0x30] sm:$0xff]  ;;  %v369_v18 = vmul.f32 %v5626_v14, %v5626_v14  ;;  %v368_v19 = vmul.f32 %v5629_v15, %v5629_v15  ;;  %v5642_v20 = vld [vmem:[%s5603_s26 + $0x48] sm:$0xff]  ;;  %672 = vmatprep.subr.bf16.mxu0 %v5098_v28 }
  0x15   : > { %380 = vadd.xlane.f32.xlu0 %v364_v9  ;;  %384 = vadd.xlane.f32.xlu1 %v366_v10  ;;  %v5645_v21 = vld [vmem:[%s5603_s26 + $0x40] sm:$0xff]  ;;  %v371_v22 = vmul.f32 %v5632_v16, %v5632_v16  ;;  %v370_v23 = vmul.f32 %v5635_v17, %v5635_v17  ;;  %v5652_v24 = vld [vmem:[%s5603_s26 + $0x58] sm:$0xff]  ;;  %v5655_v25 = vld [vmem:[%s5603_s26 + $0x50] sm:$0xff]  ;;  %v373_v26 = vmul.f32 %v5642_v20, %v5642_v20 }
  0x16   : > { %v372_v27 = vmul.f32 %v5645_v21, %v5645_v21  ;;  %v5671_v31 = vld [vmem:[%s5603_s26 + $0x68] sm:$0xff]  ;;  %v5674_v32 = vld [vmem:[%s5603_s26 + $0x60] sm:$0xff]  ;;  %v375_v33 = vmul.f32 %v5652_v24, %v5652_v24  ;;  %v374_v34 = vmul.f32 %v5655_v25, %v5655_v25  ;;  %4618 = vmatprep.subr.bf16.mxu1 %v5101_v30  ;;  %v5690_v38 = vld [vmem:[%s5603_s26 + $0x78] sm:$0xff] }
  0x17   : > { %673 = vmatpush1.bf16.msra.mxu0 %v5100_v29  ;;  %v5693_v39 = vld [vmem:[%s5603_s26 + $0x70] sm:$0xff]  ;;  %v377_v40 = vmul.f32 %v5671_v31, %v5671_v31  ;;  %v376_v41 = vmul.f32 %v5674_v32, %v5674_v32  ;;  %v5108_v43 = vld [vmem:[%s7378_s2 + $0x60] ss:$12 sps:$4 sm:$0xff]   ;;  %v5110_v45 = vld [vmem:[%s7378_s2 + $0x7c] ss:$12 sps:$4 sm:$0xff]   ;;  %v379_v48 = vmul.f32 %v5690_v38, %v5690_v38 }
  0x18   : > { %4619 = vmatpush3.bf16.msra.mxu1 %v5101_v30  ;;  %674 = vmatprep.subr.bf16.mxu0 %v5102_v35  ;;  %v5106_v42 = vld [vmem:[%s7378_s2 + $0x64] ss:$12 sps:$4 sm:$0xff]   ;;  %v5109_v44 = vld [vmem:[%s7378_s2 + $0x68] ss:$12 sps:$4 sm:$0xff]   ;;  %v5113_v47 = vld [vmem:[%s7378_s2 + $0x80] ss:$12 sps:$4 sm:$0xff]   ;;  %v378_v49 = vmul.f32 %v5693_v39, %v5693_v39 }
  0x19   : > { %382 = vadd.xlane.f32.xlu0 %v365_v12  ;;  %386 = vadd.xlane.f32.xlu1 %v367_v13  ;;  %v5112_v46 = vld [vmem:[%s7378_s2 + $0x78] ss:$12 sps:$4 sm:$0xff]   ;;  %v5114_v50 = vld [vmem:[%s7378_s2 + $0x94] ss:$12 sps:$4 sm:$0xff]   ;;  %v5116_v51 = vld [vmem:[%s7378_s2 + $0x90] ss:$12 sps:$4 sm:$0xff]  }
  0x1a   : > { %4620 = vmatprep.subr.bf16.mxu1 %v5105_v37  ;;  %v5117_v52 = vld [vmem:[%s7378_s2 + $0x98] ss:$12 sps:$4 sm:$0xff]   ;;  %v5120_v54 = vld [vmem:[%s7378_s2 + $0xa8] ss:$12 sps:$4 sm:$0xff]   ;;  %v5121_v55 = vld [vmem:[%s7378_s2 + $0xb0] ss:$12 sps:$4 sm:$0xff]  }
  0x1b   : > { %675 = vmatpush1.bf16.msra.mxu0 %v5104_v36  ;;  %v5118_v53 = vld [vmem:[%s7378_s2 + $0xac] ss:$12 sps:$4 sm:$0xff]  }
  0x1c   : > { %4621 = vmatpush3.bf16.msra.mxu1 %v5105_v37  ;;  %676 = vmatprep.subr.bf16.mxu0 %v5106_v42  ;;  %v5745_v42 = vld [vmem:[%s7377_s1] ss:$0 sm:$0xff] }
  0x1d   : > { %390 = vadd.xlane.f32.xlu1 %v369_v18  ;;  %388 = vadd.xlane.f32.xlu0 %v368_v19 }
  0x1e   : > { %4622 = vmatprep.subr.bf16.mxu1 %v5109_v44 }
  0x1f   : > { %677 = vmatpush1.bf16.msra.mxu0 %v5108_v43 }
  0x20   : > { %4623 = vmatpush3.bf16.msra.mxu1 %v5109_v44  ;;  %678 = vmatprep.subr.bf16.mxu0 %v5110_v45 }
  0x21   : > { %394 = vadd.xlane.f32.xlu1 %v371_v22  ;;  %392 = vadd.xlane.f32.xlu0 %v370_v23 }
  0x22   : > { %4624 = vmatprep.subr.bf16.mxu1 %v5113_v47 }
  0x23   : > { %679 = vmatpush1.bf16.msra.mxu0 %v5112_v46 }
  0x24   : > { %4625 = vmatpush3.bf16.msra.mxu1 %v5113_v47  ;;  %680 = vmatprep.subr.bf16.mxu0 %v5114_v50 }
  0x25   : > { %398 = vadd.xlane.f32.xlu1 %v373_v26  ;;  %396 = vadd.xlane.f32.xlu0 %v372_v27 }
  0x26   : > { %4626 = vmatprep.subr.bf16.mxu1 %v5117_v52 }
  0x27   : > { %681 = vmatpush1.bf16.msra.mxu0 %v5116_v51 }
  0x28   : > { %4627 = vmatpush3.bf16.msra.mxu1 %v5117_v52  ;;  %682 = vmatprep.subr.bf16.mxu0 %v5118_v53 }
  0x29   : > { %402 = vadd.xlane.f32.xlu1 %v375_v33  ;;  %400 = vadd.xlane.f32.xlu0 %v374_v34 }
  0x2a   : > { %4628 = vmatprep.subr.bf16.mxu1 %v5121_v55 }
  0x2b   : > { %683 = vmatpush1.bf16.msra.mxu0 %v5120_v54 }
  0x2c   : > { %4629 = vmatpush3.bf16.msra.mxu1 %v5121_v55 }
  0x2d   : > { %406 = vadd.xlane.f32.xlu1 %v377_v40  ;;  %404 = vadd.xlane.f32.xlu0 %v376_v41 }
  0x31   : > { %410 = vadd.xlane.f32.xlu1 %v379_v48  ;;  %408 = vadd.xlane.f32.xlu0 %v378_v49 }
  0xa2   : > { %v381_v57 = vpop.xlane.xlu0 %380  ;;  %v385_v58 = vpop.xlane.xlu1 %384 }
  0xa3   : > { %v413_v59 = vmul.f32 0.0078125, %v381_v57  ;;  %v415_v60 = vmul.f32 0.0078125, %v385_v58 }
  0xa5   : > { %v429_v61 = vadd.f32 1e-06, %v413_v59  ;;  %v431_v62 = vadd.f32 1e-06, %v415_v60 }
  0xa6   : > { %v383_v63 = vpop.xlane.xlu0 %382  ;;  %v387_v0 = vpop.xlane.xlu1 %386 }
  0xa7   : > { %5170 = vrsqrt.f32 %v429_v61  ;;  %v414_v1 = vmul.f32 0.0078125, %v383_v63  ;;  %v416_v2 = vmul.f32 0.0078125, %v387_v0 }
  0xa8   : > { %5172 = vrsqrt.f32 %v431_v62 }
  0xa9   : > { %v430_v3 = vadd.f32 1e-06, %v414_v1  ;;  %v432_v4 = vadd.f32 1e-06, %v416_v2 }
  0xaa   : > { %v391_v5 = vpop.xlane.xlu1 %390  ;;  %v389_v9 = vpop.xlane.xlu0 %388 }
  0xab   : > { %5174 = vrsqrt.f32 %v430_v3  ;;  %v418_v10 = vmul.f32 0.0078125, %v391_v5  ;;  %v417_v12 = vmul.f32 0.0078125, %v389_v9 }
  0xac   : > { %5176 = vrsqrt.f32 %v432_v4 }
  0xad   : > { %v434_v13 = vadd.f32 1e-06, %v418_v10  ;;  %v433_v18 = vadd.f32 1e-06, %v417_v12 }
  0xae   : > { %v395_v19 = vpop.xlane.xlu1 %394  ;;  %v393_v22 = vpop.xlane.xlu0 %392 }
  0xaf   : > { %5178 = vrsqrt.f32 %v434_v13  ;;  %v420_v23 = vmul.f32 0.0078125, %v395_v19  ;;  %v419_v26 = vmul.f32 0.0078125, %v393_v22 }
  0xb0   : > { %5180 = vrsqrt.f32 %v433_v18 }
  0xb1   : > { %v5171_v27 = vpop.eup %5170  ;;  %v436_v28 = vadd.f32 1e-06, %v420_v23  ;;  %v435_v29 = vadd.f32 1e-06, %v419_v26 }
  0xb2   : > { %v5173_v30 = vpop.eup %5172  ;;  %v399_v33 = vpop.xlane.xlu1 %398  ;;  %v461_v40 = vmul.f32 %v5171_v27, %v5606_v6 }
  0xb3   : > { %v397_v34 = vpop.xlane.xlu0 %396  ;;  %5182 = vrsqrt.f32 %v436_v28  ;;  %v463_v35 = vmul.f32 %v5173_v30, %v5609_v7  ;;  %v422_v36 = vmul.f32 0.0078125, %v399_v33 }
  0xb4   : > { %v421_v37 = vmul.f32 0.0078125, %v397_v34  ;;  %5184 = vrsqrt.f32 %v435_v29  ;;  %v484_v51 = vmul.f32 %v5745_v42, %v461_v40 }
  0xb5   : > { %v5175_v41 = vpop.eup %5174  ;;  %v438_v43 = vadd.f32 1e-06, %v422_v36  ;;  %v486_v47 = vmul.f32 %v5745_v42, %v463_v35 }
  0xb6   : > { %v437_v44 = vadd.f32 1e-06, %v421_v37  ;;  %v5177_v45 = vpop.eup %5176  ;;  %v462_v46 = vmul.f32 %v5175_v41, %v5612_v8  ;;  %v403_v48 = vpop.xlane.xlu1 %402 }
  0xb7   : > { %v401_v7 = vpop.xlane.xlu0 %400  ;;  %v464_v49 = vmul.f32 %v5177_v45, %v5619_v11  ;;  %5186 = vrsqrt.f32 %v438_v43  ;;  %v424_v50 = vmul.f32 0.0078125, %v403_v48 }
  0xb8   : > { %v423_v6 = vmul.f32 0.0078125, %v401_v7  ;;  %v485_v52 = vmul.f32 %v5745_v42, %v462_v46  ;;  %5188 = vrsqrt.f32 %v437_v44 }
  0xb9   : > { %v5179_v53 = vpop.eup %5178  ;;  %v487_v54 = vmul.f32 %v5745_v42, %v464_v49  ;;  %v440_v55 = vadd.f32 1e-06, %v424_v50 }
  0xba   : > { %v439_v57 = vadd.f32 1e-06, %v423_v6  ;;  %v5181_v8 = vpop.eup %5180  ;;  %v500_v58 = vpack.c.bf16 %v485_v52, %v484_v51  ;;  %v466_v59 = vmul.f32 %v5179_v53, %v5626_v14  ;;  %v407_v60 = vpop.xlane.xlu1 %406 }
  0xbb   : > { %v405_v61 = vpop.xlane.xlu0 %404  ;;  %v501_v11 = vpack.c.bf16 %v487_v54, %v486_v47  ;;  %5190 = vrsqrt.f32 %v440_v55  ;;  %v465_v62 = vmul.f32 %v5181_v8, %v5629_v15  ;;  %v426_v63 = vmul.f32 0.0078125, %v407_v60 }
  0xbc   : > { %701 = vmatmul.mubr.bf16.vlgmr.msra.gmra.mrb[0].mxu0 %v500_v58  ;;  %4630 = vmatprep.mubr.bf16.mxu1 %v500_v58  ;;  %5192 = vrsqrt.f32 %v439_v57  ;;  %v489_v0 = vmul.f32 %v5745_v42, %v466_v59  ;;  %v425_v1 = vmul.f32 0.0078125, %v405_v61 }
  0xbd   : > { %v5183_v2 = vpop.eup %5182  ;;  %4631 = vmatmul.mubr.bf16.vlgmr.msra.gmra.mrb[0].mxu1 %v501_v11  ;;  %710 = vmatprep.mubr.bf16.mxu0 %v7386_v56  ;;  %v488_v3 = vmul.f32 %v5745_v42, %v465_v62  ;;  %v442_v14 = vadd.f32 1e-06, %v426_v63 }
  0xbe   : > { %v5185_v4 = vpop.eup %5184  ;;  %v468_v5 = vmul.f32 %v5183_v2, %v5632_v16  ;;  %v441_v9 = vadd.f32 1e-06, %v425_v1  ;;  %v411_v10 = vpop.xlane.xlu1 %410 }
  0xbf   : > { %v409_v15 = vpop.xlane.xlu0 %408  ;;  %v502_v12 = vpack.c.bf16 %v489_v0, %v488_v3  ;;  %v467_v13 = vmul.f32 %v5185_v4, %v5635_v17  ;;  %5194 = vrsqrt.f32 %v442_v14  ;;  %v428_v18 = vmul.f32 0.0078125, %v411_v10 }
  0xc0   : > { %v491_v19 = vmul.f32 %v5745_v42, %v468_v5  ;;  %5196 = vrsqrt.f32 %v441_v9  ;;  %v427_v22 = vmul.f32 0.0078125, %v409_v15 }
  0xc1   : > { %v5187_v23 = vpop.eup %5186  ;;  %4634 = vmatprep.mubr.bf16.mxu1 %v502_v12  ;;  %v490_v26 = vmul.f32 %v5745_v42, %v467_v13  ;;  %v444_v27 = vadd.f32 1e-06, %v428_v18 }
  0xc2   : > { %v5189_v28 = vpop.eup %5188  ;;  %v443_v29 = vadd.f32 1e-06, %v427_v22  ;;  %v470_v16 = vmul.f32 %v5187_v23, %v5642_v20 }
  0xc3   : > { %v503_v30 = vpack.c.bf16 %v491_v19, %v490_v26  ;;  %5198 = vrsqrt.f32 %v444_v27  ;;  %v469_v33 = vmul.f32 %v5189_v28, %v5645_v21 }
  0xc4   : > { %711 = vmatmul.mubr.bf16.gmra.mrb[4].mxu0 %v501_v11  ;;  %5200 = vrsqrt.f32 %v443_v29  ;;  %v493_v17 = vmul.f32 %v5745_v42, %v470_v16 }
  0xc5   : > { %v5191_v34 = vpop.eup %5190  ;;  %720 = vmatprep.mubr.bf16.mxu0 %v7386_v56  ;;  %4635 = vmatmul.mubr.bf16.gmra.mrb[4].mxu1 %v503_v30  ;;  %v492_v35 = vmul.f32 %v5745_v42, %v469_v33 }
  0xc6   : > { %v5193_v36 = vpop.eup %5192  ;;  %v472_v37 = vmul.f32 %v5191_v34, %v5652_v24 }
  0xc7   : > { %v504_v40 = vpack.c.bf16 %v493_v17, %v492_v35  ;;  %v471_v20 = vmul.f32 %v5193_v36, %v5655_v25 }
  0xc8   : > { %v495_v41 = vmul.f32 %v5745_v42, %v472_v37 }
  0xc9   : > { %v5195_v43 = vpop.eup %5194  ;;  %4638 = vmatprep.mubr.bf16.mxu1 %v504_v40  ;;  %v494_v21 = vmul.f32 %v5745_v42, %v471_v20 }
  0xca   : > { %v5197_v44 = vpop.eup %5196  ;;  %v474_v45 = vmul.f32 %v5195_v43, %v5671_v31 }
  0xcb   : > { %v505_v46 = vpack.c.bf16 %v495_v41, %v494_v21  ;;  %v473_v47 = vmul.f32 %v5197_v44, %v5674_v32 }
  0xcc   : > { %721 = vmatmul.mubr.bf16.gmra.mrb[8].mxu0 %v502_v12  ;;  %v497_v48 = vmul.f32 %v5745_v42, %v474_v45 }
  0xcd   : > { %v5199_v7 = vpop.eup %5198  ;;  %730 = vmatprep.mubr.bf16.mxu0 %v7386_v56  ;;  %4639 = vmatmul.mubr.bf16.gmra.mrb[8].mxu1 %v505_v46  ;;  %v496_v24 = vmul.f32 %v5745_v42, %v473_v47 }
  0xce   : > { %v5201_v25 = vpop.eup %5200  ;;  %v476_v49 = vmul.f32 %v5199_v7, %v5690_v38 }
  0xcf   : > { %v506_v50 = vpack.c.bf16 %v497_v48, %v496_v24  ;;  %v475_v6 = vmul.f32 %v5201_v25, %v5693_v39 }
  0xd0   : > { %v499_v31 = vmul.f32 %v5745_v42, %v476_v49 }
  0xd1   : > { %4642 = vmatprep.mubr.bf16.mxu1 %v506_v50  ;;  %v498_v32 = vmul.f32 %v5745_v42, %v475_v6 }
  0xd3   : > { %v507_v51 = vpack.c.bf16 %v499_v31, %v498_v32 }
  0xd4   : > { %731 = vmatmul.mubr.bf16.gmra.mrb[12].mxu0 %v503_v30 }
  0xd5   : > { %740 = vmatprep.mubr.bf16.mxu0 %v7386_v56  ;;  %4643 = vmatmul.mubr.bf16.gmra.mrb[12].mxu1 %v507_v51 }
  0xdc   : > { %741 = vmatmul.mubr.bf16.gmra.mrb[16].mxu0 %v504_v40 }
  0xdd   : > { %750 = vmatprep.mubr.bf16.mxu0 %v7386_v56 }
  0xe4   : > { %751 = vmatmul.mubr.bf16.gmra.mrb[20].mxu0 %v505_v46 }
  0xe5   : > { %760 = vmatprep.mubr.bf16.mxu0 %v7386_v56 }
  0xec   : > { %761 = vmatmul.mubr.bf16.gmra.mrb[24].mxu0 %v506_v50 }
  0xed   : > { %770 = vmatprep.mubr.bf16.mxu0 %v7386_v56 }
  0xf4   : > { %771 = vmatmul.mubr.bf16.gmra.mrb[28].mxu0 %v507_v51 }
 0x18f   : > { %v702_v38 = vpop.f32.mrb[0].mxu0 }
 0x190   : > { %v704_v39 = vpop.f32.mrb[1].mxu0  ;;  %v4632_v52 = vpop.f32.mrb[0].mxu1 }
 0x191   : > { %v706_v53 = vpop.f32.mrb[2].mxu0  ;;  %v815_v42 = vpop.f32.mrb[1].mxu1 }
 0x192   : > { %v5784_v54 = vpack.c.bf16 %v706_v53, %v702_v38  ;;  %v708_v55 = vpop.f32.mrb[3].mxu0  ;;  %v4633_v57 = vpop.f32.mrb[2].mxu1 }
 0x193   : > { %v5786_v8 = vpack.c.bf16 %v708_v55, %v704_v39  ;;  %v5788_v58 = vpack.c.bf16 %v4633_v57, %v4632_v52  ;;  %v818_v59 = vpop.f32.mrb[3].mxu1 }
 0x194   : > { %v5790_v60 = vpack.c.bf16 %v818_v59, %v815_v42  ;;  %4662 = vmatprep.mubr.msk.bf16.mxu0 %vm919_vm0, %v5784_v54 }
 0x195   : > { %7400 = vst [vmem:[#allocation2_spill] sm:$0xff] %v5788_v58  ;;  %1546 = vrot.lane.b32.xlu0 %v5786_v8, %s5516_s12  ;;  %5046 = vmatprep.subr.msk.bf16.mxu0 %vm919_vm0, %v5786_v8  ;;  %v945_v61 = vsel %vm919_vm0, %v5786_v8, 0 }
 0x196   : > { %7401 = vst [vmem:[#allocation3_spill] sm:$0xff] %v5790_v60  ;;  %4647 = vmatpush3.bf16.xpose.msra.mxu0 %v945_v61  ;;  %4678 = vmatprep.subr.bf16.mxu1 %v5790_v60 }
 0x197   : > { %v712_v11 = vpop.f32.mrb[4].mxu0  ;;  %4679 = vmatpush3.bf16.msra.mxu1 %v5790_v60 }
 0x198   : > { %v714_v62 = vpop.f32.mrb[5].mxu0  ;;  %4680 = vmatprep.subr.bf16.mxu1 %v5788_v58  ;;  %v4636_v63 = vpop.f32.mrb[4].mxu1 }
 0x199   : > { %v716_v0 = vpop.f32.mrb[6].mxu0  ;;  %v831_v1 = vpop.f32.mrb[5].mxu1 }
 0x19a   : > { %v5803_v2 = vpack.c.bf16 %v716_v0, %v712_v11  ;;  %v718_v3 = vpop.f32.mrb[7].mxu0  ;;  %v4637_v14 = vpop.f32.mrb[6].mxu1 }
 0x19b   : > { %v5805_v4 = vpack.c.bf16 %v718_v3, %v714_v62  ;;  %4681 = vmatpush3.bf16.msra.mxu1 %v5788_v58  ;;  %v5808_v5 = vpack.c.bf16 %v4637_v14, %v4636_v63  ;;  %v834_v9 = vpop.f32.mrb[7].mxu1 }
 0x19c   : > { %v5810_v10 = vpack.c.bf16 %v834_v9, %v831_v1 }
 0x19d   : > { %1548 = vrot.lane.b32.xlu1 %v5805_v4, %s5516_s12  ;;  %5047 = vmatprep.subr.msk.bf16.mxu0 %vm919_vm0, %v5805_v4  ;;  %v948_v15 = vsel %vm919_vm0, %v5805_v4, 0 }
 0x19e   : > { %4649 = vmatpush3.bf16.xpose.msra.mxu0 %v948_v15  ;;  %4682 = vmatprep.subr.bf16.mxu1 %v5810_v10 }
 0x19f   : > { %v722_v12 = vpop.f32.mrb[8].mxu0  ;;  %4683 = vmatpush3.bf16.msra.mxu1 %v5810_v10 }
 0x1a0   : > { %v724_v13 = vpop.f32.mrb[9].mxu0  ;;  %4684 = vmatprep.subr.bf16.mxu1 %v5808_v5  ;;  %v4640_v18 = vpop.f32.mrb[8].mxu1 }
 0x1a1   : > { %v726_v19 = vpop.f32.mrb[10].mxu0  ;;  %v847_v22 = vpop.f32.mrb[9].mxu1 }
 0x1a2   : > { %v5821_v23 = vpack.c.bf16 %v726_v19, %v722_v12  ;;  %v728_v26 = vpop.f32.mrb[11].mxu0  ;;  %v4641_v27 = vpop.f32.mrb[10].mxu1 }
 0x1a3   : > { %v5823_v28 = vpack.c.bf16 %v728_v26, %v724_v13  ;;  %4685 = vmatpush3.bf16.msra.mxu1 %v5808_v5  ;;  %v5826_v29 = vpack.c.bf16 %v4641_v27, %v4640_v18  ;;  %v850_v16 = vpop.f32.mrb[11].mxu1 }
 0x1a4   : > { %v5828_v30 = vpack.c.bf16 %v850_v16, %v847_v22 }
 0x1a5   : > { %7402 = vst [vmem:[#allocation4_spill] sm:$0xff] %v5826_v29  ;;  %1550 = vrot.lane.b32.xlu1 %v5823_v28, %s5516_s12  ;;  %5048 = vmatprep.subr.msk.bf16.mxu0 %vm919_vm0, %v5823_v28  ;;  %v951_v33 = vsel %vm919_vm0, %v5823_v28, 0 }
 0x1a6   : > { %7403 = vst [vmem:[#allocation5_spill] sm:$0xff] %v5828_v30  ;;  %4651 = vmatpush3.bf16.xpose.msra.mxu0 %v951_v33  ;;  %4686 = vmatprep.subr.bf16.mxu1 %v5828_v30 }
 0x1a7   : > { %v732_v17 = vpop.f32.mrb[12].mxu0  ;;  %4687 = vmatpush3.bf16.msra.mxu1 %v5828_v30 }
 0x1a8   : > { %v734_v34 = vpop.f32.mrb[13].mxu0  ;;  %4688 = vmatprep.subr.bf16.mxu1 %v5826_v29  ;;  %v4644_v35 = vpop.f32.mrb[12].mxu1 }
 0x1a9   : > { %v736_v36 = vpop.f32.mrb[14].mxu0  ;;  %v863_v37 = vpop.f32.mrb[13].mxu1 }
 0x1aa   : > { %v5839_v40 = vpack.c.bf16 %v736_v36, %v732_v17  ;;  %v738_v20 = vpop.f32.mrb[15].mxu0  ;;  %v4645_v41 = vpop.f32.mrb[14].mxu1 }
 0x1ab   : > { %v5841_v43 = vpack.c.bf16 %v738_v20, %v734_v34  ;;  %4689 = vmatpush3.bf16.msra.mxu1 %v5826_v29  ;;  %v5844_v21 = vpack.c.bf16 %v4645_v41, %v4644_v35  ;;  %v866_v44 = vpop.f32.mrb[15].mxu1 }
 0x1ac   : > { %v5846_v45 = vpack.c.bf16 %v866_v44, %v863_v37 }
 0x1ad   : > { %7404 = vst [vmem:[#allocation6_spill] sm:$0xff] %v5844_v21  ;;  %1552 = vrot.lane.b32.xlu1 %v5841_v43, %s5516_s12  ;;  %5049 = vmatprep.subr.msk.bf16.mxu0 %vm919_vm0, %v5841_v43  ;;  %v954_v46 = vsel %vm919_vm0, %v5841_v43, 0 }
 0x1ae   : > { %7405 = vst [vmem:[#allocation7_spill] sm:$0xff] %v5846_v45  ;;  %4653 = vmatpush3.bf16.xpose.msra.mxu0 %v954_v46  ;;  %4690 = vmatprep.subr.bf16.mxu1 %v5846_v45 }
 0x1af   : > { %v742_v47 = vpop.f32.mrb[16].mxu0  ;;  %4691 = vmatpush3.bf16.msra.mxu1 %v5846_v45 }
 0x1b0   : > { %v744_v48 = vpop.f32.mrb[17].mxu0  ;;  %4692 = vmatprep.subr.bf16.mxu1 %v5844_v21 }
 0x1b1   : > { %v746_v7 = vpop.f32.mrb[18].mxu0 }
 0x1b2   : > { %v5857_v24 = vpack.c.bf16 %v746_v7, %v742_v47  ;;  %v748_v25 = vpop.f32.mrb[19].mxu0 }
 0x1b3   : > { %v5859_v49 = vpack.c.bf16 %v748_v25, %v744_v48  ;;  %4693 = vmatpush3.bf16.msra.mxu1 %v5844_v21 }
 0x1b5   : > { %1554 = vrot.lane.b32.xlu0 %v5859_v49, %s5516_s12  ;;  %5050 = vmatprep.subr.msk.bf16.mxu0 %vm919_vm0, %v5859_v49  ;;  %v957_v50 = vsel %vm919_vm0, %v5859_v49, 0 }
 0x1b6   : > { %4655 = vmatpush3.bf16.xpose.msra.mxu0 %v957_v50 }
 0x1b7   : > { %v752_v6 = vpop.f32.mrb[20].mxu0 }
 0x1b8   : > { %v754_v31 = vpop.f32.mrb[21].mxu0 }
 0x1b9   : > { %v756_v32 = vpop.f32.mrb[22].mxu0 }
 0x1ba   : > { %v5868_v51 = vpack.c.bf16 %v756_v32, %v752_v6  ;;  %v758_v38 = vpop.f32.mrb[23].mxu0  ;;  %v905_v6 = vld [vmem:[%s7380_s4 + $0x10] sm:$0xff] }
 0x1bb   : > { %v5870_v39 = vpack.c.bf16 %v758_v38, %v754_v31  ;;  %v5962_v31 = vld [vmem:[%s5956_s15] ss:$0 sm:$0xff] }
 0x1bc   : > { %v903_v38 = vld [vmem:[%s7380_s4] sm:$0xff] }
 0x1bd   : > { %1556 = vrot.lane.b32.xlu1 %v5870_v39, %s5516_s12  ;;  %5051 = vmatprep.subr.msk.bf16.mxu0 %vm919_vm0, %v5870_v39  ;;  %v960_v52 = vsel %vm919_vm0, %v5870_v39, 0 }
 0x1be   : > { %4657 = vmatpush3.bf16.xpose.msra.mxu0 %v960_v52 }
 0x1bf   : > { %v762_v53 = vpop.f32.mrb[24].mxu0 }
 0x1c0   : > { %v764_v42 = vpop.f32.mrb[25].mxu0 }
 0x1c1   : > { %1524 = vrot.lane.b32.xlu1 %v5803_v2, %s5516_s12  ;;  %v766_v55 = vpop.f32.mrb[26].mxu0 }
 0x1c2   : > { %v5880_v57 = vpack.c.bf16 %v766_v55, %v762_v53  ;;  %v768_v59 = vpop.f32.mrb[27].mxu0 }
 0x1c3   : > { %v5882_v61 = vpack.c.bf16 %v768_v59, %v764_v42  ;;  %v904_v42 = vld [vmem:[%s7380_s4 + $0x8] sm:$0xff] }
 0x1c5   : > { %1528 = vrot.lane.b32.xlu1 %v5839_v40, %s5516_s12  ;;  %1558 = vrot.lane.b32.xlu0 %v5882_v61, %s5516_s12  ;;  %v963_v11 = vsel %vm919_vm0, %v5882_v61, 0 }
 0x1c6   : > { %5052 = vmatprep.subr.msk.bf16.mxu0 %vm919_vm0, %v5882_v61 }
 0x1c7   : > { %4659 = vmatpush3.bf16.xpose.msra.mxu0 %v963_v11  ;;  %v772_v62 = vpop.f32.mrb[28].mxu0 }
 0x1c8   : > { %v774_v63 = vpop.f32.mrb[29].mxu0 }
 0x1c9   : > { %1532 = vrot.lane.b32.xlu1 %v5868_v51, %s5516_s12  ;;  %1522 = vrot.lane.b32.xlu0 %v5784_v54, %s5516_s12  ;;  %v776_v0 = vpop.f32.mrb[30].mxu0 }
 0x1ca   : > { %v5896_v1 = vpack.c.bf16 %v776_v0, %v772_v62  ;;  %v778_v3 = vpop.f32.mrb[31].mxu0 }
 0x1cb   : > { %v5898_v14 = vpack.c.bf16 %v778_v3, %v774_v63  ;;  %v906_v63 = vld [vmem:[%s7380_s4 + $0x18] sm:$0xff] }
 0x1cd   : > { %1526 = vrot.lane.b32.xlu0 %v5821_v23, %s5516_s12  ;;  %1560 = vrot.lane.b32.xlu1 %v5898_v14, %s5516_s12  ;;  %v966_v9 = vsel %vm919_vm0, %v5898_v14, 0 }
 0x1ce   : > { %5053 = vmatprep.subr.msk.bf16.mxu0 %vm919_vm0, %v5898_v14 }
 0x1cf   : > { %4661 = vmatpush3.bf16.xpose.msra.mxu0 %v966_v9 }
 0x1d1   : > { %1530 = vrot.lane.b32.xlu0 %v5857_v24, %s5516_s12  ;;  %1536 = vrot.lane.b32.xlu1 %v5896_v1, %s5516_s12 }
 0x1d5   : > { %1534 = vrot.lane.b32.xlu0 %v5880_v57, %s5516_s12 }
 0x1d6   : > { %4663 = vmatmul.mubr.msk.bf16.vlgmr.msra.gmra.mrb[32].mxu0 %vm919_vm0, %v5803_v2 }
 0x1d7   : > { %4666 = vmatprep.mubr.msk.bf16.mxu0 %vm919_vm0, %v5821_v23 }
 0x1de   : > { %4667 = vmatmul.mubr.msk.bf16.gmra.mrb[36].mxu0 %vm919_vm0, %v5839_v40 }
 0x1df   : > { %4670 = vmatprep.mubr.msk.bf16.mxu0 %vm919_vm0, %v5857_v24 }
 0x1e6   : > { %4671 = vmatmul.mubr.msk.bf16.gmra.mrb[40].mxu0 %vm919_vm0, %v5868_v51 }
 0x1e7   : > { %4674 = vmatprep.mubr.msk.bf16.mxu0 %vm919_vm0, %v5880_v57 }
 0x1ee   : > { %4675 = vmatmul.mubr.msk.bf16.gmra.mrb[44].mxu0 %vm919_vm0, %v5896_v1 }
 0x207   : > { %v1547_v15 = vpop.permute.xlu0 %1546 }
 0x208   : > { %5054 = vmatprep.subr.msk.bf16.mxu0 %vm919_vm0, %v1547_v15  ;;  %v1587_v12 = vsel %vm919_vm0, %v1547_v15, 0 }
 0x209   : > { %4731 = vmatpush3.bf16.xpose.msra.mxu0 %v1587_v12 }
 0x20f   : > { %v1549_v13 = vpop.permute.xlu1 %1548 }
 0x210   : > { %5055 = vmatprep.subr.msk.bf16.mxu0 %vm919_vm0, %v1549_v13  ;;  %v1590_v18 = vsel %vm919_vm0, %v1549_v13, 0  ;;  %v907_v13 = vld [vmem:[%s7380_s4 + $0x20] sm:$0xff] }
 0x211   : > { %4733 = vmatpush3.bf16.xpose.msra.mxu0 %v1590_v18  ;;  %v910_v18 = vld [vmem:[%s7380_s4 + $0x38] sm:$0xff] }
 0x217   : > { %v1551_v19 = vpop.permute.xlu1 %1550 }
 0x218   : > { %5056 = vmatprep.subr.msk.bf16.mxu0 %vm919_vm0, %v1551_v19  ;;  %v1593_v22 = vsel %vm919_vm0, %v1551_v19, 0 }
 0x219   : > { %4735 = vmatpush3.bf16.xpose.msra.mxu0 %v1593_v22 }
 0x21f   : > { %v1553_v26 = vpop.permute.xlu1 %1552 }
 0x220   : > { %5057 = vmatprep.subr.msk.bf16.mxu0 %vm919_vm0, %v1553_v26  ;;  %v1596_v27 = vsel %vm919_vm0, %v1553_v26, 0  ;;  %v908_v26 = vld [vmem:[%s7380_s4 + $0x28] sm:$0xff] }
 0x221   : > { %4737 = vmatpush3.bf16.xpose.msra.mxu0 %v1596_v27 }
 0x227   : > { %v1555_v16 = vpop.permute.xlu0 %1554 }
 0x228   : > { %5058 = vmatprep.subr.msk.bf16.mxu0 %vm919_vm0, %v1555_v16  ;;  %v1599_v33 = vsel %vm919_vm0, %v1555_v16, 0 }
 0x229   : > { %4739 = vmatpush3.bf16.xpose.msra.mxu0 %v1599_v33 }
 0x22f   : > { %v1557_v17 = vpop.permute.xlu1 %1556 }
 0x230   : > { %5059 = vmatprep.subr.msk.bf16.mxu0 %vm919_vm0, %v1557_v17  ;;  %v1602_v34 = vsel %vm919_vm0, %v1557_v17, 0 }
 0x231   : > { %4741 = vmatpush3.bf16.xpose.msra.mxu0 %v1602_v34  ;;  %v909_v34 = vld [vmem:[%s7380_s4 + $0x30] sm:$0xff] }
 0x233   : > { %v1525_v35 = vpop.permute.xlu1 %1524 }
 0x237   : > { %v1529_v36 = vpop.permute.xlu1 %1528  ;;  %v1559_v37 = vpop.permute.xlu0 %1558 }
 0x238   : > { %5060 = vmatprep.subr.msk.bf16.mxu0 %vm919_vm0, %v1559_v37  ;;  %v1605_v20 = vsel %vm919_vm0, %v1559_v37, 0 }
 0x239   : > { %4743 = vmatpush3.bf16.xpose.msra.mxu0 %v1605_v20 }
 0x23b   : > { %v1533_v41 = vpop.permute.xlu1 %1532  ;;  %v1523_v44 = vpop.permute.xlu0 %1522 }
 0x23c   : > { %4746 = vmatprep.mubr.msk.bf16.mxu0 %vm919_vm0, %v1523_v44  ;;  %v911_v44 = vld [vmem:[%s7380_s4 + $0x40] sm:$0xff] }
 0x23f   : > { %v1561_v46 = vpop.permute.xlu1 %1560  ;;  %v1527_v48 = vpop.permute.xlu0 %1526 }
 0x240   : > { %5061 = vmatprep.subr.msk.bf16.mxu0 %vm919_vm0, %v1561_v46  ;;  %v1608_v47 = vsel %vm919_vm0, %v1561_v46, 0  ;;  %v914_v46 = vld [vmem:[%s7380_s4 + $0x58] sm:$0xff] }
 0x241   : > { %4745 = vmatpush3.bf16.xpose.msra.mxu0 %v1608_v47 }
 0x243   : > { %v1531_v7 = vpop.permute.xlu0 %1530  ;;  %v1537_v50 = vpop.permute.xlu1 %1536 }
 0x247   : > { %v1535_v25 = vpop.permute.xlu0 %1534 }
 0x248   : > { %4747 = vmatmul.mubr.msk.bf16.vlgmr.msra.gmra.mrb[48].mxu0 %vm919_vm0, %v1525_v35 }
 0x249   : > { %4750 = vmatprep.mubr.msk.bf16.mxu0 %vm919_vm0, %v1527_v48 }
 0x250   : > { %4751 = vmatmul.mubr.msk.bf16.gmra.mrb[52].mxu0 %vm919_vm0, %v1529_v36 }
 0x251   : > { %4754 = vmatprep.mubr.msk.bf16.mxu0 %vm919_vm0, %v1531_v7 }
 0x258   : > { %4755 = vmatmul.mubr.msk.bf16.gmra.mrb[56].mxu0 %vm919_vm0, %v1533_v41 }
 0x259   : > { %4758 = vmatprep.mubr.msk.bf16.mxu0 %vm919_vm0, %v1535_v25  ;;  %v912_v25 = vld [vmem:[%s7380_s4 + $0x48] sm:$0xff] }
 0x260   : > { %4759 = vmatmul.mubr.msk.bf16.gmra.mrb[60].mxu0 %vm919_vm0, %v1537_v50 }
 0x2a9   : > { %v4664_v32 = vpop.f32.mrb[32].mxu0 }
 0x2aa   : > { %v1011_v52 = vadd.f32 %v4664_v32, %v905_v6  ;;  %v1002_v53 = vpop.f32.mrb[33].mxu0 }
 0x2ab   : > { %v4665_v55 = vpop.f32.mrb[34].mxu0  ;;  %v1003_v59 = vadd.f32 %v1002_v53, %v903_v38 }
 0x2ac   : > { %v1005_v11 = vpop.f32.mrb[35].mxu0  ;;  %v5971_v62 = vadd.f32 %v5962_v31, %v1011_v52  ;;  %v1014_v9 = vadd.f32 %v4665_v55, %v906_v63  ;;  %v913_v52 = vld [vmem:[%s7380_s4 + $0x50] sm:$0xff]  ;;  %v915_v63 = vld [vmem:[%s7380_s4 + $0x60] sm:$0xff] }
 0x2ad   : > { %v1006_v0 = vadd.f32 %v1005_v11, %v904_v42  ;;  %v5981_v15 = vadd.f32 %v5962_v31, %v1003_v59 }
 0x2ae   : > { %1091 = vmax.xlane.f32.xlu0 %v5971_v62  ;;  %v5995_v17 = vadd.f32 %v5962_v31, %v1014_v9 }
 0x2af   : > { %v5978_v3 = vadd.f32 %v5962_v31, %v1006_v0  ;;  %v918_v0 = vld [vmem:[%s7380_s4 + $0x78] sm:$0xff] }
 0x2b1   : > { %v4668_v12 = vpop.f32.mrb[36].mxu0  ;;  %1089 = vmax.xlane.f32.xlu1 %v5978_v3 }
 0x2b2   : > { %v1018_v19 = vpop.f32.mrb[37].mxu0  ;;  %1087 = vmax.xlane.f32.xlu0 %v5981_v15  ;;  %v1027_v37 = vadd.f32 %v4668_v12, %v909_v34 }
 0x2b3   : > { %v4669_v22 = vpop.f32.mrb[38].mxu0  ;;  %v1019_v27 = vadd.f32 %v1018_v19, %v907_v13 }
 0x2b4   : > { %v1030_v16 = vadd.f32 %v4669_v22, %v910_v18  ;;  %v1021_v33 = vpop.f32.mrb[39].mxu0  ;;  %v6023_v38 = vadd.f32 %v5962_v31, %v1027_v37  ;;  %v916_v18 = vld [vmem:[%s7380_s4 + $0x68] sm:$0xff] }
 0x2b5   : > { %v1022_v35 = vadd.f32 %v1021_v33, %v908_v26  ;;  %v6006_v20 = vadd.f32 %v5962_v31, %v1019_v27 }
 0x2b6   : > { %1093 = vmax.xlane.f32.xlu0 %v5995_v17  ;;  %v6002_v36 = vadd.f32 %v5962_v31, %v1030_v16  ;;  %v917_v16 = vld [vmem:[%s7380_s4 + $0x70] sm:$0xff] }
 0x2b7   : > { %v6016_v48 = vadd.f32 %v5962_v31, %v1022_v35 }
 0x2b8   : > { %1101 = vmax.xlane.f32.xlu1 %v6002_v36 }
 0x2b9   : > { %v4672_v41 = vpop.f32.mrb[40].mxu0 }
 0x2ba   : > { %v1034_v47 = vpop.f32.mrb[41].mxu0  ;;  %1095 = vmax.xlane.f32.xlu0 %v6006_v20  ;;  %v1043_v55 = vadd.f32 %v4672_v41, %v913_v52 }
 0x2bb   : > { %v4673_v7 = vpop.f32.mrb[42].mxu0  ;;  %v1035_v50 = vadd.f32 %v1034_v47, %v911_v44 }
 0x2bc   : > { %v1046_v6 = vadd.f32 %v4673_v7, %v914_v46  ;;  %v1037_v32 = vpop.f32.mrb[43].mxu0  ;;  %1097 = vmax.xlane.f32.xlu1 %v6016_v48  ;;  %v6051_v27 = vadd.f32 %v5962_v31, %v1043_v55 }
 0x2bd   : > { %v1038_v53 = vadd.f32 %v1037_v32, %v912_v25  ;;  %v6034_v59 = vadd.f32 %v5962_v31, %v1035_v50 }
 0x2be   : > { %1099 = vmax.xlane.f32.xlu0 %v6023_v38  ;;  %v6030_v42 = vadd.f32 %v5962_v31, %v1046_v6 }
 0x2bf   : > { %v6044_v12 = vadd.f32 %v5962_v31, %v1038_v53 }
 0x2c0   : > { %1109 = vmax.xlane.f32.xlu1 %v6030_v42 }
 0x2c1   : > { %v4676_v11 = vpop.f32.mrb[44].mxu0 }
 0x2c2   : > { %v1050_v9 = vpop.f32.mrb[45].mxu0  ;;  %1103 = vmax.xlane.f32.xlu0 %v6034_v59  ;;  %v1059_v35 = vadd.f32 %v4676_v11, %v917_v16 }
 0x2c3   : > { %v4677_v13 = vpop.f32.mrb[46].mxu0  ;;  %v1051_v19 = vadd.f32 %v1050_v9, %v915_v63 }
 0x2c4   : > { %v1062_v22 = vadd.f32 %v4677_v13, %v918_v0  ;;  %v1053_v26 = vpop.f32.mrb[47].mxu0  ;;  %1105 = vmax.xlane.f32.xlu1 %v6044_v12  ;;  %v6070_v44 = vadd.f32 %v5962_v31, %v1059_v35 }
 0x2c5   : > { %v1054_v33 = vadd.f32 %v1053_v26, %v916_v18  ;;  %v6062_v37 = vadd.f32 %v5962_v31, %v1051_v19 }
 0x2c6   : > { %1107 = vmax.xlane.f32.xlu0 %v6051_v27  ;;  %v6058_v34 = vadd.f32 %v5962_v31, %v1062_v22 }
 0x2c7   : > { %v6066_v41 = vadd.f32 %v5962_v31, %v1054_v33 }
 0x2c8   : > { %1117 = vmax.xlane.f32.xlu1 %v6058_v34 }
 0x2ca   : > { %1111 = vmax.xlane.f32.xlu0 %v6062_v37 }
 0x2cc   : > { %1113 = vmax.xlane.f32.xlu1 %v6066_v41 }
 0x2ce   : > { %1115 = vmax.xlane.f32.xlu0 %v6070_v44 }
 0x31b   : > { %v6073_v46 = vpop.f32.mrb[48].mxu0 }
 0x31c   : > { %v6075_v47 = vpop.f32.mrb[49].mxu0 }
 0x31d   : > { %v6077_v7 = vpop.f32.mrb[50].mxu0 }
 0x31e   : > { %v6079_v25 = vpop.f32.mrb[51].mxu0 }
 0x323   : > { %v6081_v50 = vpop.f32.mrb[52].mxu0 }
 0x324   : > { %v6083_v6 = vpop.f32.mrb[53].mxu0 }
 0x325   : > { %v6085_v32 = vpop.f32.mrb[54].mxu0 }
 0x326   : > { %v6087_v52 = vpop.f32.mrb[55].mxu0 }
 0x32b   : > { %v6089_v53 = vpop.f32.mrb[56].mxu0 }
 0x32c   : > { %v6091_v55 = vpop.f32.mrb[57].mxu0 }
 0x32d   : > { %v6093_v11 = vpop.f32.mrb[58].mxu0 }
 0x32e   : > { %7406 = vst [vmem:[#allocation8_spill] sm:$0xff] %v6093_v11  ;;  %v6095_v63 = vpop.f32.mrb[59].mxu0 }
 0x333   : > { %v6097_v0 = vpop.f32.mrb[60].mxu0 }
 0x334   : > { %v6099_v9 = vpop.f32.mrb[61].mxu0 }
 0x335   : > { %v6101_v13 = vpop.f32.mrb[62].mxu0 }
 0x336   : > { %7407 = vst [vmem:[#allocation9_spill] sm:$0xff] %v6101_v13  ;;  %v6103_v18 = vpop.f32.mrb[63].mxu0 }
 0x337   : > { %7408 = vst [vmem:[#allocation10_spill] sm:$0xff] %v6103_v18 }
 0x33b   : > { %v1092_v19 = vpop.xlane.xlu0 %1091 }
 0x33c   : > { %v1121_v22 = vsub.f32 %v5971_v62, %v1092_v19 }
 0x33e   : > { %v1090_v16 = vpop.xlane.xlu1 %1089  ;;  %v1139_v56 = vmul.f32 1.442695, %v1121_v22 }
 0x33f   : > { %v1088_v26 = vpop.xlane.xlu0 %1087  ;;  %v1120_v21 = vsub.f32 %v5978_v3, %v1090_v16 }
 0x340   : > { %v1119_v33 = vsub.f32 %v5981_v15, %v1088_v26 }
 0x341   : > { %v1137_v13 = vmul.f32 1.442695, %v1120_v21 }
 0x342   : > { %v1135_v35 = vmul.f32 1.442695, %v1119_v33 }
 0x343   : > { %v1094_v29 = vpop.xlane.xlu0 %1093 }
 0x344   : > { %5202 = vpow2.f32 %v1135_v35  ;;  %v1122_v30 = vsub.f32 %v5995_v17, %v1094_v29 }
 0x345   : > { %v1102_v58 = vpop.xlane.xlu1 %1101  ;;  %5204 = vpow2.f32 %v1139_v56 }
 0x346   : > { %v1141_v11 = vmul.f32 1.442695, %v1122_v30  ;;  %v1126_v18 = vsub.f32 %v6002_v36, %v1102_v58 }
 0x347   : > { %v1096_v45 = vpop.xlane.xlu0 %1095 }
 0x348   : > { %5206 = vpow2.f32 %v1141_v11  ;;  %v1123_v62 = vsub.f32 %v6006_v20, %v1096_v45  ;;  %v1149_v22 = vmul.f32 1.442695, %v1126_v18 }
 0x349   : > { %v1098_v19 = vpop.xlane.xlu1 %1097  ;;  %5208 = vpow2.f32 %v1137_v13 }
 0x34a   : > { %v1143_v15 = vmul.f32 1.442695, %v1123_v62  ;;  %v1124_v3 = vsub.f32 %v6016_v48, %v1098_v19 }
 0x34b   : > { %v1100_v26 = vpop.xlane.xlu0 %1099 }
 0x34c   : > { %5210 = vpow2.f32 %v1143_v15  ;;  %v1125_v29 = vsub.f32 %v6023_v38, %v1100_v26  ;;  %v1145_v58 = vmul.f32 1.442695, %v1124_v3 }
 0x34d   : > { %v1110_v17 = vpop.xlane.xlu1 %1109  ;;  %5212 = vpow2.f32 %v1149_v22 }
 0x34e   : > { %v6113_v30 = vpop.eup %5202  ;;  %v1147_v56 = vmul.f32 1.442695, %v1125_v29  ;;  %v1130_v21 = vsub.f32 %v6030_v42, %v1110_v17 }
 0x34f   : > { %1167 = vadd.xlane.f32.xlu0 %v6113_v30  ;;  %v1104_v45 = vpop.xlane.xlu0 %1103  ;;  %v6118_v20 = vpop.eup %5204 }
 0x350   : > { %5214 = vpow2.f32 %v1147_v56  ;;  %v1127_v36 = vsub.f32 %v6034_v59, %v1104_v45  ;;  %v1157_v13 = vmul.f32 1.442695, %v1130_v21 }
 0x351   : > { %v1106_v48 = vpop.xlane.xlu1 %1105  ;;  %5216 = vpow2.f32 %v1145_v58 }
 0x352   : > { %v6120_v11 = vpop.eup %5206  ;;  %v1151_v38 = vmul.f32 1.442695, %v1127_v36  ;;  %v1128_v18 = vsub.f32 %v6044_v12, %v1106_v48 }
 0x353   : > { %1171 = vadd.xlane.f32.xlu0 %v6118_v20  ;;  %1173 = vadd.xlane.f32.xlu1 %v6120_v11  ;;  %v1108_v42 = vpop.xlane.xlu0 %1107  ;;  %v6126_v33 = vpop.eup %5208 }
 0x354   : > { %5218 = vpow2.f32 %v1151_v38  ;;  %v1129_v16 = vsub.f32 %v6051_v27, %v1108_v42  ;;  %v1153_v62 = vmul.f32 1.442695, %v1128_v18 }
 0x355   : > { %5220 = vpow2.f32 %v1157_v13  ;;  %v1118_v36 = vpop.xlane.xlu1 %1117 }
 0x356   : > { %v6128_v59 = vpop.eup %5210  ;;  %v1155_v35 = vmul.f32 1.442695, %v1129_v16  ;;  %v1134_v48 = vsub.f32 %v6058_v34, %v1118_v36  ;;  %v4229_v34 = vld [vmem:[%s7380_s4 + $0x90] sm:$0xff] }
 0x357   : > { %1169 = vadd.xlane.f32.xlu1 %v6126_v33  ;;  %1175 = vadd.xlane.f32.xlu0 %v6128_v59  ;;  %v1112_v12 = vpop.xlane.xlu0 %1111  ;;  %v6133_v15 = vpop.eup %5212  ;;  %v4233_v36 = vld [vmem:[%s7380_s4 + $0xb0] sm:$0xff] }
 0x358   : > { %5222 = vpow2.f32 %v1155_v35  ;;  %v1131_v19 = vsub.f32 %v6062_v37, %v1112_v12  ;;  %v1165_v13 = vmul.f32 1.442695, %v1134_v48  ;;  %v4227_v35 = vld [vmem:[%s7380_s4 + $0x80] sm:$0xff] }
 0x359   : > { %5224 = vpow2.f32 %v1153_v62  ;;  %v1114_v38 = vpop.xlane.xlu1 %1113  ;;  %v1645_v62 = vadd.f32 %v4227_v35, %v6075_v47 }
 0x35a   : > { %v6135_v22 = vpop.eup %5214  ;;  %v1159_v27 = vmul.f32 1.442695, %v1131_v19  ;;  %v1132_v18 = vsub.f32 %v6066_v41, %v1114_v38  ;;  %v1653_v41 = vadd.f32 %v6073_v46, %v4229_v34  ;;  %v4235_v38 = vld [vmem:[%s7380_s4 + $0xc0] sm:$0xff] }
 0x35b   : > { %1181 = vadd.xlane.f32.xlu1 %v6133_v15  ;;  %1179 = vadd.xlane.f32.xlu0 %v6135_v22  ;;  %v1116_v3 = vpop.xlane.xlu0 %1115  ;;  %v6140_v29 = vpop.eup %5216  ;;  %v6204_v19 = vadd.f32 %v5962_v31, %v1645_v62 }
 0x35c   : > { %5226 = vpow2.f32 %v1159_v27  ;;  %v1133_v26 = vsub.f32 %v6070_v44, %v1116_v3  ;;  %v1161_v42 = vmul.f32 1.442695, %v1132_v18  ;;  %v4230_v27 = vld [vmem:[%s7380_s4 + $0x98] sm:$0xff]  ;;  %v6212_v3 = vadd.f32 %v5962_v31, %v1653_v41 }
 0x35d   : > { %v1656_v47 = vadd.f32 %v6077_v7, %v4230_v27  ;;  %v1669_v7 = vadd.f32 %v6081_v50, %v4233_v36  ;;  %v4237_v50 = vld [vmem:[%s7380_s4 + $0xd0] sm:$0xff] }
 0x35e   : > { %v6142_v17 = vpop.eup %5218  ;;  %v1163_v56 = vmul.f32 1.442695, %v1133_v26  ;;  %v4231_v26 = vld [vmem:[%s7380_s4 + $0xa0] sm:$0xff]  ;;  %v1685_v18 = vadd.f32 %v6089_v53, %v4237_v50  ;;  %v4241_v53 = vld [vmem:[%s7380_s4 + $0xf0] sm:$0xff] }
 0x35f   : > { %1177 = vadd.xlane.f32.xlu1 %v6140_v29  ;;  %1183 = vadd.xlane.f32.xlu0 %v6142_v17  ;;  %v6146_v37 = vpop.eup %5220  ;;  %v1661_v46 = vadd.f32 %v4231_v26, %v6083_v6  ;;  %v1677_v6 = vadd.f32 %v4235_v38, %v6091_v55  ;;  %v4239_v55 = vld [vmem:[%s7380_s4 + $0xe0] sm:$0xff]  ;;  %v1701_v34 = vadd.f32 %v6097_v0, %v4241_v53 }
 0x360   : > { %5228 = vpow2.f32 %v1163_v56  ;;  %v6220_v56 = vadd.f32 %v5962_v31, %v1656_v47  ;;  %v1693_v35 = vadd.f32 %v4239_v55, %v6099_v9  ;;  %v6258_v62 = vadd.f32 %v5962_v31, %v1685_v18  ;;  %v5122_v0 = vld [vmem:[%s7379_s3] sm:$0xff]  }
 0x361   : > { %5230 = vpow2.f32 %v1165_v13  ;;  %v6228_v48 = vadd.f32 %v5962_v31, %v1661_v46  ;;  %v6238_v13 = vadd.f32 %v5962_v31, %v1669_v7  ;;  %v6270_v27 = vadd.f32 %v5962_v31, %v1701_v34  ;;  %4710 = vmatprep.subr.bf16.mxu1 %v5122_v0  ;;  %v4228_v7 = vld [vmem:[%s7380_s4 + $0x88] sm:$0xff] }
 0x362   : > { %v6148_v58 = vpop.eup %5222  ;;  %5232 = vpow2.f32 %v1161_v42  ;;  %v6248_v42 = vadd.f32 %v5962_v31, %v1677_v6  ;;  %v6266_v41 = vadd.f32 %v5962_v31, %v1693_v35  ;;  %v1648_v18 = vadd.f32 %v4228_v7, %v6079_v25  ;;  %v4232_v35 = vld [vmem:[%s7380_s4 + $0xa8] sm:$0xff]  ;;  %v4234_v7 = vld [vmem:[%s7380_s4 + $0xb8] sm:$0xff] }
 0x363   : > { %1189 = vadd.xlane.f32.xlu1 %v6146_v37  ;;  %1187 = vadd.xlane.f32.xlu0 %v6148_v58  ;;  %v6152_v21 = vpop.eup %5224 }
 0x366   : > { %v6154_v44 = vpop.eup %5226 }
 0x367   : > { %1185 = vadd.xlane.f32.xlu1 %v6152_v21  ;;  %1191 = vadd.xlane.f32.xlu0 %v6154_v44 }
 0x36a   : > { %v6158_v45 = vpop.eup %5228 }
 0x36b   : > { %1195 = vadd.xlane.f32.xlu0 %v6158_v45  ;;  %v6189_v16 = vpop.eup %5230 }
 0x36c   : > { %v6196_v12 = vpop.eup %5232 }
 0x378   : > { %2200 = vrot.lane.b32.xlu1 %v5805_v4, %s5517_s18 }
 0x37c   : > { %2202 = vrot.lane.b32.xlu1 %v5823_v28, %s5517_s18 }
 0x380   : > { %2204 = vrot.lane.b32.xlu1 %v5841_v43, %s5517_s18 }
 0x381   : > { %2198 = vrot.lane.b32.xlu0 %v5786_v8, %s5517_s18 }
 0x384   : > { %2208 = vrot.lane.b32.xlu1 %v5870_v39, %s5517_s18 }
 0x385   : > { %2206 = vrot.lane.b32.xlu0 %v5859_v49, %s5517_s18 }
 0x388   : > { %2212 = vrot.lane.b32.xlu1 %v5898_v14, %s5517_s18 }
 0x389   : > { %2210 = vrot.lane.b32.xlu0 %v5882_v61, %s5517_s18 }
 0x38c   : > { %2184 = vrot.lane.b32.xlu1 %v5803_v2, %s5517_s18 }
 0x38d   : > { %2182 = vrot.lane.b32.xlu0 %v5784_v54, %s5517_s18 }
 0x391   : > { %2186 = vrot.lane.b32.xlu0 %v5821_v23, %s5517_s18 }
 0x395   : > { %2190 = vrot.lane.b32.xlu0 %v5857_v24, %s5517_s18 }
 0x399   : > { %2194 = vrot.lane.b32.xlu0 %v5880_v57, %s5517_s18 }
 0x3b0   : > { %1197 = vadd.xlane.f32.xlu1 %v6189_v16 }
 0x3b4   : > { %1193 = vadd.xlane.f32.xlu1 %v6196_v12 }
 0x3b8   : > { %1723 = vmax.xlane.f32.xlu0 %v6204_v19 }
 0x3bc   : > { %1727 = vmax.xlane.f32.xlu0 %v6212_v3 }
 0x3c0   : > { %1729 = vmax.xlane.f32.xlu0 %v6220_v56 }
 0x3c4   : > { %1731 = vmax.xlane.f32.xlu0 %v6228_v48 }
 0x3c5   : > { %2188 = vrot.lane.b32.xlu1 %v5839_v40, %s5517_s18 }
 0x3c8   : > { %1735 = vmax.xlane.f32.xlu0 %v6238_v13 }
 0x3c9   : > { %2192 = vrot.lane.b32.xlu1 %v5868_v51, %s5517_s18 }
 0x3cc   : > { %1739 = vmax.xlane.f32.xlu0 %v6248_v42 }
 0x3cd   : > { %2196 = vrot.lane.b32.xlu1 %v5896_v1, %s5517_s18 }
 0x3d0   : > { %1743 = vmax.xlane.f32.xlu0 %v6258_v62 }
 0x3d4   : > { %1747 = vmax.xlane.f32.xlu0 %v6266_v41 }
 0x3d8   : > { %1751 = vmax.xlane.f32.xlu0 %v6270_v27 }
 0x3dc   : > { %v1168_v9 = vpop.xlane.xlu0 %1167 }
 0x3e0   : > { %v1174_v47 = vpop.xlane.xlu1 %1173  ;;  %v1172_v26 = vpop.xlane.xlu0 %1171 }
 0x3e1   : > { %5234 = vrcp.f32 %v1174_v47 }
 0x3e2   : > { %5236 = vrcp.f32 %v1172_v26  ;;  %v1664_v26 = vadd.f32 %v4232_v35, %v6087_v52 }
 0x3e3   : > { %5238 = vrcp.f32 %v1168_v9 }
 0x3e4   : > { %v1170_v46 = vpop.xlane.xlu1 %1169  ;;  %v1176_v36 = vpop.xlane.xlu0 %1175 }
 0x3e5   : > { %5240 = vrcp.f32 %v1170_v46 }
 0x3e8   : > { %v1182_v38 = vpop.xlane.xlu1 %1181  ;;  %v1180_v6 = vpop.xlane.xlu0 %1179 }
 0x3e9   : > { %5242 = vrcp.f32 %v1182_v38 }
 0x3ea   : > { %5244 = vrcp.f32 %v1180_v6 }
 0x3eb   : > { %v5235_v50 = vpop.eup %5234  ;;  %5246 = vrcp.f32 %v1176_v36  ;;  %v6289_v36 = vadd.f32 %v5962_v31, %v1648_v18 }
 0x3ec   : > { %v5237_v55 = vpop.eup %5236  ;;  %v1178_v53 = vpop.xlane.xlu1 %1177  ;;  %v1218_v46 = vmul.f32 %v5235_v50, %v6120_v11  ;;  %v1672_v11 = vadd.f32 %v6085_v32, %v4234_v7  ;;  %v6301_v50 = vadd.f32 %v5962_v31, %v1664_v26 }
 0x3ed   : > { %v1184_v34 = vpop.xlane.xlu0 %1183  ;;  %v5239_v9 = vpop.eup %5238  ;;  %5248 = vrcp.f32 %v1178_v53  ;;  %v1217_v25 = vmul.f32 %v5237_v55, %v6118_v20  ;;  %v4236_v55 = vld [vmem:[%s7380_s4 + $0xc8] sm:$0xff] }
 0x3ee   : > { %1883 = vrot.lane.b32.xlu0 %v5790_v60, %s5516_s12  ;;  %v1215_v53 = vmul.f32 %v5239_v9, %v6113_v30  ;;  %v5123_v30 = vld [vmem:[%s7379_s3 + $0x8] sm:$0xff]  }
 0x3ef   : > { %v5241_v47 = vpop.eup %5240  ;;  %v1232_v18 = vpack.c.bf16 %v1218_v46, %v1217_v25  ;;  %v4238_v25 = vld [vmem:[%s7380_s4 + $0xd8] sm:$0xff] }
 0x3f0   : > { %v1190_v38 = vpop.xlane.xlu1 %1189  ;;  %v1216_v60 = vmul.f32 %v5241_v47, %v6126_v33  ;;  %v6316_v47 = vadd.f32 %v5962_v31, %v1672_v11 }
 0x3f1   : > { %v1188_v6 = vpop.xlane.xlu0 %1187  ;;  %5250 = vrcp.f32 %v1190_v38  ;;  %1725 = vmax.xlane.f32.xlu1 %v6289_v36 }
 0x3f2   : > { %5252 = vrcp.f32 %v1188_v6  ;;  %1887 = vrot.lane.b32.xlu0 %v5810_v10, %s5516_s12  ;;  %v1231_v52 = vpack.c.bf16 %v1216_v60, %v1215_v53 }
 0x3f3   : > { %v5243_v20 = vpop.eup %5242  ;;  %5254 = vrcp.f32 %v1184_v34  ;;  %v1680_v34 = vadd.f32 %v4236_v55, %v6095_v63  ;;  %v7409_v63 = vld [vmem:[#allocation7_spill] sm:$0xff]  ;;  %v7411_v55 = vld [vmem:[#allocation10_spill] sm:$0xff] }
 0x3f4   : > { %v5245_v33 = vpop.eup %5244  ;;  %v1186_v35 = vpop.xlane.xlu1 %1185  ;;  %4694 = vmatprep.mubr.bf16.mxu1 %v1231_v52  ;;  %v1222_v46 = vmul.f32 %v5243_v20, %v6133_v15  ;;  %v7410_v15 = vld [vmem:[#allocation8_spill] sm:$0xff] }
 0x3f5   : > { %v6309_v60 = vpop.xlane.xlu0 %1191  ;;  %v5247_v9 = vpop.eup %5246  ;;  %5256 = vrcp.f32 %v1186_v35  ;;  %1733 = vmax.xlane.f32.xlu1 %v6301_v50  ;;  %4695 = vmatmul.mubr.bf16.vlgmr.msra.gmra.mrb[16].mxu1 %v1232_v18  ;;  %v1221_v26 = vmul.f32 %v5245_v33, %v6135_v22  ;;  %v1688_v53 = vadd.f32 %v7410_v15, %v4238_v25  ;;  %v6332_v52 = vadd.f32 %v5962_v31, %v1680_v34 }
 0x3f6   : > { %1889 = vrot.lane.b32.xlu0 %v5808_v5, %s5516_s12  ;;  %4711 = vmatpush3.bf16.msra.mxu1 %v5122_v0  ;;  %v1219_v38 = vmul.f32 %v5247_v9, %v6128_v59  ;;  %v4240_v59 = vld [vmem:[%s7380_s4 + $0xe8] sm:$0xff] }
 0x3f7   : > { %v5249_v32 = vpop.eup %5248  ;;  %4712 = vmatprep.subr.bf16.mxu1 %v5123_v30  ;;  %v1234_v20 = vpack.c.bf16 %v1222_v46, %v1221_v26  ;;  %v1696_v35 = vadd.f32 %v4240_v59, %v7411_v55  ;;  %v4242_v46 = vld [vmem:[%s7380_s4 + $0xf8] sm:$0xff] }
 0x3f8   : > { %v1220_v0 = vmul.f32 %v5249_v32, %v6140_v29  ;;  %v2201_v9 = vpop.permute.xlu1 %2200  ;;  %v6344_v32 = vadd.f32 %v5962_v31, %v1688_v53  ;;  %v7414_v59 = vld [vmem:[#allocation5_spill] sm:$0xff] }
 0x3f9   : > { %v6323_v7 = vpop.xlane.xlu0 %1195  ;;  %1737 = vmax.xlane.f32.xlu1 %v6316_v47 }
 0x3fa   : > { %1895 = vrot.lane.b32.xlu0 %v7409_v63, %s5516_s12  ;;  %v1233_v6 = vpack.c.bf16 %v1220_v0, %v1219_v38  ;;  %4713 = vmatpush3.bf16.msra.mxu1 %v5123_v30 }
 0x3fb   : > { %v5251_v22 = vpop.eup %5250 }
 0x3fc   : > { %v5253_v11 = vpop.eup %5252  ;;  %4698 = vmatprep.mubr.bf16.mxu1 %v1233_v6  ;;  %v1226_v26 = vmul.f32 %v5251_v22, %v6146_v37  ;;  %v6359_v37 = vadd.f32 %v5962_v31, %v1696_v35 }
 0x3fd   : > { %v2199_v29 = vpop.permute.xlu0 %2198  ;;  %v5255_v18 = vpop.eup %5254  ;;  %1741 = vmax.xlane.f32.xlu1 %v6332_v52  ;;  %4699 = vmatmul.mubr.bf16.gmra.mrb[20].mxu1 %v1234_v20  ;;  %v1225_v34 = vmul.f32 %v5253_v11, %v6148_v58  ;;  %v7412_v58 = vld [vmem:[#allocation9_spill] sm:$0xff]  ;;  %v7413_v11 = vld [vmem:[#allocation2_spill] sm:$0xff] }
 0x3fe   : > { %v2239_v30 = vsel %vm919_vm0, %v2199_v29, 0  ;;  %5062 = vmatprep.subr.msk.bf16.mxu0 %vm919_vm0, %v2199_v29  ;;  %2842 = vrot.lane.b32.xlu0 %v5786_v8, %s5518_s27  ;;  %v1223_v8 = vmul.f32 %v5255_v18, %v6142_v17  ;;  %v1704_v6 = vadd.f32 %v7412_v58, %v4242_v46  ;;  %v2242_v17 = vsel %vm919_vm0, %v2201_v9, 0  ;;  %v7415_v29 = vld [vmem:[#allocation4_spill] sm:$0xff]  ;;  %v7416_v18 = vld [vmem:[#allocation6_spill] sm:$0xff] }
 0x3ff   : > { %v5257_v33 = vpop.eup %5256  ;;  %4815 = vmatpush3.bf16.xpose.msra.mxu0 %v2239_v30  ;;  %v1236_v22 = vpack.c.bf16 %v1226_v26, %v1225_v34 }
 0x400   : > { %5063 = vmatprep.subr.msk.bf16.mxu0 %vm919_vm0, %v2201_v9  ;;  %v1224_v38 = vmul.f32 %v5257_v33, %v6152_v21  ;;  %v2203_v21 = vpop.permute.xlu1 %2202 }
 0x401   : > { %v2207_v25 = vpop.permute.xlu0 %2206  ;;  %1745 = vmax.xlane.f32.xlu1 %v6344_v32 }
 0x402   : > { %2850 = vrot.lane.b32.xlu0 %v5859_v49, %s5518_s27  ;;  %v1235_v0 = vpack.c.bf16 %v1224_v38, %v1223_v8  ;;  %v6366_v49 = vadd.f32 %v5962_v31, %v1704_v6 }
 0x404   : > { %4702 = vmatprep.mubr.bf16.mxu1 %v1235_v0  ;;  %v2205_v20 = vpop.permute.xlu1 %2204 }
 0x405   : > { %v2211_v15 = vpop.permute.xlu0 %2210  ;;  %1749 = vmax.xlane.f32.xlu1 %v6359_v37  ;;  %4703 = vmatmul.mubr.bf16.gmra.mrb[24].mxu1 %v1236_v22  ;;  %v2248_v31 = vsel %vm919_vm0, %v2205_v20, 0 }
 0x406   : > { %2854 = vrot.lane.b32.xlu0 %v5882_v61, %s5518_s27  ;;  %v2245_v61 = vsel %vm919_vm0, %v2203_v21, 0  ;;  %v2257_v33 = vsel %vm919_vm0, %v2211_v15, 0 }
 0x407   : > { %4817 = vmatpush3.bf16.xpose.msra.mxu0 %v2242_v17 }
 0x408   : > { %5064 = vmatprep.subr.msk.bf16.mxu0 %vm919_vm0, %v2203_v21 }
 0x409   : > { %v2183_v53 = vpop.permute.xlu0 %2182  ;;  %1753 = vmax.xlane.f32.xlu1 %v6366_v49 }
 0x40a   : > { %4830 = vmatprep.mubr.msk.bf16.mxu0 %vm919_vm0, %v2183_v53  ;;  %2826 = vrot.lane.b32.xlu0 %v5784_v54, %s5518_s27  ;;  %v2251_v54 = vsel %vm919_vm0, %v2207_v25, 0 }
 0x40d   : > { %v2187_v35 = vpop.permute.xlu0 %2186 }
 0x40e   : > { %2830 = vrot.lane.b32.xlu0 %v5821_v23, %s5518_s27  ;;  %v2209_v23 = vpop.permute.xlu1 %2208 }
 0x40f   : > { %4819 = vmatpush3.bf16.xpose.msra.mxu0 %v2245_v61  ;;  %v2254_v30 = vsel %vm919_vm0, %v2209_v23, 0 }
 0x410   : > { %5065 = vmatprep.subr.msk.bf16.mxu0 %vm919_vm0, %v2205_v20 }
 0x412   : > { %v2213_v55 = vpop.permute.xlu1 %2212 }
 0x413   : > { %v2260_v9 = vsel %vm919_vm0, %v2213_v55, 0 }
 0x417   : > { %4821 = vmatpush3.bf16.xpose.msra.mxu0 %v2248_v31 }
 0x418   : > { %5066 = vmatprep.subr.msk.bf16.mxu0 %vm919_vm0, %v2207_v25 }
 0x41a   : > { %1885 = vrot.lane.b32.xlu1 %v7413_v11, %s5516_s12 }
 0x41e   : > { %1891 = vrot.lane.b32.xlu1 %v7414_v59, %s5516_s12 }
 0x41f   : > { %4823 = vmatpush3.bf16.xpose.msra.mxu0 %v2251_v54 }
 0x420   : > { %5067 = vmatprep.subr.msk.bf16.mxu0 %vm919_vm0, %v2209_v23 }
 0x422   : > { %1893 = vrot.lane.b32.xlu1 %v7415_v29, %s5516_s12 }
 0x426   : > { %1897 = vrot.lane.b32.xlu1 %v7416_v18, %s5516_s12 }
 0x427   : > { %4825 = vmatpush3.bf16.xpose.msra.mxu0 %v2254_v30 }
 0x428   : > { %5068 = vmatprep.subr.msk.bf16.mxu0 %vm919_vm0, %v2211_v15 }
 0x42a   : > { %2844 = vrot.lane.b32.xlu1 %v5805_v4, %s5518_s27  ;;  %v2185_v4 = vpop.permute.xlu1 %2184 }
 0x42e   : > { %2846 = vrot.lane.b32.xlu1 %v5823_v28, %s5518_s27  ;;  %v2191_v28 = vpop.permute.xlu0 %2190 }
 0x42f   : > { %4827 = vmatpush3.bf16.xpose.msra.mxu0 %v2257_v33 }
 0x430   : > { %5069 = vmatprep.subr.msk.bf16.mxu0 %vm919_vm0, %v2213_v55 }
 0x432   : > { %2848 = vrot.lane.b32.xlu1 %v5841_v43, %s5518_s27  ;;  %v2195_v43 = vpop.permute.xlu0 %2194 }
 0x436   : > { %2852 = vrot.lane.b32.xlu1 %v5870_v39, %s5518_s27 }
 0x437   : > { %4829 = vmatpush3.bf16.xpose.msra.mxu0 %v2260_v9 }
 0x43a   : > { %2856 = vrot.lane.b32.xlu1 %v5898_v14, %s5518_s27 }
 0x43d   : > { %v1198_v34 = vpop.xlane.xlu1 %1197 }
 0x43e   : > { %4831 = vmatmul.mubr.msk.bf16.vlgmr.msra.gmra.mrb[64].mxu0 %vm919_vm0, %v2185_v4  ;;  %2828 = vrot.lane.b32.xlu1 %v5803_v2, %s5518_s27  ;;  %5258 = vrcp.f32 %v1198_v34 }
 0x43f   : > { %4834 = vmatprep.mubr.msk.bf16.mxu0 %vm919_vm0, %v2187_v35  ;;  %5260 = vrcp.f32 %v6309_v60 }
 0x440   : > { %5262 = vrcp.f32 %v6323_v7 }
 0x441   : > { %v1194_v39 = vpop.xlane.xlu1 %1193 }
 0x442   : > { %5264 = vrcp.f32 %v1194_v39 }
 0x445   : > { %v2189_v26 = vpop.permute.xlu1 %2188  ;;  %v1724_v46 = vpop.xlane.xlu0 %1723 }
 0x446   : > { %4835 = vmatmul.mubr.msk.bf16.gmra.mrb[68].mxu0 %vm919_vm0, %v2189_v26 }
 0x447   : > { %4838 = vmatprep.mubr.msk.bf16.mxu0 %vm919_vm0, %v2191_v28 }
 0x448   : > { %v5259_v14 = vpop.eup %5258 }
 0x449   : > { %v1728_v25 = vpop.xlane.xlu0 %1727  ;;  %v5261_v8 = vpop.eup %5260  ;;  %v1230_v0 = vmul.f32 %v5259_v14, %v6189_v16  ;;  %v1755_v16 = vsub.f32 %v6204_v19, %v1724_v46 }
 0x44a   : > { %v5263_v2 = vpop.eup %5262  ;;  %v2193_v58 = vpop.permute.xlu1 %2192  ;;  %v1227_v7 = vmul.f32 %v5261_v8, %v6154_v44  ;;  %v1757_v15 = vsub.f32 %v6212_v3, %v1728_v25 }
 0x44b   : > { %v1229_v22 = vmul.f32 %v5263_v2, %v6158_v45  ;;  %v1771_v45 = vmul.f32 1.442695, %v1755_v16 }
 0x44c   : > { %v5265_v38 = vpop.eup %5264  ;;  %v1775_v61 = vmul.f32 1.442695, %v1757_v15 }
 0x44d   : > { %v1730_v60 = vpop.xlane.xlu0 %1729  ;;  %v1228_v6 = vmul.f32 %v5265_v38, %v6196_v12  ;;  %v1238_v21 = vpack.c.bf16 %v1230_v0, %v1229_v22 }
 0x44e   : > { %4839 = vmatmul.mubr.msk.bf16.gmra.mrb[72].mxu0 %vm919_vm0, %v2193_v58  ;;  %v2197_v20 = vpop.permute.xlu1 %2196  ;;  %5266 = vpow2.f32 %v1775_v61  ;;  %v1758_v3 = vsub.f32 %v6220_v56, %v1730_v60 }
 0x44f   : > { %4842 = vmatprep.mubr.msk.bf16.mxu0 %vm919_vm0, %v2195_v43  ;;  %v1237_v17 = vpack.c.bf16 %v1228_v6, %v1227_v7 }
 0x450   : > { %v1777_v33 = vmul.f32 1.442695, %v1758_v3 }
 0x451   : > { %4706 = vmatprep.mubr.bf16.mxu1 %v1237_v17  ;;  %v1732_v53 = vpop.xlane.xlu0 %1731 }
 0x452   : > { %4707 = vmatmul.mubr.bf16.gmra.mrb[28].mxu1 %v1238_v21  ;;  %v1759_v12 = vsub.f32 %v6228_v48, %v1732_v53 }
 0x454   : > { %v1779_v30 = vmul.f32 1.442695, %v1759_v12 }
 0x455   : > { %v1736_v44 = vpop.xlane.xlu0 %1735 }
 0x456   : > { %v1761_v31 = vsub.f32 %v6238_v13, %v1736_v44  ;;  %4843 = vmatmul.mubr.msk.bf16.gmra.mrb[76].mxu0 %vm919_vm0, %v2197_v20 }
 0x458   : > { %v1783_v54 = vmul.f32 1.442695, %v1761_v31  ;;  %v6424_v55 = vpop.eup %5266 }
 0x459   : > { %v1740_v23 = vpop.xlane.xlu0 %1739 }
 0x45a   : > { %5268 = vpow2.f32 %v1783_v54  ;;  %v1763_v0 = vsub.f32 %v6248_v42, %v1740_v23 }
 0x45b   : > { %5270 = vpow2.f32 %v1771_v45 }
 0x45c   : > { %5272 = vpow2.f32 %v1779_v30  ;;  %v1787_v22 = vmul.f32 1.442695, %v1763_v0 }
 0x45d   : > { %v1744_v19 = vpop.xlane.xlu0 %1743  ;;  %5274 = vpow2.f32 %v1777_v33 }
 0x45e   : > { %v1765_v15 = vsub.f32 %v6258_v62, %v1744_v19 }
 0x460   : > { %v1791_v42 = vmul.f32 1.442695, %v1765_v15 }
 0x461   : > { %v1748_v48 = vpop.xlane.xlu0 %1747 }
 0x462   : > { %1807 = vadd.xlane.f32.xlu1 %v6424_v55  ;;  %v1767_v16 = vsub.f32 %v6266_v41, %v1748_v48 }
 0x464   : > { %v6427_v13 = vpop.eup %5268  ;;  %v1795_v62 = vmul.f32 1.442695, %v1767_v16 }
 0x465   : > { %v6429_v35 = vpop.eup %5270  ;;  %1815 = vadd.xlane.f32.xlu0 %v6427_v13  ;;  %v1752_v56 = vpop.xlane.xlu0 %1751 }
 0x466   : > { %1803 = vadd.xlane.f32.xlu1 %v6429_v35  ;;  %v6433_v9 = vpop.eup %5272  ;;  %v1769_v21 = vsub.f32 %v6270_v27, %v1752_v56 }
 0x467   : > { %v6435_v4 = vpop.eup %5274 }
 0x469   : > { %1811 = vadd.xlane.f32.xlu0 %v6433_v9  ;;  %v6438_v28 = vpop.permute.xlu0 %1883 }
 0x46a   : > { %1809 = vadd.xlane.f32.xlu1 %v6435_v4  ;;  %4762 = vmatprep.subr.bf16.mxu1 %v6438_v28 }
 0x46d   : > { %v6442_v34 = vpop.permute.xlu0 %1887 }
 0x471   : > { %v6444_v43 = vpop.permute.xlu0 %1889 }
 0x475   : > { %v6446_v39 = vpop.permute.xlu0 %1895 }
 0x479   : > { %v2843_v26 = vpop.permute.xlu0 %2842 }
 0x47a   : > { %5070 = vmatprep.subr.msk.bf16.mxu0 %vm919_vm0, %v2843_v26  ;;  %v2883_v46 = vsel %vm919_vm0, %v2843_v26, 0 }
 0x47b   : > { %4899 = vmatpush3.bf16.xpose.msra.mxu0 %v2883_v46 }
 0x47d   : > { %v6450_v14 = vpop.permute.xlu0 %2850 }
 0x47e   : > { %v1726_v25 = vpop.xlane.xlu1 %1725 }
 0x47f   : > { %v1756_v8 = vsub.f32 %v6289_v36, %v1726_v25 }
 0x481   : > { %v1773_v2 = vmul.f32 1.442695, %v1756_v8  ;;  %v6453_v38 = vpop.permute.xlu0 %2854 }
 0x482   : > { %v1734_v58 = vpop.xlane.xlu1 %1733 }
 0x483   : > { %5276 = vpow2.f32 %v1773_v2  ;;  %v1760_v60 = vsub.f32 %v6301_v50, %v1734_v58  ;;  %v1799_v50 = vmul.f32 1.442695, %v1769_v21 }
 0x485   : > { %v1781_v7 = vmul.f32 1.442695, %v1760_v60  ;;  %v2827_v6 = vpop.permute.xlu0 %2826 }
 0x486   : > { %v1738_v17 = vpop.xlane.xlu1 %1737  ;;  %4914 = vmatprep.mubr.msk.bf16.mxu0 %vm919_vm0, %v2827_v6 }
 0x487   : > { %5278 = vpow2.f32 %v1781_v7  ;;  %v1762_v36 = vsub.f32 %v6316_v47, %v1738_v17  ;;  %v2895_v7 = vsel %vm919_vm0, %v6450_v14, 0 }
 0x488   : > { %5280 = vpow2.f32 %v1787_v22 }
 0x489   : > { %v1785_v53 = vmul.f32 1.442695, %v1762_v36 }
 0x48a   : > { %v1742_v61 = vpop.xlane.xlu1 %1741 }
 0x48b   : > { %5282 = vpow2.f32 %v1785_v53  ;;  %v1764_v27 = vsub.f32 %v6332_v52, %v1742_v61 }
 0x48c   : > { %5284 = vpow2.f32 %v1791_v42 }
 0x48d   : > { %v6462_v20 = vpop.eup %5276  ;;  %5286 = vpow2.f32 %v1799_v50  ;;  %v1789_v45 = vmul.f32 1.442695, %v1764_v27 }
 0x48e   : > { %v1746_v44 = vpop.xlane.xlu1 %1745  ;;  %1805 = vadd.xlane.f32.xlu1 %v6462_v20  ;;  %5288 = vpow2.f32 %v1795_v62  ;;  %v2901_v62 = vsel %vm919_vm0, %v6453_v38, 0 }
 0x48f   : > { %v1766_v47 = vsub.f32 %v6344_v32, %v1746_v44 }
 0x491   : > { %v6467_v12 = vpop.eup %5278  ;;  %v1793_v31 = vmul.f32 1.442695, %v1766_v47 }
 0x492   : > { %v6469_v41 = vpop.xlane.xlu1 %1749  ;;  %1813 = vadd.xlane.f32.xlu1 %v6467_v12  ;;  %v6472_v3 = vpop.eup %5280 }
 0x493   : > { %5290 = vpow2.f32 %v1793_v31 }
 0x494   : > { %5292 = vpow2.f32 %v1789_v45 }
 0x495   : > { %v6474_v54 = vpop.eup %5282 }
 0x496   : > { %v6476_v23 = vpop.xlane.xlu1 %1753  ;;  %1817 = vadd.xlane.f32.xlu0 %v6474_v54  ;;  %1819 = vadd.xlane.f32.xlu1 %v6472_v3  ;;  %v6480_v52 = vpop.eup %5284 }
 0x497   : > { %v6482_v32 = vpop.eup %5286 }
 0x498   : > { %v6486_v33 = vpop.eup %5288 }
 0x49a   : > { %v1886_v30 = vpop.permute.xlu1 %1885  ;;  %1823 = vadd.xlane.f32.xlu0 %v6480_v52  ;;  %1831 = vadd.xlane.f32.xlu1 %v6482_v32 }
 0x49d   : > { %v6488_v19 = vpop.eup %5290 }
 0x49e   : > { %v6490_v48 = vpop.permute.xlu1 %1891  ;;  %1825 = vadd.xlane.f32.xlu0 %v6488_v19  ;;  %1827 = vadd.xlane.f32.xlu1 %v6486_v33  ;;  %v6494_v56 = vpop.eup %5292 }
 0x4a2   : > { %v6496_v26 = vpop.permute.xlu1 %1893  ;;  %1821 = vadd.xlane.f32.xlu0 %v6494_v56 }
 0x4a6   : > { %v6499_v46 = vpop.permute.xlu1 %1897 }
 0x4aa   : > { %v2845_v25 = vpop.permute.xlu1 %2844 }
 0x4ab   : > { %5071 = vmatprep.subr.msk.bf16.mxu0 %vm919_vm0, %v2845_v25  ;;  %v2886_v8 = vsel %vm919_vm0, %v2845_v25, 0 }
 0x4ac   : > { %4901 = vmatpush3.bf16.xpose.msra.mxu0 %v2886_v8  ;;  %v2831_v8 = vpop.permute.xlu0 %2830 }
 0x4ae   : > { %v2847_v2 = vpop.permute.xlu1 %2846 }
 0x4af   : > { %2832 = vrot.lane.b32.xlu1 %v5839_v40, %s5518_s27  ;;  %5072 = vmatprep.subr.msk.bf16.mxu0 %vm919_vm0, %v2847_v2  ;;  %v2889_v0 = vsel %vm919_vm0, %v2847_v2, 0  ;;  %v4261_v2 = vld [vmem:[%s7380_s4 + $0x100] sm:$0xff] }
 0x4b2   : > { %v2849_v58 = vpop.permute.xlu1 %2848 }
 0x4b3   : > { %v2892_v60 = vsel %vm919_vm0, %v2849_v58, 0 }
 0x4b4   : > { %4903 = vmatpush3.bf16.xpose.msra.mxu0 %v2889_v0 }
 0x4b5   : > { %5073 = vmatprep.subr.msk.bf16.mxu0 %vm919_vm0, %v2849_v58  ;;  %v1768_v58 = vsub.f32 %v6359_v37, %v6469_v41 }
 0x4b6   : > { %v2853_v6 = vpop.permute.xlu1 %2852 }
 0x4b7   : > { %v2898_v36 = vsel %vm919_vm0, %v2853_v6, 0  ;;  %v1797_v41 = vmul.f32 1.442695, %v1768_v58 }
 0x4ba   : > { %v2857_v44 = vpop.permute.xlu1 %2856 }
 0x4bc   : > { %4905 = vmatpush3.bf16.xpose.msra.mxu0 %v2892_v60 }
 0x4bd   : > { %5074 = vmatprep.subr.msk.bf16.mxu0 %vm919_vm0, %v6450_v14 }
 0x4c4   : > { %4907 = vmatpush3.bf16.xpose.msra.mxu0 %v2895_v7 }
 0x4c5   : > { %5075 = vmatprep.subr.msk.bf16.mxu0 %vm919_vm0, %v2853_v6 }
 0x4c8   : > { %v4696_v40 = vpop.f32.mrb[16].mxu1 }
 0x4c9   : > { %v1273_v22 = vpop.f32.mrb[17].mxu1 }
 0x4ca   : > { %v4697_v15 = vpop.f32.mrb[18].mxu1 }
 0x4cb   : > { %v1337_v17 = vpack.c.bf16 %v4697_v15, %v4696_v40  ;;  %v1276_v21 = vpop.f32.mrb[19].mxu1 }
 0x4cc   : > { %v1336_v53 = vpack.c.bf16 %v1276_v21, %v1273_v22  ;;  %4909 = vmatpush3.bf16.xpose.msra.mxu0 %v2898_v36  ;;  %v6556_v22 = vld [vmem:[%s5956_s15] ss:$0 sm:$0xff] }
 0x4cd   : > { %5076 = vmatprep.subr.msk.bf16.mxu0 %vm919_vm0, %v6453_v38 }
 0x4ce   : > { %4714 = vmatprep.mubr.msk.bf16.mxu1 %vm919_vm0, %v1336_v53 }
 0x4cf   : > { %4715 = vmatmul.mubr.msk.bf16.vlgmr.msra.gmra.mrb[32].mxu1 %vm919_vm0, %v1337_v17  ;;  %v4264_v17 = vld [vmem:[%s7380_s4 + $0x118] sm:$0xff] }
 0x4d0   : > { %4763 = vmatpush3.bf16.msra.mxu1 %v6438_v28  ;;  %v4700_v14 = vpop.f32.mrb[20].mxu1 }
 0x4d1   : > { %4764 = vmatprep.subr.bf16.mxu1 %v1886_v30  ;;  %v1289_v42 = vpop.f32.mrb[21].mxu1 }
 0x4d2   : > { %v4701_v16 = vpop.f32.mrb[22].mxu1 }
 0x4d3   : > { %v1339_v61 = vpack.c.bf16 %v4701_v16, %v4700_v14  ;;  %v1292_v50 = vpop.f32.mrb[23].mxu1 }
 0x4d4   : > { %v1338_v27 = vpack.c.bf16 %v1292_v50, %v1289_v42  ;;  %4765 = vmatpush3.bf16.msra.mxu1 %v1886_v30  ;;  %4911 = vmatpush3.bf16.xpose.msra.mxu0 %v2901_v62  ;;  %v2904_v30 = vsel %vm919_vm0, %v2857_v44, 0 }
 0x4d5   : > { %4766 = vmatprep.subr.bf16.mxu1 %v6442_v34  ;;  %5077 = vmatprep.subr.msk.bf16.mxu0 %vm919_vm0, %v2857_v44 }
 0x4d6   : > { %4718 = vmatprep.mubr.msk.bf16.mxu1 %vm919_vm0, %v1338_v27 }
 0x4d7   : > { %4719 = vmatmul.mubr.msk.bf16.gmra.mrb[36].mxu1 %vm919_vm0, %v1339_v61 }
 0x4d8   : > { %4767 = vmatpush3.bf16.msra.mxu1 %v6442_v34  ;;  %v4704_v28 = vpop.f32.mrb[24].mxu1  ;;  %v2829_v34 = vpop.permute.xlu1 %2828 }
 0x4d9   : > { %4768 = vmatprep.subr.bf16.mxu1 %v6444_v43  ;;  %v1305_v47 = vpop.f32.mrb[25].mxu1 }
 0x4da   : > { %v4705_v31 = vpop.f32.mrb[26].mxu1 }
 0x4db   : > { %v1341_v38 = vpack.c.bf16 %v4705_v31, %v4704_v28  ;;  %v1308_v45 = vpop.f32.mrb[27].mxu1 }
 0x4dc   : > { %v1340_v25 = vpack.c.bf16 %v1308_v45, %v1305_v47  ;;  %4769 = vmatpush3.bf16.msra.mxu1 %v6444_v43  ;;  %4913 = vmatpush3.bf16.xpose.msra.mxu0 %v2904_v30 }
 0x4dd   : > { %4770 = vmatprep.subr.bf16.mxu1 %v6490_v48 }
 0x4de   : > { %4722 = vmatprep.mubr.msk.bf16.mxu1 %vm919_vm0, %v1340_v25 }
 0x4df   : > { %4723 = vmatmul.mubr.msk.bf16.gmra.mrb[40].mxu1 %vm919_vm0, %v1341_v38 }
 0x4e0   : > { %4771 = vmatpush3.bf16.msra.mxu1 %v6490_v48  ;;  %v1770_v48 = vsub.f32 %v6366_v49, %v6476_v23 }
 0x4e1   : > { %4772 = vmatprep.subr.bf16.mxu1 %v6496_v26 }
 0x4e2   : > { %v1801_v23 = vmul.f32 1.442695, %v1770_v48 }
 0x4e3   : > { %4915 = vmatmul.mubr.msk.bf16.vlgmr.msra.gmra.mrb[80].mxu0 %vm919_vm0, %v2829_v34 }
 0x4e4   : > { %4773 = vmatpush3.bf16.msra.mxu1 %v6496_v26  ;;  %4918 = vmatprep.mubr.msk.bf16.mxu0 %vm919_vm0, %v2831_v8  ;;  %5294 = vpow2.f32 %v1801_v23 }
 0x4e5   : > { %4774 = vmatprep.subr.bf16.mxu1 %v6446_v39  ;;  %5296 = vpow2.f32 %v1797_v41 }
 0x4e8   : > { %4775 = vmatpush3.bf16.msra.mxu1 %v6446_v39  ;;  %v4263_v39 = vld [vmem:[%s7380_s4 + $0x110] sm:$0xff] }
 0x4e9   : > { %4776 = vmatprep.subr.bf16.mxu1 %v6499_v46 }
 0x4ec   : > { %4777 = vmatpush3.bf16.msra.mxu1 %v6499_v46  ;;  %v4262_v46 = vld [vmem:[%s7380_s4 + $0x108] sm:$0xff] }
 0x4ee   : > { %v6587_v38 = vpop.eup %5294 }
 0x4ef   : > { %v1808_v43 = vpop.xlane.xlu1 %1807  ;;  %v6594_v34 = vpop.eup %5296 }
 0x4f2   : > { %v1816_v16 = vpop.xlane.xlu0 %1815 }
 0x4f3   : > { %v1804_v26 = vpop.xlane.xlu1 %1803 }
 0x4f4   : > { %5298 = vrcp.f32 %v1804_v26 }
 0x4f6   : > { %v1812_v47 = vpop.xlane.xlu0 %1811 }
 0x4f7   : > { %v1810_v21 = vpop.xlane.xlu1 %1809 }
 0x511   : > { %v4832_v0 = vpop.f32.mrb[64].mxu0 }
 0x512   : > { %v2296_v60 = vpop.f32.mrb[65].mxu0  ;;  %v2305_v40 = vadd.f32 %v4832_v0, %v4263_v39 }
 0x513   : > { %v2297_v7 = vadd.f32 %v4261_v2, %v2296_v60  ;;  %v4833_v49 = vpop.f32.mrb[66].mxu0  ;;  %v5299_v2 = vpop.eup %5298 }
 0x514   : > { %v2299_v6 = vpop.f32.mrb[67].mxu0  ;;  %v6569_v53 = vadd.f32 %v6556_v22, %v2305_v40  ;;  %v2308_v14 = vadd.f32 %v4833_v49, %v4264_v17  ;;  %v1851_v40 = vmul.f32 %v5299_v2, %v6429_v35 }
 0x515   : > { %v6559_v15 = vadd.f32 %v6556_v22, %v2297_v7  ;;  %v2300_v37 = vadd.f32 %v4262_v46, %v2299_v6 }
 0x516   : > { %v6582_v27 = vadd.f32 %v6556_v22, %v2308_v14 }
 0x517   : > { %v6565_v36 = vadd.f32 %v6556_v22, %v2300_v37  ;;  %2375 = vmax.xlane.f32.xlu0 %v6559_v15 }
 0x519   : > { %2377 = vmax.xlane.f32.xlu1 %v6565_v36  ;;  %v6572_v42 = vpop.f32.mrb[68].mxu0 }
 0x51a   : > { %v6574_v61 = vpop.f32.mrb[69].mxu0 }
 0x51b   : > { %2379 = vmax.xlane.f32.xlu0 %v6569_v53  ;;  %v6577_v50 = vpop.f32.mrb[70].mxu0  ;;  %v1806_v62 = vpop.xlane.xlu1 %1805 }
 0x51c   : > { %5300 = vrcp.f32 %v1806_v62  ;;  %v6579_v44 = vpop.f32.mrb[71].mxu0 }
 0x51d   : > { %5302 = vrcp.f32 %v1810_v21 }
 0x51f   : > { %2381 = vmax.xlane.f32.xlu0 %v6582_v27  ;;  %v1814_v28 = vpop.xlane.xlu1 %1813 }
 0x520   : > { %5304 = vrcp.f32 %v1814_v28 }
 0x521   : > { %v6585_v31 = vpop.f32.mrb[72].mxu0  ;;  %5306 = vrcp.f32 %v1808_v43 }
 0x522   : > { %v6589_v45 = vpop.f32.mrb[73].mxu0  ;;  %5308 = vrcp.f32 %v1812_v47 }
 0x523   : > { %1833 = vadd.xlane.f32.xlu0 %v6587_v38  ;;  %v6592_v30 = vpop.f32.mrb[74].mxu0  ;;  %v1820_v25 = vpop.xlane.xlu1 %1819 }
 0x524   : > { %v1818_v8 = vpop.xlane.xlu0 %1817  ;;  %v6596_v48 = vpop.f32.mrb[75].mxu0 }
 0x525   : > { %v4708_v26 = vpop.f32.mrb[28].mxu1  ;;  %5310 = vrcp.f32 %v1818_v8 }
 0x526   : > { %v5301_v0 = vpop.eup %5300  ;;  %v1321_v58 = vpop.f32.mrb[29].mxu1  ;;  %5312 = vrcp.f32 %v1816_v16 }
 0x527   : > { %1829 = vadd.xlane.f32.xlu0 %v6594_v34  ;;  %v4709_v39 = vpop.f32.mrb[30].mxu1  ;;  %v6599_v60 = vpop.xlane.xlu1 %1831  ;;  %v1852_v43 = vmul.f32 %v5301_v0, %v6462_v20  ;;  %5314 = vrcp.f32 %v1820_v25 }
 0x528   : > { %v1343_v46 = vpack.c.bf16 %v4709_v39, %v4708_v26  ;;  %v1824_v7 = vpop.xlane.xlu0 %1823  ;;  %v1324_v49 = vpop.f32.mrb[31].mxu1 }
 0x529   : > { %v1342_v23 = vpack.c.bf16 %v1324_v49, %v1321_v58  ;;  %v6602_v6 = vpop.f32.mrb[76].mxu0  ;;  %v5303_v41 = vpop.eup %5302  ;;  %v1867_v21 = vpack.c.bf16 %v1852_v43, %v1851_v40 }
 0x52a   : > { %2836 = vrot.lane.b32.xlu1 %v5868_v51, %s5518_s27  ;;  %v6607_v37 = vpop.f32.mrb[77].mxu0  ;;  %v5305_v14 = vpop.eup %5304  ;;  %v1854_v47 = vmul.f32 %v5303_v41, %v6435_v4 }
 0x52b   : > { %4726 = vmatprep.mubr.msk.bf16.mxu1 %vm919_vm0, %v1342_v23  ;;  %v6610_v17 = vpop.f32.mrb[78].mxu0  ;;  %v6612_v20 = vpop.xlane.xlu1 %1827  ;;  %v1856_v8 = vmul.f32 %v5305_v14, %v6467_v12  ;;  %v4265_v14 = vld [vmem:[%s7380_s4 + $0x120] sm:$0xff] }
 0x52c   : > { %v1826_v62 = vpop.xlane.xlu0 %1825  ;;  %4727 = vmatmul.mubr.msk.bf16.gmra.mrb[44].mxu1 %vm919_vm0, %v1343_v46  ;;  %v6615_v28 = vpop.f32.mrb[79].mxu0 }
 0x52d   : > { %v5307_v35 = vpop.eup %5306  ;;  %4778 = vmatprep.mubr.bf16.mxu1 %v1867_v21  ;;  %5316 = vrcp.f32 %v1826_v62 }
 0x52e   : > { %v5309_v51 = vpop.eup %5308  ;;  %v1853_v2 = vmul.f32 %v5307_v35, %v6424_v55  ;;  %v4272_v35 = vld [vmem:[%s7380_s4 + $0x158] sm:$0xff] }
 0x52f   : > { %v2833_v16 = vpop.permute.xlu1 %2832  ;;  %v1855_v0 = vmul.f32 %v5309_v51, %v6433_v9  ;;  %v5311_v39 = vpop.eup %5310  ;;  %v2340_v51 = vadd.f32 %v6592_v30, %v4272_v35 }
 0x530   : > { %v1822_v26 = vpop.xlane.xlu0 %1821  ;;  %4919 = vmatmul.mubr.msk.bf16.gmra.mrb[84].mxu0 %vm919_vm0, %v2833_v16  ;;  %v1868_v58 = vpack.c.bf16 %v1854_v47, %v1853_v2  ;;  %v5313_v46 = vpop.eup %5312  ;;  %v1858_v4 = vmul.f32 %v5311_v39, %v6474_v54 }
 0x531   : > { %5318 = vrcp.f32 %v1822_v26  ;;  %v1869_v43 = vpack.c.bf16 %v1856_v8, %v1855_v0  ;;  %v1857_v12 = vmul.f32 %v5313_v46, %v6427_v13  ;;  %v5315_v25 = vpop.eup %5314  ;;  %v6666_v8 = vadd.f32 %v6556_v22, %v2340_v51 }
 0x532   : > { %5320 = vrcp.f32 %v1824_v7  ;;  %v1859_v40 = vmul.f32 %v5315_v25, %v6472_v3  ;;  %v2313_v3 = vadd.f32 %v4265_v14, %v6574_v61  ;;  %v4274_v25 = vld [vmem:[%s7380_s4 + $0x168] sm:$0xff] }
 0x533   : > { %v1870_v49 = vpack.c.bf16 %v1858_v4, %v1857_v12  ;;  %v4276_v4 = vld [vmem:[%s7380_s4 + $0x178] sm:$0xff] }
 0x534   : > { %4779 = vmatmul.mubr.bf16.vlgmr.msra.gmra.mrb[48].mxu1 %v1868_v58  ;;  %v2356_v12 = vadd.f32 %v6610_v17, %v4276_v4 }
 0x535   : > { %4782 = vmatprep.mubr.bf16.mxu1 %v1869_v43 }
 0x537   : > { %v5317_v55 = vpop.eup %5316 }
 0x538   : > { %v1862_v21 = vmul.f32 %v5317_v55, %v6488_v19  ;;  %v2348_v55 = vadd.f32 %v4274_v25, %v6615_v28 }
 0x53b   : > { %v5319_v23 = vpop.eup %5318 }
 0x53c   : > { %4783 = vmatmul.mubr.bf16.gmra.mrb[52].mxu1 %v1870_v49  ;;  %v1860_v9 = vmul.f32 %v5319_v23, %v6494_v56  ;;  %v5321_v41 = vpop.eup %5320  ;;  %v4268_v56 = vld [vmem:[%s7380_s4 + $0x138] sm:$0xff]  ;;  %v4275_v49 = vld [vmem:[%s7380_s4 + $0x170] sm:$0xff]  ;;  %v6729_v23 = vadd.f32 %v6556_v22, %v2348_v55 }
 0x53d   : > { %2834 = vrot.lane.b32.xlu0 %v5857_v24, %s5518_s27  ;;  %v1861_v54 = vmul.f32 %v5321_v41, %v6480_v52  ;;  %v6638_v24 = vadd.f32 %v6556_v22, %v2313_v3  ;;  %v2324_v19 = vadd.f32 %v6577_v50, %v4268_v56  ;;  %v4270_v52 = vld [vmem:[%s7380_s4 + $0x148] sm:$0xff]  ;;  %v2353_v17 = vadd.f32 %v6602_v6, %v4275_v49 }
 0x53e   : > { %v1871_v7 = vpack.c.bf16 %v1860_v9, %v1859_v40  ;;  %v2332_v61 = vadd.f32 %v4270_v52, %v6596_v48  ;;  %v4266_v50 = vld [vmem:[%s7380_s4 + $0x128] sm:$0xff]  ;;  %v4267_v48 = vld [vmem:[%s7380_s4 + $0x130] sm:$0xff] }
 0x53f   : > { %v1872_v13 = vpack.c.bf16 %v1862_v21, %v1861_v54  ;;  %v6646_v62 = vadd.f32 %v6556_v22, %v2324_v19  ;;  %v2316_v16 = vadd.f32 %v4266_v50, %v6579_v44  ;;  %v2321_v2 = vadd.f32 %v6572_v42, %v4267_v48  ;;  %v4269_v44 = vld [vmem:[%s7380_s4 + $0x140] sm:$0xff]  ;;  %v4271_v42 = vld [vmem:[%s7380_s4 + $0x150] sm:$0xff] }
 0x540   : > { %4786 = vmatprep.mubr.bf16.mxu1 %v1871_v7  ;;  %v6658_v47 = vadd.f32 %v6556_v22, %v2332_v61  ;;  %v2329_v0 = vadd.f32 %v4269_v44, %v6589_v45  ;;  %v2337_v58 = vadd.f32 %v6585_v31, %v4271_v42  ;;  %v4273_v31 = vld [vmem:[%s7380_s4 + $0x160] sm:$0xff]  ;;  %v5124_v45 = vld [vmem:[%s7379_s3 + $0x10] sm:$0xff]   ;;  %v6733_v40 = vadd.f32 %v6556_v22, %v2353_v17 }
 0x541   : > { %v6670_v26 = vadd.f32 %v6556_v22, %v2316_v16  ;;  %v6678_v30 = vadd.f32 %v6556_v22, %v2321_v2  ;;  %4794 = vmatprep.subr.bf16.mxu1 %v5124_v45  ;;  %v2345_v46 = vadd.f32 %v4273_v31, %v6607_v37  ;;  %v6717_v37 = vadd.f32 %v6556_v22, %v2356_v12 }
 0x542   : > { %v6687_v39 = vadd.f32 %v6556_v22, %v2329_v0  ;;  %v6691_v43 = vadd.f32 %v6556_v22, %v2337_v58  ;;  %4795 = vmatpush3.bf16.msra.mxu1 %v5124_v45 }
 0x544   : > { %4787 = vmatmul.mubr.bf16.gmra.mrb[56].mxu1 %v1872_v13  ;;  %v7417_v13 = vld [vmem:[#allocation3_spill] sm:$0xff] }
 0x54e   : > { %2383 = vmax.xlane.f32.xlu1 %v6638_v24 }
 0x552   : > { %2389 = vmax.xlane.f32.xlu1 %v6646_v62 }
 0x556   : > { %2393 = vmax.xlane.f32.xlu1 %v6658_v47 }
 0x55a   : > { %2397 = vmax.xlane.f32.xlu1 %v6666_v8 }
 0x55c   : > { %2385 = vmax.xlane.f32.xlu0 %v6670_v26 }
 0x560   : > { %2387 = vmax.xlane.f32.xlu0 %v6678_v30 }
 0x564   : > { %2391 = vmax.xlane.f32.xlu0 %v6687_v39 }
 0x568   : > { %2395 = vmax.xlane.f32.xlu0 %v6691_v43 }
 0x56b   : > { %2840 = vrot.lane.b32.xlu1 %v5896_v1, %s5518_s27  ;;  %v6712_v1 = vadd.f32 %v6556_v22, %v2345_v46 }
 0x57e   : > { %2838 = vrot.lane.b32.xlu0 %v5880_v57, %s5518_s27  ;;  %v5125_v57 = vld [vmem:[%s7379_s3 + $0x18] sm:$0xff]  }
 0x57f   : > { %4796 = vmatprep.subr.bf16.mxu1 %v5125_v57 }
 0x580   : > { %4797 = vmatpush3.bf16.msra.mxu1 %v5125_v57 }
 0x58f   : > { %2399 = vmax.xlane.f32.xlu1 %v6712_v1 }
 0x593   : > { %2405 = vmax.xlane.f32.xlu1 %v6717_v37 }
 0x59d   : > { %2401 = vmax.xlane.f32.xlu0 %v6729_v23 }
 0x5a1   : > { %2403 = vmax.xlane.f32.xlu0 %v6733_v40 }
 0x5a4   : > { %2529 = vrot.lane.b32.xlu1 %v7413_v11, %s5517_s18  ;;  %v2376_v28 = vpop.xlane.xlu0 %2375 }
 0x5a5   : > { %v2407_v2 = vsub.f32 %v6559_v15, %v2376_v28 }
 0x5a6   : > { %v2378_v7 = vpop.xlane.xlu1 %2377 }
 0x5a8   : > { %2535 = vrot.lane.b32.xlu1 %v7414_v59, %s5517_s18  ;;  %v2380_v9 = vpop.xlane.xlu0 %2379 }
 0x5a9   : > { %v2409_v61 = vsub.f32 %v6569_v53, %v2380_v9  ;;  %v2423_v53 = vmul.f32 1.442695, %v2407_v2 }
 0x5aa   : > { %v2837_v19 = vpop.permute.xlu1 %2836 }
 0x5ab   : > { %v2427_v44 = vmul.f32 1.442695, %v2409_v61 }
 0x5ac   : > { %2537 = vrot.lane.b32.xlu1 %v7415_v29, %s5517_s18  ;;  %v2382_v6 = vpop.xlane.xlu0 %2381 }
 0x5ad   : > { %v2410_v31 = vsub.f32 %v6582_v27, %v2382_v6 }
 0x5af   : > { %v2429_v45 = vmul.f32 1.442695, %v2410_v31 }
 0x5b0   : > { %v1834_v41 = vpop.xlane.xlu0 %1833 }
 0x5b1   : > { %5322 = vrcp.f32 %v1834_v41 }
 0x5b2   : > { %5324 = vrcp.f32 %v6612_v20 }
 0x5b3   : > { %5326 = vrcp.f32 %v6599_v60 }
 0x5b4   : > { %v1830_v21 = vpop.xlane.xlu0 %1829 }
 0x5b5   : > { %5328 = vrcp.f32 %v1830_v21 }
 0x5b6   : > { %v6744_v54 = vpop.f32.mrb[80].mxu0  ;;  %5330 = vpow2.f32 %v2427_v44 }
 0x5b7   : > { %2527 = vrot.lane.b32.xlu0 %v7417_v13, %s5517_s18  ;;  %v6748_v14 = vpop.f32.mrb[81].mxu0  ;;  %5332 = vpow2.f32 %v2423_v53 }
 0x5b8   : > { %v2835_v3 = vpop.permute.xlu0 %2834  ;;  %v6750_v56 = vpop.f32.mrb[82].mxu0  ;;  %5334 = vpow2.f32 %v2429_v45 }
 0x5b9   : > { %4922 = vmatprep.mubr.msk.bf16.mxu0 %vm919_vm0, %v2835_v3  ;;  %v6753_v52 = vpop.f32.mrb[83].mxu0 }
 0x5ba   : > { %4923 = vmatmul.mubr.msk.bf16.gmra.mrb[88].mxu0 %vm919_vm0, %v2837_v19 }
 0x5bb   : > { %2531 = vrot.lane.b32.xlu0 %v5810_v10, %s5517_s18  ;;  %v5323_v60 = vpop.eup %5322 }
 0x5bc   : > { %v5325_v20 = vpop.eup %5324  ;;  %v1866_v51 = vmul.f32 %v5323_v60, %v6587_v38  ;;  %v2408_v38 = vsub.f32 %v6565_v36, %v2378_v7 }
 0x5bd   : > { %v5327_v35 = vpop.eup %5326  ;;  %v1863_v16 = vmul.f32 %v5325_v20, %v6486_v33 }
 0x5be   : > { %v1865_v0 = vmul.f32 %v5327_v35, %v6482_v32  ;;  %v2425_v33 = vmul.f32 1.442695, %v2408_v38  ;;  %v7418_v35 = vmov 0  }
 0x5bf   : > { %v5329_v50 = vpop.eup %5328  ;;  %2533 = vrot.lane.b32.xlu0 %v5808_v5, %s5517_s18 }
 0x5c0   : > { %v1864_v48 = vmul.f32 %v5329_v50, %v6594_v34  ;;  %v1874_v58 = vpack.c.bf16 %v1866_v51, %v1865_v0  ;;  %v6768_v34 = vpop.eup %5330  ;;  %5336 = vpow2.f32 %v2425_v33 }
 0x5c1   : > { %v6771_v32 = vpop.eup %5332 }
 0x5c2   : > { %v1873_v42 = vpack.c.bf16 %v1864_v48, %v1863_v16  ;;  %v6774_v15 = vpop.eup %5334 }
 0x5c4   : > { %4790 = vmatprep.mubr.bf16.mxu1 %v1873_v42 }
 0x5c5   : > { %4791 = vmatmul.mubr.bf16.gmra.mrb[60].mxu1 %v1874_v58 }
 0x5ca   : > { %v6777_v27 = vpop.eup %5336 }
 0x5d0   : > { %2459 = vadd.xlane.f32.xlu1 %v6768_v34 }
 0x5d4   : > { %2455 = vadd.xlane.f32.xlu1 %v6771_v32 }
 0x5d8   : > { %2461 = vadd.xlane.f32.xlu1 %v6774_v15 }
 0x5db   : > { %v2384_v36 = vpop.xlane.xlu1 %2383 }
 0x5dc   : > { %2457 = vadd.xlane.f32.xlu1 %v6777_v27  ;;  %v2411_v25 = vsub.f32 %v6638_v24, %v2384_v36 }
 0x5de   : > { %v2431_v9 = vmul.f32 1.442695, %v2411_v25 }
 0x5df   : > { %v2390_v46 = vpop.xlane.xlu1 %2389 }
 0x5e0   : > { %v2414_v41 = vsub.f32 %v6646_v62, %v2390_v46 }
 0x5e2   : > { %v2437_v19 = vmul.f32 1.442695, %v2414_v41 }
 0x5e3   : > { %v2394_v49 = vpop.xlane.xlu1 %2393 }
 0x5e7   : > { %v2398_v21 = vpop.xlane.xlu1 %2397 }
 0x5e8   : > { %v2418_v20 = vsub.f32 %v6666_v8, %v2398_v21 }
 0x5e9   : > { %v2386_v4 = vpop.xlane.xlu0 %2385 }
 0x5ea   : > { %v2412_v57 = vsub.f32 %v6670_v26, %v2386_v4  ;;  %v2445_v50 = vmul.f32 1.442695, %v2418_v20 }
 0x5eb   : > { %v2841_v62 = vpop.permute.xlu1 %2840 }
 0x5ec   : > { %v2433_v12 = vmul.f32 1.442695, %v2412_v57 }
 0x5ed   : > { %v2388_v55 = vpop.xlane.xlu0 %2387 }
 0x5ee   : > { %5338 = vpow2.f32 %v2433_v12  ;;  %v2413_v17 = vsub.f32 %v6678_v30, %v2388_v55 }
 0x5f0   : > { %v2435_v28 = vmul.f32 1.442695, %v2413_v17 }
 0x5f1   : > { %v2392_v6 = vpop.xlane.xlu0 %2391 }
 0x5f2   : > { %5340 = vpow2.f32 %v2435_v28  ;;  %v2415_v7 = vsub.f32 %v6687_v39, %v2392_v6 }
 0x5f3   : > { %5342 = vpow2.f32 %v2431_v9 }
 0x5f4   : > { %v2439_v3 = vmul.f32 1.442695, %v2415_v7 }
 0x5f5   : > { %v2396_v26 = vpop.xlane.xlu0 %2395 }
 0x5f6   : > { %5344 = vpow2.f32 %v2439_v3  ;;  %v2417_v24 = vsub.f32 %v6691_v43, %v2396_v26  ;;  %v2416_v43 = vsub.f32 %v6658_v47, %v2394_v49 }
 0x5f7   : > { %5346 = vpow2.f32 %v2437_v19 }
 0x5f8   : > { %v6786_v60 = vpop.eup %5338  ;;  %v2443_v61 = vmul.f32 1.442695, %v2417_v24  ;;  %v2441_v8 = vmul.f32 1.442695, %v2416_v43 }
 0x5f9   : > { %2465 = vadd.xlane.f32.xlu1 %v6786_v60  ;;  %v2839_v30 = vpop.permute.xlu0 %2838 }
 0x5fa   : > { %4926 = vmatprep.mubr.msk.bf16.mxu0 %vm919_vm0, %v2839_v30  ;;  %5348 = vpow2.f32 %v2443_v61 }
 0x5fb   : > { %4927 = vmatmul.mubr.msk.bf16.gmra.mrb[92].mxu0 %vm919_vm0, %v2841_v62  ;;  %5350 = vpow2.f32 %v2445_v50 }
 0x5fc   : > { %v6792_v39 = vpop.eup %5340  ;;  %3724 = vmatprep.mubr.bf16.mxu0 %v7418_v35  ;;  %5352 = vpow2.f32 %v2441_v8 }
 0x5fd   : > { %2467 = vadd.xlane.f32.xlu0 %v6792_v39  ;;  %v6797_v51 = vpop.eup %5342 }
 0x600   : > { %v6799_v16 = vpop.eup %5344 }
 0x601   : > { %2463 = vadd.xlane.f32.xlu0 %v6797_v51  ;;  %2471 = vadd.xlane.f32.xlu1 %v6799_v16  ;;  %v6805_v2 = vpop.eup %5346 }
 0x603   : > { %v6803_v48 = vpop.f32.mrb[84].mxu0 }
 0x604   : > { %v6807_v44 = vpop.f32.mrb[85].mxu0  ;;  %v6814_v58 = vpop.eup %5348 }
 0x605   : > { %2469 = vadd.xlane.f32.xlu0 %v6805_v2  ;;  %v6810_v47 = vpop.f32.mrb[86].mxu0  ;;  %v6817_v36 = vpop.eup %5350 }
 0x606   : > { %v6812_v0 = vpop.f32.mrb[87].mxu0  ;;  %v6822_v4 = vpop.eup %5352 }
 0x607   : > { %v4780_v42 = vpop.f32.mrb[48].mxu1 }
 0x608   : > { %v1941_v53 = vpop.f32.mrb[49].mxu1 }
 0x609   : > { %2475 = vadd.xlane.f32.xlu0 %v6814_v58  ;;  %v4781_v31 = vpop.f32.mrb[50].mxu1 }
 0x60a   : > { %v2005_v38 = vpack.c.bf16 %v4781_v31, %v4780_v42  ;;  %v1944_v45 = vpop.f32.mrb[51].mxu1 }
 0x60b   : > { %v2004_v33 = vpack.c.bf16 %v1944_v45, %v1941_v53 }
 0x60d   : > { %2477 = vadd.xlane.f32.xlu0 %v6817_v36  ;;  %4798 = vmatprep.mubr.msk.bf16.mxu1 %vm919_vm0, %v2004_v33  ;;  %v4295_v33 = vld [vmem:[%s7380_s4 + $0x180] sm:$0xff] }
 0x60e   : > { %4799 = vmatmul.mubr.msk.bf16.vlgmr.msra.gmra.mrb[32].mxu1 %vm919_vm0, %v2005_v38 }
 0x60f   : > { %v4784_v46 = vpop.f32.mrb[52].mxu1 }
 0x610   : > { %v1957_v57 = vpop.f32.mrb[53].mxu1 }
 0x611   : > { %2473 = vadd.xlane.f32.xlu0 %v6822_v4  ;;  %v4785_v12 = vpop.f32.mrb[54].mxu1 }
 0x612   : > { %v2007_v25 = vpack.c.bf16 %v4785_v12, %v4784_v46  ;;  %v1960_v55 = vpop.f32.mrb[55].mxu1  ;;  %v2941_v46 = vadd.f32 %v4295_v33, %v6748_v14  ;;  %v4296_v12 = vld [vmem:[%s7380_s4 + $0x188] sm:$0xff] }
 0x613   : > { %v2006_v49 = vpack.c.bf16 %v1960_v55, %v1957_v57  ;;  %v2944_v55 = vadd.f32 %v4296_v12, %v6753_v52 }
 0x615   : > { %4802 = vmatprep.mubr.msk.bf16.mxu1 %vm919_vm0, %v2006_v49  ;;  %v4297_v49 = vld [vmem:[%s7380_s4 + $0x190] sm:$0xff] }
 0x616   : > { %4803 = vmatmul.mubr.msk.bf16.gmra.mrb[36].mxu1 %vm919_vm0, %v2007_v25  ;;  %v6855_v25 = vadd.f32 %v6556_v22, %v2941_v46  ;;  %v2949_v14 = vadd.f32 %v6744_v54, %v4297_v49  ;;  %v4300_v54 = vld [vmem:[%s7380_s4 + $0x1a8] sm:$0xff]  ;;  %v4305_v46 = vld [vmem:[%s7380_s4 + $0x1d0] sm:$0xff] }
 0x617   : > { %v4788_v17 = vpop.f32.mrb[56].mxu1 }
 0x618   : > { %v1973_v28 = vpop.f32.mrb[57].mxu1  ;;  %v6873_v52 = vadd.f32 %v6556_v22, %v2949_v14  ;;  %v4306_v14 = vld [vmem:[%s7380_s4 + $0x1d8] sm:$0xff] }
 0x619   : > { %v4789_v9 = vpop.f32.mrb[58].mxu1 }
 0x61a   : > { %v2009_v6 = vpack.c.bf16 %v4789_v9, %v4788_v17  ;;  %v1976_v41 = vpop.f32.mrb[59].mxu1  ;;  %v6864_v17 = vadd.f32 %v6556_v22, %v2944_v55 }
 0x61b   : > { %v2008_v7 = vpack.c.bf16 %v1976_v41, %v1973_v28  ;;  %v4298_v28 = vld [vmem:[%s7380_s4 + $0x198] sm:$0xff]  ;;  %v2960_v41 = vadd.f32 %v4300_v54, %v6812_v0 }
 0x61c   : > { %v2400_v21 = vpop.xlane.xlu1 %2399  ;;  %v2952_v9 = vadd.f32 %v6750_v56, %v4298_v28 }
 0x61d   : > { %4806 = vmatprep.mubr.msk.bf16.mxu1 %vm919_vm0, %v2008_v7  ;;  %v2419_v24 = vsub.f32 %v6712_v1, %v2400_v21  ;;  %v4301_v7 = vld [vmem:[%s7380_s4 + $0x1b0] sm:$0xff]  ;;  %v6890_v56 = vadd.f32 %v6556_v22, %v2960_v41 }
 0x61e   : > { %4807 = vmatmul.mubr.msk.bf16.gmra.mrb[40].mxu1 %vm919_vm0, %v2009_v6  ;;  %v6881_v6 = vadd.f32 %v6556_v22, %v2952_v9  ;;  %v2965_v21 = vadd.f32 %v6803_v48, %v4301_v7  ;;  %v4299_v48 = vld [vmem:[%s7380_s4 + $0x1a0] sm:$0xff] }
 0x61f   : > { %v2447_v61 = vmul.f32 1.442695, %v2419_v24  ;;  %v2957_v24 = vadd.f32 %v4299_v48, %v6807_v44  ;;  %v4304_v44 = vld [vmem:[%s7380_s4 + $0x1c8] sm:$0xff] }
 0x620   : > { %v2406_v26 = vpop.xlane.xlu1 %2405 }
 0x621   : > { %v2422_v42 = vsub.f32 %v6717_v37, %v2406_v26  ;;  %v6897_v26 = vadd.f32 %v6556_v22, %v2965_v21 }
 0x623   : > { %v2453_v1 = vmul.f32 1.442695, %v2422_v42 }
 0x624   : > { %v2530_v50 = vpop.permute.xlu1 %2529 }
 0x627   : > { %2539 = vrot.lane.b32.xlu0 %v7409_v63, %s5517_s18 }
 0x62a   : > { %v2402_v3 = vpop.xlane.xlu0 %2401 }
 0x62b   : > { %v2420_v43 = vsub.f32 %v6729_v23, %v2402_v3  ;;  %v2536_v23 = vpop.permute.xlu1 %2535  ;;  %v4302_v3 = vld [vmem:[%s7380_s4 + $0x1b8] sm:$0xff] }
 0x62c   : > { %v2968_v0 = vadd.f32 %v6810_v47, %v4302_v3 }
 0x62d   : > { %v2449_v53 = vmul.f32 1.442695, %v2420_v43 }
 0x62e   : > { %v2404_v19 = vpop.xlane.xlu0 %2403 }
 0x62f   : > { %v2421_v30 = vsub.f32 %v6733_v40, %v2404_v19  ;;  %v2538_v37 = vpop.permute.xlu1 %2537  ;;  %v6902_v19 = vadd.f32 %v6556_v22, %v2968_v0 }
 0x631   : > { %v2451_v20 = vmul.f32 1.442695, %v2421_v30  ;;  %v6910_v30 = vadd.f32 %v6556_v22, %v2957_v24 }
 0x632   : > { %v2528_v62 = vpop.permute.xlu0 %2527 }
 0x633   : > { %5354 = vpow2.f32 %v2451_v20  ;;  %4846 = vmatprep.subr.bf16.mxu1 %v2528_v62 }
 0x634   : > { %4847 = vmatpush3.bf16.msra.mxu1 %v2528_v62  ;;  %5356 = vpow2.f32 %v2447_v61 }
 0x635   : > { %4848 = vmatprep.subr.bf16.mxu1 %v2530_v50  ;;  %5358 = vpow2.f32 %v2449_v53 }
 0x636   : > { %v2532_v8 = vpop.permute.xlu0 %2531  ;;  %5360 = vpow2.f32 %v2453_v1 }
 0x638   : > { %4849 = vmatpush3.bf16.msra.mxu1 %v2530_v50  ;;  %v4303_v50 = vld [vmem:[%s7380_s4 + $0x1c0] sm:$0xff] }
 0x639   : > { %4850 = vmatprep.subr.bf16.mxu1 %v2532_v8 }
 0x63a   : > { %v2534_v40 = vpop.permute.xlu0 %2533 }
 0x63c   : > { %4851 = vmatpush3.bf16.msra.mxu1 %v2532_v8 }
 0x63d   : > { %v6835_v31 = vpop.eup %5354  ;;  %4852 = vmatprep.subr.bf16.mxu1 %v2534_v40 }
 0x63e   : > { %2483 = vadd.xlane.f32.xlu1 %v6835_v31  ;;  %v6838_v38 = vpop.eup %5356 }
 0x63f   : > { %v6841_v45 = vpop.eup %5358 }
 0x640   : > { %4853 = vmatpush3.bf16.msra.mxu1 %v2534_v40  ;;  %v6848_v57 = vpop.eup %5360 }
 0x641   : > { %4854 = vmatprep.subr.bf16.mxu1 %v2536_v23 }
 0x642   : > { %2479 = vadd.xlane.f32.xlu1 %v6838_v38 }
 0x644   : > { %4855 = vmatpush3.bf16.msra.mxu1 %v2536_v23 }
 0x645   : > { %4856 = vmatprep.subr.bf16.mxu1 %v2538_v37 }
 0x646   : > { %2481 = vadd.xlane.f32.xlu0 %v6841_v45 }
 0x648   : > { %4857 = vmatpush3.bf16.msra.mxu1 %v2538_v37 }
 0x64a   : > { %2485 = vadd.xlane.f32.xlu0 %v6848_v57 }
 0x64e   : > { %3019 = vmax.xlane.f32.xlu0 %v6855_v25 }
 0x652   : > { %3021 = vmax.xlane.f32.xlu0 %v6864_v17 }
 0x653   : > { %2541 = vrot.lane.b32.xlu1 %v7416_v18, %s5517_s18 }
 0x656   : > { %3023 = vmax.xlane.f32.xlu0 %v6873_v52 }
 0x65a   : > { %3025 = vmax.xlane.f32.xlu0 %v6881_v6 }
 0x65d   : > { %v2460_v20 = vpop.xlane.xlu1 %2459 }
 0x65e   : > { %3029 = vmax.xlane.f32.xlu0 %v6890_v56 }
 0x661   : > { %v2456_v47 = vpop.xlane.xlu1 %2455 }
 0x662   : > { %3031 = vmax.xlane.f32.xlu0 %v6897_v26 }
 0x665   : > { %v2462_v62 = vpop.xlane.xlu1 %2461 }
 0x666   : > { %3033 = vmax.xlane.f32.xlu0 %v6902_v19 }
 0x669   : > { %v2458_v61 = vpop.xlane.xlu1 %2457 }
 0x66a   : > { %5362 = vrcp.f32 %v2458_v61 }
 0x66b   : > { %5364 = vrcp.f32 %v2456_v47 }
 0x66c   : > { %5366 = vrcp.f32 %v2462_v62 }
 0x674   : > { %v5363_v28 = vpop.eup %5362 }
 0x675   : > { %v5365_v41 = vpop.eup %5364  ;;  %v2504_v48 = vmul.f32 %v5363_v28, %v6777_v27 }
 0x677   : > { %3027 = vmax.xlane.f32.xlu1 %v6910_v30 }
 0x68a   : > { %v2468_v43 = vpop.xlane.xlu0 %2467 }
 0x68d   : > { %v4924_v8 = vpop.f32.mrb[88].mxu0 }
 0x68e   : > { %v2972_v42 = vpop.f32.mrb[89].mxu0  ;;  %v2464_v1 = vpop.xlane.xlu0 %2463  ;;  %v2981_v55 = vadd.f32 %v4924_v8, %v4305_v46  ;;  %v2503_v8 = vmul.f32 %v5365_v41, %v6771_v32  ;;  %v4307_v46 = vld [vmem:[%s7380_s4 + $0x1e0] sm:$0xff] }
 0x68f   : > { %v2973_v53 = vadd.f32 %v4303_v50, %v2972_v42  ;;  %v4925_v40 = vpop.f32.mrb[90].mxu0  ;;  %5368 = vrcp.f32 %v2464_v1 }
 0x690   : > { %v2975_v23 = vpop.f32.mrb[91].mxu0  ;;  %v6936_v7 = vadd.f32 %v6556_v22, %v2981_v55  ;;  %v2984_v21 = vadd.f32 %v4925_v40, %v4306_v14  ;;  %v2466_v40 = vpop.xlane.xlu1 %2465  ;;  %5370 = vrcp.f32 %v2460_v20  ;;  %v4308_v20 = vld [vmem:[%s7380_s4 + $0x1e8] sm:$0xff] }
 0x691   : > { %v6920_v37 = vadd.f32 %v6556_v22, %v2973_v53  ;;  %v2976_v33 = vadd.f32 %v4304_v44, %v2975_v23  ;;  %v2519_v44 = vpack.c.bf16 %v2504_v48, %v2503_v8  ;;  %5372 = vrcp.f32 %v2466_v40  ;;  %v5367_v14 = vpop.eup %5366 }
 0x692   : > { %v2470_v12 = vpop.xlane.xlu0 %2469  ;;  %v6942_v42 = vadd.f32 %v6556_v22, %v2984_v21 }
 0x693   : > { %3035 = vmax.xlane.f32.xlu0 %v6920_v37  ;;  %v6927_v49 = vadd.f32 %v6556_v22, %v2976_v33  ;;  %v4309_v33 = vld [vmem:[%s7380_s4 + $0x1f0] sm:$0xff]  ;;  %5374 = vrcp.f32 %v2470_v12 }
 0x694   : > { %v2472_v32 = vpop.xlane.xlu1 %2471 }
 0x696   : > { %v6932_v9 = vpop.xlane.xlu0 %2475 }
 0x697   : > { %3037 = vmax.xlane.f32.xlu0 %v6927_v49 }
 0x698   : > { %v4792_v54 = vpop.f32.mrb[60].mxu1 }
 0x699   : > { %v1989_v3 = vpop.f32.mrb[61].mxu1 }
 0x69a   : > { %v4793_v0 = vpop.f32.mrb[62].mxu1  ;;  %v2478_v47 = vpop.xlane.xlu0 %2477 }
 0x69b   : > { %v2011_v24 = vpack.c.bf16 %v4793_v0, %v4792_v54  ;;  %v1992_v61 = vpop.f32.mrb[63].mxu1  ;;  %3039 = vmax.xlane.f32.xlu0 %v6936_v7  ;;  %v5369_v54 = vpop.eup %5368 }
 0x69c   : > { %v2010_v50 = vpack.c.bf16 %v1992_v61, %v1989_v3  ;;  %v5371_v12 = vpop.eup %5370 }
 0x69d   : > { %v5373_v48 = vpop.eup %5372 }
 0x69e   : > { %4810 = vmatprep.mubr.msk.bf16.mxu1 %vm919_vm0, %v2010_v50  ;;  %v2474_v53 = vpop.xlane.xlu0 %2473  ;;  %v4310_v50 = vld [vmem:[%s7380_s4 + $0x1f8] sm:$0xff] }
 0x69f   : > { %4811 = vmatmul.mubr.msk.bf16.gmra.mrb[44].mxu1 %vm919_vm0, %v2011_v24  ;;  %3041 = vmax.xlane.f32.xlu0 %v6942_v42  ;;  %5376 = vrcp.f32 %v2474_v53  ;;  %v2506_v24 = vmul.f32 %v5367_v14, %v6774_v15  ;;  %v2507_v53 = vmul.f32 %v5369_v54, %v6797_v51  ;;  %v2508_v15 = vmul.f32 %v5373_v48, %v6786_v60  ;;  %v5126_v54 = vld [vmem:[%s7379_s3 + $0x20] sm:$0xff]  }
 0x6a0   : > { %4862 = vmatprep.mubr.bf16.mxu1 %v2519_v44  ;;  %5378 = vrcp.f32 %v2468_v43 }
 0x6a1   : > { %5380 = vrcp.f32 %v2472_v32 }
 0x6a2   : > { %v2540_v27 = vpop.permute.xlu0 %2539  ;;  %5382 = vrcp.f32 %v2478_v47 }
 0x6a3   : > { %4858 = vmatprep.subr.bf16.mxu1 %v2540_v27 }
 0x6a4   : > { %4859 = vmatpush3.bf16.msra.mxu1 %v2540_v27  ;;  %v2505_v27 = vmul.f32 %v5371_v12, %v6768_v34 }
 0x6cb   : > { %v2484_v23 = vpop.xlane.xlu1 %2483 }
 0x6ce   : > { %v4928_v55 = vpop.f32.mrb[92].mxu0 }
 0x6cf   : > { %v2997_v28 = vadd.f32 %v4928_v55, %v4309_v33  ;;  %v2988_v62 = vpop.f32.mrb[93].mxu0  ;;  %v2480_v1 = vpop.xlane.xlu1 %2479  ;;  %v2520_v33 = vpack.c.bf16 %v2506_v24, %v2505_v27  ;;  %v2521_v55 = vpack.c.bf16 %v2508_v15, %v2507_v53 }
 0x6d0   : > { %v2989_v41 = vadd.f32 %v4307_v46, %v2988_v62  ;;  %v4929_v21 = vpop.f32.mrb[94].mxu0  ;;  %v5375_v46 = vpop.eup %5374 }
 0x6d1   : > { %v6957_v3 = vadd.f32 %v6556_v22, %v2997_v28  ;;  %v2991_v0 = vpop.f32.mrb[95].mxu0  ;;  %v3000_v40 = vadd.f32 %v4929_v21, %v4310_v50  ;;  %v5377_v51 = vpop.eup %5376  ;;  %v2510_v28 = vmul.f32 %v5375_v46, %v6805_v2 }
 0x6d2   : > { %v6961_v43 = vadd.f32 %v6556_v22, %v2989_v41  ;;  %v2992_v61 = vadd.f32 %v4308_v20, %v2991_v0  ;;  %v5379_v34 = vpop.eup %5378  ;;  %v2512_v62 = vmul.f32 %v5377_v51, %v6822_v4 }
 0x6d3   : > { %3047 = vmax.xlane.f32.xlu1 %v6957_v3  ;;  %v2542_v8 = vpop.permute.xlu1 %2541  ;;  %v2482_v44 = vpop.xlane.xlu0 %2481  ;;  %v6977_v60 = vadd.f32 %v6556_v22, %v3000_v40 }
 0x6d4   : > { %3043 = vmax.xlane.f32.xlu0 %v6961_v43  ;;  %4860 = vmatprep.subr.bf16.mxu1 %v2542_v8  ;;  %v6972_v32 = vadd.f32 %v6556_v22, %v2992_v61  ;;  %5384 = vrcp.f32 %v2482_v44  ;;  %v5381_v47 = vpop.eup %5380 }
 0x6d5   : > { %4861 = vmatpush3.bf16.msra.mxu1 %v2542_v8  ;;  %5386 = vrcp.f32 %v6932_v9  ;;  %v2509_v9 = vmul.f32 %v5379_v34, %v6792_v39  ;;  %v5383_v41 = vpop.eup %5382 }
 0x6d6   : > { %5388 = vrcp.f32 %v2480_v1  ;;  %v2511_v1 = vmul.f32 %v5381_v47, %v6799_v16  ;;  %4878 = vmatprep.subr.bf16.mxu1 %v5126_v54  ;;  %v2514_v39 = vmul.f32 %v5383_v41, %v6817_v36  ;;  %v5127_v16 = vld [vmem:[%s7379_s3 + $0x28] sm:$0xff]  }
 0x6d7   : > { %v2486_v14 = vpop.xlane.xlu0 %2485  ;;  %v2522_v20 = vpack.c.bf16 %v2510_v28, %v2509_v9 }
 0x6d8   : > { %3045 = vmax.xlane.f32.xlu0 %v6972_v32  ;;  %4863 = vmatmul.mubr.bf16.vlgmr.msra.gmra.mrb[64].mxu1 %v2520_v33  ;;  %5390 = vrcp.f32 %v2486_v14  ;;  %v2523_v22 = vpack.c.bf16 %v2512_v62, %v2511_v1 }
 0x6d9   : > { %4866 = vmatprep.mubr.bf16.mxu1 %v2521_v55  ;;  %5392 = vrcp.f32 %v2484_v23  ;;  %4879 = vmatpush3.bf16.msra.mxu1 %v5126_v54 }
 0x6da   : > { %4880 = vmatprep.subr.bf16.mxu1 %v5127_v16 }
 0x6db   : > { %v3020_v12 = vpop.xlane.xlu0 %3019 }
 0x6dc   : > { %3049 = vmax.xlane.f32.xlu0 %v6977_v60  ;;  %v3051_v15 = vsub.f32 %v6855_v25, %v3020_v12 }
 0x6dd   : > { %4881 = vmatpush3.bf16.msra.mxu1 %v5127_v16 }
 0x6de   : > { %v5385_v21 = vpop.eup %5384  ;;  %v3067_v46 = vmul.f32 1.442695, %v3051_v15 }
 0x6df   : > { %v5387_v2 = vpop.eup %5386  ;;  %v2516_v0 = vmul.f32 %v5385_v21, %v6841_v45  ;;  %v3022_v24 = vpop.xlane.xlu0 %3021 }
 0x6e0   : > { %4867 = vmatmul.mubr.bf16.gmra.mrb[68].mxu1 %v2522_v20  ;;  %v5389_v4 = vpop.eup %5388  ;;  %v2513_v23 = vmul.f32 %v5387_v2, %v6814_v58 }
 0x6e1   : > { %4870 = vmatprep.mubr.bf16.mxu1 %v2523_v22  ;;  %v2515_v48 = vmul.f32 %v5389_v4, %v6838_v38 }
 0x6e2   : > { %v2524_v61 = vpack.c.bf16 %v2514_v39, %v2513_v23  ;;  %v5391_v50 = vpop.eup %5390 }
 0x6e3   : > { %v2525_v8 = vpack.c.bf16 %v2516_v0, %v2515_v48  ;;  %v5393_v36 = vpop.eup %5392  ;;  %v2518_v45 = vmul.f32 %v5391_v50, %v6848_v57  ;;  %v3024_v44 = vpop.xlane.xlu0 %3023 }
 0x6e4   : > { %3171 = vrot.lane.b32.xlu1 %v7417_v13, %s5518_s27  ;;  %v2517_v13 = vmul.f32 %v5393_v36, %v6835_v31  ;;  %v3053_v53 = vsub.f32 %v6873_v52, %v3024_v44  ;;  %v3052_v52 = vsub.f32 %v6864_v17, %v3022_v24 }
 0x6e6   : > { %v2526_v58 = vpack.c.bf16 %v2518_v45, %v2517_v13  ;;  %v3069_v25 = vmul.f32 1.442695, %v3052_v52 }
 0x6e7   : > { %v3026_v38 = vpop.xlane.xlu0 %3025 }
 0x6e8   : > { %3173 = vrot.lane.b32.xlu1 %v7413_v11, %s5518_s27  ;;  %4871 = vmatmul.mubr.bf16.gmra.mrb[72].mxu1 %v2524_v61 }
 0x6e9   : > { %4874 = vmatprep.mubr.bf16.mxu1 %v2525_v8 }
 0x6eb   : > { %v3030_v11 = vpop.xlane.xlu0 %3029 }
 0x6ec   : > { %3177 = vrot.lane.b32.xlu1 %v5808_v5, %s5518_s27  ;;  %v3071_v5 = vmul.f32 1.442695, %v3053_v53  ;;  %v3056_v47 = vsub.f32 %v6890_v56, %v3030_v11 }
 0x6ee   : > { %5394 = vpow2.f32 %v3071_v5 }
 0x6ef   : > { %v3032_v27 = vpop.xlane.xlu0 %3031 }
 0x6f0   : > { %3179 = vrot.lane.b32.xlu1 %v7414_v59, %s5518_s27  ;;  %4875 = vmatmul.mubr.bf16.gmra.mrb[76].mxu1 %v2526_v58  ;;  %v3057_v57 = vsub.f32 %v6897_v26, %v3032_v27  ;;  %v3054_v59 = vsub.f32 %v6881_v6, %v3026_v38  ;;  %v3077_v6 = vmul.f32 1.442695, %v3056_v47 }
 0x6f2   : > { %3175 = vrot.lane.b32.xlu0 %v5810_v10, %s5518_s27  ;;  %v3079_v31 = vmul.f32 1.442695, %v3057_v57  ;;  %v3073_v26 = vmul.f32 1.442695, %v3054_v59 }
 0x6f3   : > { %v3034_v55 = vpop.xlane.xlu0 %3033 }
 0x6f4   : > { %5396 = vpow2.f32 %v3079_v31  ;;  %v3058_v10 = vsub.f32 %v6902_v19, %v3034_v55 }
 0x6f5   : > { %5398 = vpow2.f32 %v3067_v46 }
 0x6f6   : > { %v3081_v34 = vmul.f32 1.442695, %v3058_v10 }
 0x704   : > { %v3028_v40 = vpop.xlane.xlu1 %3027 }
 0x705   : > { %v3055_v33 = vsub.f32 %v6910_v30, %v3028_v40  ;;  %v7014_v30 = vpop.eup %5394 }
 0x706   : > { %v7017_v14 = vpop.eup %5396 }
 0x707   : > { %v3075_v51 = vmul.f32 1.442695, %v3055_v33  ;;  %v7019_v19 = vpop.eup %5398 }
 0x709   : > { %5400 = vpow2.f32 %v3075_v51 }
 0x70a   : > { %5402 = vpow2.f32 %v3073_v26 }
 0x70b   : > { %5404 = vpow2.f32 %v3081_v34 }
 0x70c   : > { %5406 = vpow2.f32 %v3069_v25 }
 0x70d   : > { %5408 = vpow2.f32 %v3077_v6 }
 0x711   : > { %3103 = vadd.xlane.f32.xlu0 %v7014_v30 }
 0x713   : > { %v7023_v17 = vpop.eup %5400 }
 0x714   : > { %3111 = vadd.xlane.f32.xlu1 %v7017_v14  ;;  %v7025_v28 = vpop.eup %5402 }
 0x715   : > { %3099 = vadd.xlane.f32.xlu0 %v7019_v19  ;;  %v7029_v56 = vpop.eup %5404 }
 0x716   : > { %v7031_v62 = vpop.eup %5406 }
 0x717   : > { %v7035_v9 = vpop.eup %5408 }
 0x718   : > { %3107 = vadd.xlane.f32.xlu1 %v7023_v17 }
 0x719   : > { %3105 = vadd.xlane.f32.xlu0 %v7025_v28 }
 0x71c   : > { %3113 = vadd.xlane.f32.xlu1 %v7029_v56 }
 0x71d   : > { %3101 = vadd.xlane.f32.xlu0 %v7031_v62 }
 0x720   : > { %v3036_v1 = vpop.xlane.xlu0 %3035 }
 0x721   : > { %3109 = vadd.xlane.f32.xlu0 %v7035_v9  ;;  %v3059_v22 = vsub.f32 %v6920_v37, %v3036_v1 }
 0x723   : > { %v3083_v12 = vmul.f32 1.442695, %v3059_v22 }
 0x724   : > { %v3038_v20 = vpop.xlane.xlu0 %3037 }
 0x725   : > { %v3060_v54 = vsub.f32 %v6927_v49, %v3038_v20 }
 0x727   : > { %v3085_v21 = vmul.f32 1.442695, %v3060_v54 }
 0x728   : > { %v3040_v41 = vpop.xlane.xlu0 %3039 }
 0x729   : > { %v3061_v2 = vsub.f32 %v6936_v7, %v3040_v41  ;;  %5410 = vpow2.f32 %v3085_v21 }
 0x72a   : > { %5412 = vpow2.f32 %v3083_v12 }
 0x72c   : > { %v3042_v4 = vpop.xlane.xlu0 %3041 }
 0x72d   : > { %3183 = vrot.lane.b32.xlu1 %v7409_v63, %s5518_s27  ;;  %v3087_v63 = vmul.f32 1.442695, %v3061_v2 }
 0x72f   : > { %5414 = vpow2.f32 %v3087_v63 }
 0x731   : > { %3185 = vrot.lane.b32.xlu1 %v7416_v18, %s5518_s27  ;;  %v3062_v18 = vsub.f32 %v6942_v42, %v3042_v4 }
 0x733   : > { %v3089_v39 = vmul.f32 1.442695, %v3062_v18 }
 0x735   : > { %5416 = vpow2.f32 %v3089_v39 }
 0x737   : > { %3181 = vrot.lane.b32.xlu0 %v7415_v29, %s5518_s27  ;;  %v7048_v29 = vpop.eup %5410 }
 0x738   : > { %v7050_v16 = vpop.eup %5412 }
 0x739   : > { %v7054_v37 = vpop.eup %5414 }
 0x73f   : > { %v7057_v49 = vpop.eup %5416 }
 0x755   : > { %3117 = vadd.xlane.f32.xlu1 %v7048_v29 }
 0x756   : > { %3115 = vadd.xlane.f32.xlu0 %v7050_v16 }
 0x75a   : > { %3119 = vadd.xlane.f32.xlu0 %v7054_v37 }
 0x75e   : > { %3121 = vadd.xlane.f32.xlu0 %v7057_v49 }
 0x760   : > { %v3048_v7 = vpop.xlane.xlu1 %3047 }
 0x761   : > { %v3065_v42 = vsub.f32 %v6957_v3, %v3048_v7  ;;  %v3044_v0 = vpop.xlane.xlu0 %3043 }
 0x762   : > { %v3063_v23 = vsub.f32 %v6961_v43, %v3044_v0 }
 0x763   : > { %v3095_v61 = vmul.f32 1.442695, %v3065_v42 }
 0x764   : > { %v3091_v48 = vmul.f32 1.442695, %v3063_v23  ;;  %v3172_v24 = vpop.permute.xlu1 %3171 }
 0x765   : > { %4930 = vmatprep.subr.bf16.mxu1 %v3172_v24  ;;  %v3046_v50 = vpop.xlane.xlu0 %3045 }
 0x766   : > { %5418 = vpow2.f32 %v3091_v48  ;;  %v3064_v8 = vsub.f32 %v6972_v32, %v3046_v50 }
 0x767   : > { %5420 = vpow2.f32 %v3095_v61 }
 0x768   : > { %v3093_v36 = vmul.f32 1.442695, %v3064_v8 }
 0x769   : > { %v3050_v45 = vpop.xlane.xlu0 %3049 }
 0x76a   : > { %5422 = vpow2.f32 %v3093_v36  ;;  %v3066_v44 = vsub.f32 %v6977_v60, %v3050_v45  ;;  %v3174_v60 = vpop.permute.xlu1 %3173 }
 0x76c   : > { %v3097_v13 = vmul.f32 1.442695, %v3066_v44 }
 0x76d   : > { %v3176_v38 = vpop.permute.xlu0 %3175 }
 0x76e   : > { %5424 = vpow2.f32 %v3097_v13  ;;  %v3178_v53 = vpop.permute.xlu1 %3177 }
 0x770   : > { %v7064_v3 = vpop.eup %5418 }
 0x771   : > { %3123 = vadd.xlane.f32.xlu1 %v7064_v3  ;;  %v7067_v43 = vpop.eup %5420 }
 0x772   : > { %v3180_v33 = vpop.permute.xlu1 %3179 }
 0x774   : > { %v7069_v58 = vpop.eup %5422 }
 0x775   : > { %3127 = vadd.xlane.f32.xlu1 %v7067_v43  ;;  %3125 = vadd.xlane.f32.xlu0 %v7069_v58 }
 0x778   : > { %v7073_v32 = vpop.eup %5424 }
 0x779   : > { %3129 = vadd.xlane.f32.xlu0 %v7073_v32 }
 0x79e   : > { %v3104_v11 = vpop.xlane.xlu0 %3103 }
 0x7a1   : > { %v3112_v55 = vpop.xlane.xlu1 %3111 }
 0x7a2   : > { %v3100_v27 = vpop.xlane.xlu0 %3099 }
 0x7a5   : > { %v3108_v6 = vpop.xlane.xlu1 %3107 }
 0x7a6   : > { %v3106_v46 = vpop.xlane.xlu0 %3105 }
 0x7a9   : > { %v3114_v12 = vpop.xlane.xlu1 %3113 }
 0x7aa   : > { %v3102_v52 = vpop.xlane.xlu0 %3101 }
 0x7ab   : > { %v4864_v57 = vpop.f32.mrb[64].mxu1  ;;  %5426 = vrcp.f32 %v3102_v52 }
 0x7ac   : > { %v2585_v15 = vpop.f32.mrb[65].mxu1  ;;  %5428 = vrcp.f32 %v3100_v27 }
 0x7ad   : > { %v4865_v5 = vpop.f32.mrb[66].mxu1  ;;  %5430 = vrcp.f32 %v3106_v46  ;;  %v3184_v42 = vpop.permute.xlu1 %3183 }
 0x7ae   : > { %v2649_v40 = vpack.c.bf16 %v4865_v5, %v4864_v57  ;;  %v2588_v31 = vpop.f32.mrb[67].mxu1  ;;  %v3110_v54 = vpop.xlane.xlu0 %3109 }
 0x7af   : > { %v2648_v59 = vpack.c.bf16 %v2588_v31, %v2585_v15  ;;  %5432 = vrcp.f32 %v3110_v54 }
 0x7b0   : > { %5434 = vrcp.f32 %v3104_v11 }
 0x7b1   : > { %4882 = vmatprep.mubr.msk.bf16.mxu1 %vm919_vm0, %v2648_v59  ;;  %5436 = vrcp.f32 %v3108_v6  ;;  %v3186_v13 = vpop.permute.xlu1 %3185 }
 0x7b2   : > { %4883 = vmatmul.mubr.msk.bf16.vlgmr.msra.gmra.mrb[32].mxu1 %vm919_vm0, %v2649_v40  ;;  %v3182_v63 = vpop.permute.xlu0 %3181  ;;  %5438 = vrcp.f32 %v3114_v12 }
 0x7b3   : > { %4931 = vmatpush3.bf16.msra.mxu1 %v3172_v24  ;;  %v4868_v10 = vpop.f32.mrb[68].mxu1  ;;  %5440 = vrcp.f32 %v3112_v55 }
 0x7b4   : > { %4932 = vmatprep.subr.bf16.mxu1 %v3174_v60  ;;  %v2601_v51 = vpop.f32.mrb[69].mxu1 }
 0x7b5   : > { %v4869_v26 = vpop.f32.mrb[70].mxu1  ;;  %v5427_v4 = vpop.eup %5426 }
 0x7b6   : > { %v2651_v34 = vpack.c.bf16 %v4869_v26, %v4868_v10  ;;  %v2604_v25 = vpop.f32.mrb[71].mxu1  ;;  %v5429_v39 = vpop.eup %5428  ;;  %v3148_v23 = vmul.f32 %v5427_v4, %v7031_v62 }
 0x7b7   : > { %v2650_v47 = vpack.c.bf16 %v2604_v25, %v2601_v51  ;;  %4933 = vmatpush3.bf16.msra.mxu1 %v3174_v60  ;;  %v3147_v50 = vmul.f32 %v5429_v39, %v7019_v19  ;;  %v5431_v8 = vpop.eup %5430  ;;  %v5128_v19 = vld [vmem:[%s7379_s3 + $0x30] sm:$0xff]  }
 0x7b8   : > { %4934 = vmatprep.subr.bf16.mxu1 %v3176_v38 }
 0x7b9   : > { %4886 = vmatprep.mubr.msk.bf16.mxu1 %vm919_vm0, %v2650_v47  ;;  %v3163_v36 = vpack.c.bf16 %v3148_v23, %v3147_v50  ;;  %v5433_v45 = vpop.eup %5432 }
 0x7ba   : > { %4887 = vmatmul.mubr.msk.bf16.gmra.mrb[36].mxu1 %vm919_vm0, %v2651_v34  ;;  %v5435_v44 = vpop.eup %5434  ;;  %v3152_v60 = vmul.f32 %v5433_v45, %v7035_v9 }
 0x7bb   : > { %4935 = vmatpush3.bf16.msra.mxu1 %v3176_v38  ;;  %v4872_v1 = vpop.f32.mrb[72].mxu1  ;;  %v5437_v62 = vpop.eup %5436  ;;  %v3150_v38 = vmul.f32 %v5431_v8, %v7025_v28  ;;  %v3149_v11 = vmul.f32 %v5435_v44, %v7014_v30 }
 0x7bc   : > { %4936 = vmatprep.subr.bf16.mxu1 %v3178_v53  ;;  %v2617_v20 = vpop.f32.mrb[73].mxu1  ;;  %v5439_v57 = vpop.eup %5438 }
 0x7bd   : > { %v4873_v41 = vpop.f32.mrb[74].mxu1  ;;  %v3164_v27 = vpack.c.bf16 %v3150_v38, %v3149_v11  ;;  %v5441_v5 = vpop.eup %5440  ;;  %v3154_v28 = vmul.f32 %v5439_v57, %v7029_v56  ;;  %v5132_v11 = vld [vmem:[%s7383_s7 + $0x4] ss:$8 sps:$4 sm:$0xff]  }
 0x7be   : > { %v2653_v22 = vpack.c.bf16 %v4873_v41, %v4872_v1  ;;  %v2620_v21 = vpop.f32.mrb[75].mxu1  ;;  %v3153_v40 = vmul.f32 %v5441_v5, %v7017_v14  ;;  %3692 = vmatprep.subr.bf16.mxu0 %v5132_v11  ;;  %v5138_v57 = vld [vmem:[%s7383_s7 + $0x24] ss:$8 sps:$4 sm:$0xff]  }
 0x7bf   : > { %v2652_v2 = vpack.c.bf16 %v2620_v21, %v2617_v20  ;;  %4937 = vmatpush3.bf16.msra.mxu1 %v3178_v53  ;;  %v3151_v53 = vmul.f32 %v5437_v62, %v7023_v17 }
 0x7c0   : > { %4938 = vmatprep.subr.bf16.mxu1 %v3180_v33  ;;  %v3166_v31 = vpack.c.bf16 %v3154_v28, %v3153_v40  ;;  %v5491_v40 = vld [vmem:[%s5603_s26] sm:$0xff] }
 0x7c1   : > { %4890 = vmatprep.mubr.msk.bf16.mxu1 %vm919_vm0, %v2652_v2  ;;  %v3165_v15 = vpack.c.bf16 %v3152_v60, %v3151_v53  ;;  %v5129_v2 = vld [vmem:[%s7379_s3 + $0x38] sm:$0xff]   ;;  %v5130_v60 = vld [vmem:[%s7383_s7] ss:$8 sps:$4 sm:$0xff]  }
 0x7c2   : > { %4891 = vmatmul.mubr.msk.bf16.gmra.mrb[40].mxu1 %vm919_vm0, %v2653_v22  ;;  %v5135_v53 = vld [vmem:[%s7383_s7 + $0x14] ss:$8 sps:$4 sm:$0xff]   ;;  %3693 = vmatpush1.bf16.msra.mxu0 %v5130_v60 }
 0x7c3   : > { %4939 = vmatpush3.bf16.msra.mxu1 %v3180_v33  ;;  %v4876_v18 = vpop.f32.mrb[76].mxu1  ;;  %3694 = vmatprep.subr.bf16.mxu0 %v5135_v53 }
 0x7c4   : > { %4940 = vmatprep.subr.bf16.mxu1 %v3182_v63  ;;  %v2633_v7 = vpop.f32.mrb[77].mxu1 }
 0x7c5   : > { %v4877_v0 = vpop.f32.mrb[78].mxu1 }
 0x7c6   : > { %v2655_v48 = vpack.c.bf16 %v4877_v0, %v4876_v18  ;;  %v2636_v24 = vpop.f32.mrb[79].mxu1 }
 0x7c7   : > { %v2654_v61 = vpack.c.bf16 %v2636_v24, %v2633_v7  ;;  %4941 = vmatpush3.bf16.msra.mxu1 %v3182_v63 }
 0x7c8   : > { %4942 = vmatprep.subr.bf16.mxu1 %v3184_v42 }
 0x7c9   : > { %4894 = vmatprep.mubr.msk.bf16.mxu1 %vm919_vm0, %v2654_v61 }
 0x7ca   : > { %4895 = vmatmul.mubr.msk.bf16.gmra.mrb[44].mxu1 %vm919_vm0, %v2655_v48 }
 0x7cb   : > { %4943 = vmatpush3.bf16.msra.mxu1 %v3184_v42  ;;  %4946 = vmatprep.mubr.bf16.mxu1 %v3163_v36 }
 0x7cc   : > { %4944 = vmatprep.subr.bf16.mxu1 %v3186_v13 }
 0x7cf   : > { %4945 = vmatpush3.bf16.msra.mxu1 %v3186_v13 }
 0x7d0   : > { %4962 = vmatprep.subr.bf16.mxu1 %v5128_v19 }
 0x7d2   : > { %4947 = vmatmul.mubr.bf16.vlgmr.msra.gmra.mrb[80].mxu1 %v3164_v27  ;;  %v5133_v27 = vld [vmem:[%s7383_s7 + $0x10] ss:$8 sps:$4 sm:$0xff]  }
 0x7d3   : > { %4950 = vmatprep.mubr.bf16.mxu1 %v3165_v15  ;;  %4963 = vmatpush3.bf16.msra.mxu1 %v5128_v19  ;;  %v5136_v15 = vld [vmem:[%s7383_s7 + $0x20] ss:$8 sps:$4 sm:$0xff]  }
 0x7d4   : > { %4964 = vmatprep.subr.bf16.mxu1 %v5129_v2  ;;  %3695 = vmatpush1.bf16.msra.mxu0 %v5133_v27  ;;  %v5503_v27 = vld [vmem:[%s5603_s26 + $0x60] sm:$0xff] }
 0x7d5   : > { %3696 = vmatprep.subr.bf16.mxu0 %v5138_v57 }
 0x7d7   : > { %4965 = vmatpush3.bf16.msra.mxu1 %v5129_v2  ;;  %v5141_v2 = vld [vmem:[%s7383_s7 + $0x34] ss:$8 sps:$4 sm:$0xff]  }
 0x7d8   : > { %3697 = vmatpush1.bf16.msra.mxu0 %v5136_v15 }
 0x7d9   : > { %3698 = vmatprep.subr.bf16.mxu0 %v5141_v2 }
 0x7da   : > { %4951 = vmatmul.mubr.bf16.gmra.mrb[84].mxu1 %v3166_v31 }
 0x7e2   : > { %v3118_v9 = vpop.xlane.xlu1 %3117 }
 0x7e3   : > { %5442 = vrcp.f32 %v3118_v9  ;;  %v3116_v30 = vpop.xlane.xlu0 %3115 }
 0x7e4   : > { %5444 = vrcp.f32 %v3116_v30 }
 0x7e7   : > { %v3120_v33 = vpop.xlane.xlu0 %3119 }
 0x7e8   : > { %5446 = vrcp.f32 %v3120_v33  ;;  %v5492_v33 = vld [vmem:[%s5603_s26 + $0x10] sm:$0xff] }
 0x7eb   : > { %v3122_v17 = vpop.xlane.xlu0 %3121 }
 0x7ec   : > { %5448 = vrcp.f32 %v3122_v17 }
 0x7ed   : > { %v5443_v46 = vpop.eup %5442 }
 0x7ee   : > { %v5445_v59 = vpop.eup %5444  ;;  %v3156_v55 = vmul.f32 %v5443_v46, %v7048_v29  ;;  %v5493_v46 = vld [vmem:[%s5603_s26 + $0x8] sm:$0xff] }
 0x7ef   : > { %v3155_v10 = vmul.f32 %v5445_v59, %v7050_v16 }
 0x7f1   : > { %v3167_v51 = vpack.c.bf16 %v3156_v55, %v3155_v10  ;;  %v5494_v10 = vld [vmem:[%s5603_s26 + $0x18] sm:$0xff] }
 0x7f2   : > { %v5447_v56 = vpop.eup %5446 }
 0x7f3   : > { %4954 = vmatprep.mubr.bf16.mxu1 %v3167_v51  ;;  %v3157_v52 = vmul.f32 %v5447_v56, %v7054_v37 }
 0x7f6   : > { %v5449_v14 = vpop.eup %5448 }
 0x7f7   : > { %v3158_v26 = vmul.f32 %v5449_v14, %v7057_v49 }
 0x7f9   : > { %v3168_v34 = vpack.c.bf16 %v3158_v26, %v3157_v52 }
 0x7fb   : > { %4955 = vmatmul.mubr.bf16.gmra.mrb[88].mxu1 %v3168_v34  ;;  %v5495_v34 = vld [vmem:[%s5603_s26 + $0x20] sm:$0xff] }
 0x7fe   : > { %v3124_v25 = vpop.xlane.xlu1 %3123 }
 0x7ff   : > { %5450 = vrcp.f32 %v3124_v25 }
 0x802   : > { %v3128_v47 = vpop.xlane.xlu1 %3127  ;;  %v3126_v6 = vpop.xlane.xlu0 %3125 }
 0x803   : > { %5452 = vrcp.f32 %v3126_v6 }
 0x804   : > { %5454 = vrcp.f32 %v3128_v47 }
 0x806   : > { %v3130_v1 = vpop.xlane.xlu0 %3129 }
 0x807   : > { %5456 = vrcp.f32 %v3130_v1 }
 0x809   : > { %v5451_v29 = vpop.eup %5450 }
 0x80a   : > { %v3159_v54 = vmul.f32 %v5451_v29, %v7064_v3  ;;  %v5496_v29 = vld [vmem:[%s5603_s26 + $0x30] sm:$0xff] }
 0x80d   : > { %v5453_v16 = vpop.eup %5452 }
 0x80e   : > { %v5455_v20 = vpop.eup %5454  ;;  %v3160_v41 = vmul.f32 %v5453_v16, %v7069_v58 }
 0x80f   : > { %v3161_v49 = vmul.f32 %v5455_v20, %v7067_v43  ;;  %v5497_v20 = vld [vmem:[%s5603_s26 + $0x28] sm:$0xff] }
 0x810   : > { %v3169_v22 = vpack.c.bf16 %v3160_v41, %v3159_v54 }
 0x811   : > { %v5457_v37 = vpop.eup %5456 }
 0x812   : > { %v3162_v21 = vmul.f32 %v5457_v37, %v7073_v32  ;;  %4958 = vmatprep.mubr.bf16.mxu1 %v3169_v22  ;;  %v5498_v37 = vld [vmem:[%s5603_s26 + $0x38] sm:$0xff] }
 0x814   : > { %v3170_v12 = vpack.c.bf16 %v3162_v21, %v3161_v49 }
 0x816   : > { %4959 = vmatmul.mubr.bf16.gmra.mrb[92].mxu1 %v3170_v12 }
 0x8a5   : > { %v4948_v4 = vpop.f32.mrb[80].mxu1 }
 0x8a6   : > { %v3229_v63 = vpop.f32.mrb[81].mxu1 }
 0x8a7   : > { %v4949_v3 = vpop.f32.mrb[82].mxu1 }
 0x8a8   : > { %v3293_v18 = vpack.c.bf16 %v4949_v3, %v4948_v4  ;;  %v3232_v58 = vpop.f32.mrb[83].mxu1  ;;  %v5139_v4 = vld [vmem:[%s7383_s7 + $0x30] ss:$8 sps:$4 sm:$0xff]   ;;  %v5142_v3 = vld [vmem:[%s7383_s7 + $0x40] ss:$8 sps:$4 sm:$0xff]  }
 0x8a9   : > { %v3292_v39 = vpack.c.bf16 %v3232_v58, %v3229_v63  ;;  %3699 = vmatpush1.bf16.msra.mxu0 %v5139_v4  ;;  %v5144_v63 = vld [vmem:[%s7383_s7 + $0x44] ss:$8 sps:$4 sm:$0xff]   ;;  %v5145_v58 = vld [vmem:[%s7383_s7 + $0x50] ss:$8 sps:$4 sm:$0xff]  }
 0x8aa   : > { %3700 = vmatprep.subr.bf16.mxu0 %v5144_v63 }
 0x8ab   : > { %4966 = vmatprep.mubr.msk.bf16.mxu1 %vm919_vm0, %v3292_v39  ;;  %v5150_v39 = vld [vmem:[%s7383_s7 + $0x64] ss:$8 sps:$4 sm:$0xff]  }
 0x8ac   : > { %4967 = vmatmul.mubr.msk.bf16.vlgmr.msra.gmra.mrb[32].mxu1 %vm919_vm0, %v3293_v18  ;;  %v5147_v18 = vld [vmem:[%s7383_s7 + $0x54] ss:$8 sps:$4 sm:$0xff]  }
 0x8ad   : > { %v4952_v43 = vpop.f32.mrb[84].mxu1  ;;  %3701 = vmatpush1.bf16.msra.mxu0 %v5142_v3 }
 0x8ae   : > { %v3245_v32 = vpop.f32.mrb[85].mxu1  ;;  %3702 = vmatprep.subr.bf16.mxu0 %v5147_v18 }
 0x8af   : > { %v4953_v7 = vpop.f32.mrb[86].mxu1 }
 0x8b0   : > { %v3295_v42 = vpack.c.bf16 %v4953_v7, %v4952_v43  ;;  %v3248_v0 = vpop.f32.mrb[87].mxu1  ;;  %v5148_v43 = vld [vmem:[%s7383_s7 + $0x60] ss:$8 sps:$4 sm:$0xff]   ;;  %v5153_v7 = vld [vmem:[%s7383_s7 + $0x74] ss:$8 sps:$4 sm:$0xff]  }
 0x8b1   : > { %v3294_v23 = vpack.c.bf16 %v3248_v0, %v3245_v32  ;;  %3703 = vmatpush1.bf16.msra.mxu0 %v5145_v58  ;;  %v5151_v32 = vld [vmem:[%s7383_s7 + $0x70] ss:$8 sps:$4 sm:$0xff]  }
 0x8b2   : > { %3704 = vmatprep.subr.bf16.mxu0 %v5150_v39 }
 0x8b3   : > { %4970 = vmatprep.mubr.msk.bf16.mxu1 %vm919_vm0, %v3294_v23  ;;  %v5499_v23 = vld [vmem:[%s5603_s26 + $0x40] sm:$0xff] }
 0x8b4   : > { %4971 = vmatmul.mubr.msk.bf16.gmra.mrb[36].mxu1 %vm919_vm0, %v3295_v42 }
 0x8b5   : > { %3705 = vmatpush1.bf16.msra.mxu0 %v5148_v43 }
 0x8b6   : > { %3706 = vmatprep.subr.bf16.mxu0 %v5153_v7 }
 0x8b9   : > { %3707 = vmatpush1.bf16.msra.mxu0 %v5151_v32 }
 0x8ce   : > { %v4956_v48 = vpop.f32.mrb[88].mxu1 }
 0x8cf   : > { %v3261_v24 = vpop.f32.mrb[89].mxu1 }
 0x8d0   : > { %v4957_v61 = vpop.f32.mrb[90].mxu1 }
 0x8d1   : > { %v3297_v50 = vpack.c.bf16 %v4957_v61, %v4956_v48  ;;  %v3264_v8 = vpop.f32.mrb[91].mxu1 }
 0x8d2   : > { %v3296_v36 = vpack.c.bf16 %v3264_v8, %v3261_v24 }
 0x8d4   : > { %4974 = vmatprep.mubr.msk.bf16.mxu1 %vm919_vm0, %v3296_v36  ;;  %v5501_v36 = vld [vmem:[%s5603_s26 + $0x48] sm:$0xff] }
 0x8d5   : > { %4975 = vmatmul.mubr.msk.bf16.gmra.mrb[40].mxu1 %vm919_vm0, %v3297_v50  ;;  %v5500_v50 = vld [vmem:[%s5603_s26 + $0x50] sm:$0xff] }
 0x8e9   : > { %v4960_v45 = vpop.f32.mrb[92].mxu1 }
 0x8ea   : > { %v3277_v44 = vpop.f32.mrb[93].mxu1 }
 0x8eb   : > { %v4961_v13 = vpop.f32.mrb[94].mxu1 }
 0x8ec   : > { %v3299_v62 = vpack.c.bf16 %v4961_v13, %v4960_v45  ;;  %v3280_v38 = vpop.f32.mrb[95].mxu1  ;;  %v5502_v13 = vld [vmem:[%s5603_s26 + $0x58] sm:$0xff] }
 0x8ed   : > { %v3298_v19 = vpack.c.bf16 %v3280_v38, %v3277_v44 }
 0x8ef   : > { %4978 = vmatprep.mubr.msk.bf16.mxu1 %vm919_vm0, %v3298_v19 }
 0x8f0   : > { %4979 = vmatmul.mubr.msk.bf16.gmra.mrb[44].mxu1 %vm919_vm0, %v3299_v62 }
 0x97f   : > { %v4968_v5 = vpop.f32.mrb[32].mxu1 }
 0x980   : > { %v3374_v28 = vpop.f32.mrb[33].mxu1  ;;  %v7136_v17 = vadd.f32 %v5492_v33, %v4968_v5 }
 0x981   : > { %v7133_v31 = vadd.f32 %v5491_v40, %v3374_v28  ;;  %v4969_v9 = vpop.f32.mrb[34].mxu1  ;;  %v5504_v28 = vld [vmem:[%s5603_s26 + $0x70] sm:$0xff] }
 0x982   : > { %v3377_v30 = vpop.f32.mrb[35].mxu1  ;;  %v7144_v51 = vadd.f32 %v5494_v10, %v4969_v9  ;;  %v3455_v52 = vmul.f32 %v7136_v17, %v7136_v17  ;;  %v5505_v9 = vld [vmem:[%s5603_s26 + $0x68] sm:$0xff] }
 0x983   : > { %v7139_v59 = vadd.f32 %v5493_v46, %v3377_v30  ;;  %v3453_v55 = vmul.f32 %v7133_v31, %v7133_v31  ;;  %v5506_v46 = vld [vmem:[%s5603_s26 + $0x78] sm:$0xff] }
 0x984   : > { %v3456_v6 = vmul.f32 %v7144_v51, %v7144_v51 }
 0x985   : > { %3469 = vadd.xlane.f32.xlu1 %v3453_v55  ;;  %v3454_v56 = vmul.f32 %v7139_v59, %v7139_v59 }
 0x987   : > { %3471 = vadd.xlane.f32.xlu0 %v3454_v56  ;;  %v4972_v14 = vpop.f32.mrb[36].mxu1 }
 0x988   : > { %v3390_v26 = vpop.f32.mrb[37].mxu1  ;;  %v7156_v16 = vadd.f32 %v5496_v29, %v4972_v14  ;;  %v5160_v29 = vld [vmem:[%s7384_s8 + $0x58] sm:$0xff]  }
 0x989   : > { %v7151_v25 = vadd.f32 %v5495_v34, %v3390_v26  ;;  %3473 = vadd.xlane.f32.xlu1 %v3455_v52  ;;  %v4973_v47 = vpop.f32.mrb[38].mxu1  ;;  %v5154_v52 = vld [vmem:[%s7384_s8 + $0x40] sm:$0xff]   ;;  %v5156_v34 = vld [vmem:[%s7384_s8 + $0x48] sm:$0xff]  }
 0x98a   : > { %v3393_v1 = vpop.f32.mrb[39].mxu1  ;;  %v7164_v22 = vadd.f32 %v5498_v37, %v4973_v47  ;;  %v3459_v21 = vmul.f32 %v7156_v16, %v7156_v16  ;;  %v5155_v26 = vld [vmem:[%s7384_s8] sm:$0xff]   ;;  %4550 = vmatprep.subr.bf16.mxu1 %v5154_v52  ;;  %v5157_v47 = vld [vmem:[%s7384_s8 + $0x8] sm:$0xff]  }
 0x98b   : > { %v7159_v54 = vadd.f32 %v5497_v20, %v3393_v1  ;;  %3475 = vadd.xlane.f32.xlu0 %v3456_v6  ;;  %v3457_v41 = vmul.f32 %v7151_v25, %v7151_v25  ;;  %4551 = vmatpush3.bf16.msra.mxu1 %v5155_v26  ;;  %v5158_v6 = vld [vmem:[%s7384_s8 + $0x50] sm:$0xff]   ;;  %v5161_v20 = vld [vmem:[%s7384_s8 + $0x18] sm:$0xff]   ;;  %v5163_v37 = vld [vmem:[%s7384_s8 + $0x20] sm:$0xff]  }
 0x98c   : > { %v3460_v12 = vmul.f32 %v7164_v22, %v7164_v22  ;;  %4552 = vmatprep.subr.bf16.mxu1 %v5156_v34  ;;  %v5159_v1 = vld [vmem:[%s7384_s8 + $0x10] sm:$0xff]  }
 0x98d   : > { %3477 = vadd.xlane.f32.xlu1 %v3457_v41  ;;  %v3458_v49 = vmul.f32 %v7159_v54, %v7159_v54  ;;  %v5162_v41 = vld [vmem:[%s7384_s8 + $0x60] sm:$0xff]  }
 0x98f   : > { %3479 = vadd.xlane.f32.xlu0 %v3458_v49  ;;  %4553 = vmatpush3.bf16.msra.mxu1 %v5157_v47  ;;  %v5164_v49 = vld [vmem:[%s7384_s8 + $0x68] sm:$0xff]  }
 0x990   : > { %4554 = vmatprep.subr.bf16.mxu1 %v5158_v6 }
 0x991   : > { %3481 = vadd.xlane.f32.xlu1 %v3459_v21  ;;  %v5165_v21 = vld [vmem:[%s7384_s8 + $0x28] sm:$0xff]  }
 0x993   : > { %3483 = vadd.xlane.f32.xlu0 %v3460_v12  ;;  %4555 = vmatpush3.bf16.msra.mxu1 %v5159_v1 }
 0x994   : > { %4556 = vmatprep.subr.bf16.mxu1 %v5160_v29 }
 0x997   : > { %4557 = vmatpush3.bf16.msra.mxu1 %v5161_v20 }
 0x998   : > { %4558 = vmatprep.subr.bf16.mxu1 %v5162_v41 }
 0x99b   : > { %4559 = vmatpush3.bf16.msra.mxu1 %v5163_v37 }
 0x99c   : > { %4560 = vmatprep.subr.bf16.mxu1 %v5164_v49 }
 0x99f   : > { %4561 = vmatpush3.bf16.msra.mxu1 %v5165_v21 }
 0x9a8   : > { %v4976_v42 = vpop.f32.mrb[40].mxu1 }
 0x9a9   : > { %v3406_v0 = vpop.f32.mrb[41].mxu1  ;;  %v7206_v8 = vadd.f32 %v5500_v50, %v4976_v42 }
 0x9aa   : > { %v7203_v48 = vadd.f32 %v5499_v23, %v3406_v0  ;;  %v4977_v24 = vpop.f32.mrb[42].mxu1 }
 0x9ab   : > { %v3409_v61 = vpop.f32.mrb[43].mxu1  ;;  %v7214_v62 = vadd.f32 %v5502_v13, %v4977_v24  ;;  %v3463_v19 = vmul.f32 %v7206_v8, %v7206_v8 }
 0x9ac   : > { %v7209_v45 = vadd.f32 %v5501_v36, %v3409_v61  ;;  %v3461_v44 = vmul.f32 %v7203_v48, %v7203_v48 }
 0x9ad   : > { %v3464_v60 = vmul.f32 %v7214_v62, %v7214_v62 }
 0x9ae   : > { %3485 = vadd.xlane.f32.xlu1 %v3461_v44  ;;  %v3462_v38 = vmul.f32 %v7209_v45, %v7209_v45 }
 0x9b0   : > { %3487 = vadd.xlane.f32.xlu0 %v3462_v38 }
 0x9b2   : > { %3489 = vadd.xlane.f32.xlu1 %v3463_v19 }
 0x9b4   : > { %3491 = vadd.xlane.f32.xlu0 %v3464_v60 }
 0x9c3   : > { %v4980_v11 = vpop.f32.mrb[44].mxu1 }
 0x9c4   : > { %v3422_v53 = vpop.f32.mrb[45].mxu1  ;;  %v7226_v40 = vadd.f32 %v5504_v28, %v4980_v11 }
 0x9c5   : > { %v7223_v57 = vadd.f32 %v5503_v27, %v3422_v53  ;;  %v4981_v15 = vpop.f32.mrb[46].mxu1  ;;  %v7282_v53 = vld [vmem:[%s7382_s6] ss:$0 sm:$0xff] }
 0x9c6   : > { %v3425_v5 = vpop.f32.mrb[47].mxu1  ;;  %v7234_v55 = vadd.f32 %v5506_v46, %v4981_v15  ;;  %v3467_v56 = vmul.f32 %v7226_v40, %v7226_v40 }
 0x9c7   : > { %v7229_v30 = vadd.f32 %v5505_v9, %v3425_v5  ;;  %v3465_v33 = vmul.f32 %v7223_v57, %v7223_v57 }
 0x9c8   : > { %v3468_v14 = vmul.f32 %v7234_v55, %v7234_v55 }
 0x9c9   : > { %3493 = vadd.xlane.f32.xlu1 %v3465_v33  ;;  %v3466_v10 = vmul.f32 %v7229_v30, %v7229_v30 }
 0x9cb   : > { %3495 = vadd.xlane.f32.xlu0 %v3466_v10 }
 0x9cd   : > { %3497 = vadd.xlane.f32.xlu1 %v3467_v56 }
 0x9cf   : > { %3499 = vadd.xlane.f32.xlu0 %v3468_v14 }
 0xa12   : > { %v3470_v12 = vpop.xlane.xlu1 %3469 }
 0xa13   : > { %v3501_v2 = vmul.f32 0.0078125, %v3470_v12 }
 0xa14   : > { %v3472_v4 = vpop.xlane.xlu0 %3471 }
 0xa15   : > { %v3517_v63 = vadd.f32 1e-06, %v3501_v2  ;;  %v3502_v3 = vmul.f32 0.0078125, %v3472_v4 }
 0xa16   : > { %v3474_v18 = vpop.xlane.xlu1 %3473 }
 0xa17   : > { %5458 = vrsqrt.f32 %v3517_v63  ;;  %v3518_v58 = vadd.f32 1e-06, %v3502_v3  ;;  %v3503_v39 = vmul.f32 0.0078125, %v3474_v18 }
 0xa18   : > { %v3476_v43 = vpop.xlane.xlu0 %3475 }
 0xa19   : > { %5460 = vrsqrt.f32 %v3518_v58  ;;  %v3519_v32 = vadd.f32 1e-06, %v3503_v39  ;;  %v3504_v7 = vmul.f32 0.0078125, %v3476_v43 }
 0xa1a   : > { %v3478_v42 = vpop.xlane.xlu1 %3477 }
 0xa1b   : > { %v3520_v0 = vadd.f32 1e-06, %v3504_v7  ;;  %5462 = vrsqrt.f32 %v3519_v32  ;;  %v3505_v24 = vmul.f32 0.0078125, %v3478_v42 }
 0xa1c   : > { %v3480_v23 = vpop.xlane.xlu0 %3479 }
 0xa1d   : > { %5464 = vrsqrt.f32 %v3520_v0  ;;  %v3506_v61 = vmul.f32 0.0078125, %v3480_v23  ;;  %v3521_v13 = vadd.f32 1e-06, %v3505_v24 }
 0xa1e   : > { %v3482_v19 = vpop.xlane.xlu1 %3481 }
 0xa1f   : > { %v3522_v50 = vadd.f32 1e-06, %v3506_v61  ;;  %v3507_v15 = vmul.f32 0.0078125, %v3482_v19 }
 0xa20   : > { %v3484_v36 = vpop.xlane.xlu0 %3483 }
 0xa21   : > { %v5459_v44 = vpop.eup %5458  ;;  %5466 = vrsqrt.f32 %v3522_v50  ;;  %v3508_v11 = vmul.f32 0.0078125, %v3484_v36  ;;  %v3523_v14 = vadd.f32 1e-06, %v3507_v15 }
 0xa22   : > { %v3549_v38 = vmul.f32 %v5459_v44, %v7133_v31  ;;  %5468 = vrsqrt.f32 %v3521_v13 }
 0xa23   : > { %v5461_v60 = vpop.eup %5460  ;;  %v3524_v46 = vadd.f32 1e-06, %v3508_v11 }
 0xa24   : > { %v3550_v27 = vmul.f32 %v5461_v60, %v7139_v59  ;;  %v3572_v28 = vmul.f32 %v7282_v53, %v3549_v38 }
 0xa25   : > { %v5463_v5 = vpop.eup %5462  ;;  %5470 = vrsqrt.f32 %v3524_v46 }
 0xa26   : > { %v3573_v9 = vmul.f32 %v7282_v53, %v3550_v27  ;;  %v3551_v52 = vmul.f32 %v5463_v5, %v7136_v17  ;;  %5472 = vrsqrt.f32 %v3523_v14 }
 0xa27   : > { %v5465_v33 = vpop.eup %5464 }
 0xa28   : > { %v3588_v10 = vpack.c.bf16 %v3573_v9, %v3572_v28  ;;  %v3552_v56 = vmul.f32 %v5465_v33, %v7144_v51  ;;  %v3574_v47 = vmul.f32 %v7282_v53, %v3551_v52 }
 0xa2a   : > { %3725 = vmatmul.mubr.bf16.vlgmr.msra.gmra.mrb[96].mxu0 %v3588_v10  ;;  %v3575_v26 = vmul.f32 %v7282_v53, %v3552_v56 }
 0xa2b   : > { %3734 = vmatprep.mubr.bf16.mxu0 %v7418_v35  ;;  %v5467_v34 = vpop.eup %5466 }
 0xa2c   : > { %v5469_v6 = vpop.eup %5468  ;;  %v3589_v1 = vpack.c.bf16 %v3575_v26, %v3574_v47  ;;  %v3554_v29 = vmul.f32 %v5467_v34, %v7159_v54 }
 0xa2d   : > { %v3553_v20 = vmul.f32 %v5469_v6, %v7151_v25 }
 0xa2e   : > { %v3577_v41 = vmul.f32 %v7282_v53, %v3554_v29 }
 0xa2f   : > { %v5471_v37 = vpop.eup %5470  ;;  %v3576_v49 = vmul.f32 %v7282_v53, %v3553_v20 }
 0xa30   : > { %v5473_v21 = vpop.eup %5472  ;;  %v3556_v2 = vmul.f32 %v5471_v37, %v7164_v22 }
 0xa31   : > { %v3590_v12 = vpack.c.bf16 %v3577_v41, %v3576_v49  ;;  %v3555_v4 = vmul.f32 %v5473_v21, %v7156_v16 }
 0xa32   : > { %3735 = vmatmul.mubr.bf16.gmra.mrb[100].mxu0 %v3589_v1  ;;  %v3579_v18 = vmul.f32 %v7282_v53, %v3556_v2 }
 0xa33   : > { %3744 = vmatprep.mubr.bf16.mxu0 %v7418_v35  ;;  %v3578_v32 = vmul.f32 %v7282_v53, %v3555_v4 }
 0xa35   : > { %v3591_v23 = vpack.c.bf16 %v3579_v18, %v3578_v32 }
 0xa3a   : > { %3745 = vmatmul.mubr.bf16.gmra.mrb[104].mxu0 %v3590_v12 }
 0xa3b   : > { %v3486_v63 = vpop.xlane.xlu1 %3485  ;;  %3754 = vmatprep.mubr.bf16.mxu0 %v7418_v35 }
 0xa3c   : > { %v3509_v3 = vmul.f32 0.0078125, %v3486_v63 }
 0xa3d   : > { %v3488_v58 = vpop.xlane.xlu0 %3487 }
 0xa3e   : > { %v3525_v39 = vadd.f32 1e-06, %v3509_v3  ;;  %v3510_v43 = vmul.f32 0.0078125, %v3488_v58 }
 0xa3f   : > { %v3490_v7 = vpop.xlane.xlu1 %3489 }
 0xa40   : > { %5474 = vrsqrt.f32 %v3525_v39  ;;  %v3526_v42 = vadd.f32 1e-06, %v3510_v43  ;;  %v3511_v0 = vmul.f32 0.0078125, %v3490_v7 }
 0xa41   : > { %v3492_v24 = vpop.xlane.xlu0 %3491 }
 0xa42   : > { %5476 = vrsqrt.f32 %v3526_v42  ;;  %v3527_v61 = vadd.f32 1e-06, %v3511_v0  ;;  %v3512_v50 = vmul.f32 0.0078125, %v3492_v24  ;;  %3755 = vmatmul.mubr.bf16.gmra.mrb[108].mxu0 %v3591_v23  ;;  %v5166_v0 = vld [vmem:[%s7384_s8 + $0x70] sm:$0xff]  }
 0xa43   : > { %3764 = vmatprep.mubr.bf16.mxu0 %v7418_v35  ;;  %v5167_v23 = vld [vmem:[%s7384_s8 + $0x30] sm:$0xff]   ;;  %4562 = vmatprep.subr.bf16.mxu1 %v5166_v0 }
 0xa44   : > { %v3528_v36 = vadd.f32 1e-06, %v3512_v50  ;;  %5478 = vrsqrt.f32 %v3527_v61  ;;  %4563 = vmatpush3.bf16.msra.mxu1 %v5167_v23 }
 0xa46   : > { %5480 = vrsqrt.f32 %v3528_v36 }
 0xa4a   : > { %v5475_v44 = vpop.eup %5474 }
 0xa4b   : > { %v3557_v13 = vmul.f32 %v5475_v44, %v7203_v48 }
 0xa4c   : > { %v5477_v38 = vpop.eup %5476 }
 0xa4d   : > { %v3558_v19 = vmul.f32 %v5477_v38, %v7209_v45  ;;  %v3580_v11 = vmul.f32 %v7282_v53, %v3557_v13 }
 0xa4e   : > { %v5479_v60 = vpop.eup %5478 }
 0xa4f   : > { %v3581_v27 = vmul.f32 %v7282_v53, %v3558_v19  ;;  %v3559_v9 = vmul.f32 %v5479_v60, %v7206_v8 }
 0xa50   : > { %v5481_v15 = vpop.eup %5480 }
 0xa51   : > { %v3592_v5 = vpack.c.bf16 %v3581_v27, %v3580_v11  ;;  %v3560_v28 = vmul.f32 %v5481_v15, %v7214_v62  ;;  %v3582_v56 = vmul.f32 %v7282_v53, %v3559_v9 }
 0xa53   : > { %3765 = vmatmul.mubr.bf16.gmra.mrb[112].mxu0 %v3592_v5  ;;  %v3583_v33 = vmul.f32 %v7282_v53, %v3560_v28 }
 0xa54   : > { %3774 = vmatprep.mubr.bf16.mxu0 %v7418_v35 }
 0xa55   : > { %v3593_v34 = vpack.c.bf16 %v3583_v33, %v3582_v56 }
 0xa56   : > { %v3494_v46 = vpop.xlane.xlu1 %3493 }
 0xa57   : > { %v3513_v10 = vmul.f32 0.0078125, %v3494_v46 }
 0xa58   : > { %v3496_v14 = vpop.xlane.xlu0 %3495 }
 0xa59   : > { %v3529_v52 = vadd.f32 1e-06, %v3513_v10  ;;  %v3514_v26 = vmul.f32 0.0078125, %v3496_v14 }
 0xa5a   : > { %v3498_v47 = vpop.xlane.xlu1 %3497 }
 0xa5b   : > { %5482 = vrsqrt.f32 %v3529_v52  ;;  %v3530_v6 = vadd.f32 1e-06, %v3514_v26  ;;  %v3515_v1 = vmul.f32 0.0078125, %v3498_v47  ;;  %3775 = vmatmul.mubr.bf16.gmra.mrb[116].mxu0 %v3593_v34 }
 0xa5c   : > { %v3500_v29 = vpop.xlane.xlu0 %3499  ;;  %3784 = vmatprep.mubr.bf16.mxu0 %v7418_v35 }
 0xa5d   : > { %5484 = vrsqrt.f32 %v3530_v6  ;;  %v3531_v20 = vadd.f32 1e-06, %v3515_v1  ;;  %v3516_v41 = vmul.f32 0.0078125, %v3500_v29 }
 0xa5f   : > { %v3532_v37 = vadd.f32 1e-06, %v3516_v41  ;;  %5486 = vrsqrt.f32 %v3531_v20 }
 0xa61   : > { %5488 = vrsqrt.f32 %v3532_v37 }
 0xa65   : > { %v5483_v49 = vpop.eup %5482 }
 0xa66   : > { %v3561_v21 = vmul.f32 %v5483_v49, %v7223_v57 }
 0xa67   : > { %v5485_v12 = vpop.eup %5484 }
 0xa68   : > { %v3562_v2 = vmul.f32 %v5485_v12, %v7229_v30  ;;  %v3584_v63 = vmul.f32 %v7282_v53, %v3561_v21 }
 0xa69   : > { %v5487_v4 = vpop.eup %5486 }
 0xa6a   : > { %v3585_v3 = vmul.f32 %v7282_v53, %v3562_v2  ;;  %v3563_v43 = vmul.f32 %v5487_v4, %v7226_v40 }
 0xa6b   : > { %v5489_v18 = vpop.eup %5488 }
 0xa6c   : > { %v3594_v58 = vpack.c.bf16 %v3585_v3, %v3584_v63  ;;  %v3564_v39 = vmul.f32 %v5489_v18, %v7234_v55  ;;  %v3586_v7 = vmul.f32 %v7282_v53, %v3563_v43 }
 0xa6e   : > { %3785 = vmatmul.mubr.bf16.gmra.mrb[120].mxu0 %v3594_v58  ;;  %v3587_v32 = vmul.f32 %v7282_v53, %v3564_v39  ;;  %v5169_v53 = vld [vmem:[%s7384_s8 + $0x38] sm:$0xff]  }
 0xa6f   : > { %3794 = vmatprep.mubr.bf16.mxu0 %v7418_v35  ;;  %v5168_v35 = vld [vmem:[%s7384_s8 + $0x78] sm:$0xff]  }
 0xa70   : > { %v3595_v42 = vpack.c.bf16 %v3587_v32, %v3586_v7  ;;  %4564 = vmatprep.subr.bf16.mxu1 %v5168_v35 }
 0xa71   : > { %4565 = vmatpush3.bf16.msra.mxu1 %v5169_v53 }
 0xa76   : > { %3795 = vmatmul.mubr.bf16.gmra.mrb[124].mxu0 %v3595_v42 }
 0xafd   : > { %v3726_v24 = vpop.f32.mrb[96].mxu0 }
 0xafe   : > { %v3728_v61 = vpop.f32.mrb[97].mxu0  ;;  %v3805_v36 = vmax.f32 %v3726_v24, 0.0 }
 0xaff   : > { %v3730_v50 = vpop.f32.mrb[98].mxu0  ;;  %v3806_v38 = vmax.f32 %v3728_v61, 0.0 }
 0xb00   : > { %v3807_v44 = vmax.f32 %v3730_v50, 0.0  ;;  %v3732_v13 = vpop.f32.mrb[99].mxu0 }
 0xb01   : > { %v3808_v19 = vmax.f32 %v3732_v13, 0.0 }
 0xb02   : > { %v3837_v60 = vpack.c.bf16 %v3807_v44, %v3805_v36 }
 0xb03   : > { %v3838_v11 = vpack.c.bf16 %v3808_v19, %v3806_v38 }
 0xb05   : > { %v3736_v27 = vpop.f32.mrb[100].mxu0  ;;  %4013 = vmatprep.mubr.bf16.mxu1 %v3838_v11 }
 0xb06   : > { %v3738_v15 = vpop.f32.mrb[101].mxu0  ;;  %4014 = vmatmul.mubr.bf16.vlgmr.msra.gmra.mrb[96].mxu1 %v3837_v60  ;;  %v3809_v28 = vmax.f32 %v3736_v27, 0.0 }
 0xb07   : > { %v3740_v5 = vpop.f32.mrb[102].mxu0  ;;  %v3810_v46 = vmax.f32 %v3738_v15, 0.0 }
 0xb08   : > { %v3811_v9 = vmax.f32 %v3740_v5, 0.0  ;;  %v3742_v33 = vpop.f32.mrb[103].mxu0 }
 0xb09   : > { %v3812_v10 = vmax.f32 %v3742_v33, 0.0 }
 0xb0a   : > { %v3839_v56 = vpack.c.bf16 %v3811_v9, %v3809_v28 }
 0xb0b   : > { %v3840_v14 = vpack.c.bf16 %v3812_v10, %v3810_v46 }
 0xb0d   : > { %v3746_v52 = vpop.f32.mrb[104].mxu0  ;;  %4021 = vmatprep.mubr.bf16.mxu1 %v3840_v14 }
 0xb0e   : > { %v3748_v26 = vpop.f32.mrb[105].mxu0  ;;  %4022 = vmatmul.mubr.bf16.gmra.mrb[100].mxu1 %v3839_v56  ;;  %v3813_v47 = vmax.f32 %v3746_v52, 0.0 }
 0xb0f   : > { %v3750_v34 = vpop.f32.mrb[106].mxu0  ;;  %v3814_v29 = vmax.f32 %v3748_v26, 0.0 }
 0xb10   : > { %v3815_v6 = vmax.f32 %v3750_v34, 0.0  ;;  %v3752_v1 = vpop.f32.mrb[107].mxu0 }
 0xb11   : > { %v3816_v20 = vmax.f32 %v3752_v1, 0.0 }
 0xb12   : > { %v3841_v41 = vpack.c.bf16 %v3815_v6, %v3813_v47 }
 0xb13   : > { %v3842_v37 = vpack.c.bf16 %v3816_v20, %v3814_v29 }
 0xb15   : > { %v3756_v49 = vpop.f32.mrb[108].mxu0  ;;  %4029 = vmatprep.mubr.bf16.mxu1 %v3842_v37 }
 0xb16   : > { %v3758_v21 = vpop.f32.mrb[109].mxu0  ;;  %4030 = vmatmul.mubr.bf16.gmra.mrb[104].mxu1 %v3841_v41  ;;  %v3817_v2 = vmax.f32 %v3756_v49, 0.0 }
 0xb17   : > { %v3760_v12 = vpop.f32.mrb[110].mxu0  ;;  %v3818_v3 = vmax.f32 %v3758_v21, 0.0 }
 0xb18   : > { %v3819_v4 = vmax.f32 %v3760_v12, 0.0  ;;  %v3762_v63 = vpop.f32.mrb[111].mxu0 }
 0xb19   : > { %v3820_v18 = vmax.f32 %v3762_v63, 0.0 }
 0xb1a   : > { %v3843_v58 = vpack.c.bf16 %v3819_v4, %v3817_v2 }
 0xb1b   : > { %v3844_v39 = vpack.c.bf16 %v3820_v18, %v3818_v3 }
 0xb1d   : > { %4037 = vmatprep.mubr.bf16.mxu1 %v3844_v39 }
 0xb1e   : > { %4038 = vmatmul.mubr.bf16.gmra.mrb[108].mxu1 %v3843_v58 }
 0xb26   : > { %v3766_v43 = vpop.f32.mrb[112].mxu0 }
 0xb27   : > { %v3768_v32 = vpop.f32.mrb[113].mxu0  ;;  %v3821_v42 = vmax.f32 %v3766_v43, 0.0 }
 0xb28   : > { %v3770_v7 = vpop.f32.mrb[114].mxu0  ;;  %v3822_v35 = vmax.f32 %v3768_v32, 0.0 }
 0xb29   : > { %v3823_v0 = vmax.f32 %v3770_v7, 0.0  ;;  %v3772_v23 = vpop.f32.mrb[115].mxu0 }
 0xb2a   : > { %v3824_v53 = vmax.f32 %v3772_v23, 0.0 }
 0xb2b   : > { %v3845_v24 = vpack.c.bf16 %v3823_v0, %v3821_v42 }
 0xb2c   : > { %v3846_v61 = vpack.c.bf16 %v3824_v53, %v3822_v35 }
 0xb2e   : > { %v3776_v50 = vpop.f32.mrb[116].mxu0  ;;  %4045 = vmatprep.mubr.bf16.mxu1 %v3846_v61 }
 0xb2f   : > { %v3778_v36 = vpop.f32.mrb[117].mxu0  ;;  %4046 = vmatmul.mubr.bf16.gmra.mrb[112].mxu1 %v3845_v24  ;;  %v3825_v13 = vmax.f32 %v3776_v50, 0.0 }
 0xb30   : > { %v3780_v44 = vpop.f32.mrb[118].mxu0  ;;  %v3826_v60 = vmax.f32 %v3778_v36, 0.0 }
 0xb31   : > { %v3827_v38 = vmax.f32 %v3780_v44, 0.0  ;;  %v3782_v19 = vpop.f32.mrb[119].mxu0 }
 0xb32   : > { %v3828_v11 = vmax.f32 %v3782_v19, 0.0 }
 0xb33   : > { %v3847_v27 = vpack.c.bf16 %v3827_v38, %v3825_v13 }
 0xb34   : > { %v3848_v15 = vpack.c.bf16 %v3828_v11, %v3826_v60 }
 0xb36   : > { %4053 = vmatprep.mubr.bf16.mxu1 %v3848_v15 }
 0xb37   : > { %4054 = vmatmul.mubr.bf16.gmra.mrb[116].mxu1 %v3847_v27 }
 0xb41   : > { %v3786_v5 = vpop.f32.mrb[120].mxu0 }
 0xb42   : > { %v3788_v28 = vpop.f32.mrb[121].mxu0  ;;  %v3829_v33 = vmax.f32 %v3786_v5, 0.0 }
 0xb43   : > { %v3790_v9 = vpop.f32.mrb[122].mxu0  ;;  %v3830_v56 = vmax.f32 %v3788_v28, 0.0 }
 0xb44   : > { %v3831_v46 = vmax.f32 %v3790_v9, 0.0  ;;  %v3792_v10 = vpop.f32.mrb[123].mxu0 }
 0xb45   : > { %v3832_v14 = vmax.f32 %v3792_v10, 0.0 }
 0xb46   : > { %v3849_v52 = vpack.c.bf16 %v3831_v46, %v3829_v33 }
 0xb47   : > { %v3850_v26 = vpack.c.bf16 %v3832_v14, %v3830_v56 }
 0xb49   : > { %v3796_v34 = vpop.f32.mrb[124].mxu0  ;;  %4061 = vmatprep.mubr.bf16.mxu1 %v3850_v26 }
 0xb4a   : > { %v3798_v47 = vpop.f32.mrb[125].mxu0  ;;  %4062 = vmatmul.mubr.bf16.gmra.mrb[120].mxu1 %v3849_v52  ;;  %v3833_v1 = vmax.f32 %v3796_v34, 0.0 }
 0xb4b   : > { %v3800_v6 = vpop.f32.mrb[126].mxu0  ;;  %v3834_v41 = vmax.f32 %v3798_v47, 0.0 }
 0xb4c   : > { %v3835_v29 = vmax.f32 %v3800_v6, 0.0  ;;  %v3802_v20 = vpop.f32.mrb[127].mxu0 }
 0xb4d   : > { %v3836_v37 = vmax.f32 %v3802_v20, 0.0 }
 0xb4e   : > { %v3851_v49 = vpack.c.bf16 %v3835_v29, %v3833_v1 }
 0xb4f   : > { %v3852_v21 = vpack.c.bf16 %v3836_v37, %v3834_v41 }
 0xb51   : > { %4069 = vmatprep.mubr.bf16.mxu1 %v3852_v21 }
 0xb52   : > { %4070 = vmatmul.mubr.bf16.gmra.mrb[124].mxu1 %v3851_v49 }
 0xbd9   : > { %v4566_v12 = vpop.f32.mrb[96].mxu1 }
 0xbda   : > { %v4567_v2 = vpop.f32.mrb[97].mxu1 }
 0xbdb   : > { %v4568_v4 = vadd.f32 %v4567_v2, %v4566_v12  ;;  %v4569_v63 = vpop.f32.mrb[98].mxu1 }
 0xbdc   : > { %v4570_v3 = vpop.f32.mrb[99].mxu1 }
 0xbdd   : > { %v4078_v18 = vadd.f32 %v7133_v31, %v4568_v4  ;;  %v4571_v58 = vadd.f32 %v4570_v3, %v4569_v63 }
 0xbdf   : > { %4094 = vst [vmem:[%s7339_s24] sm:$0xff] %v4078_v18  ;;  %v4079_v39 = vadd.f32 %v7139_v59, %v4571_v58 }
 0xbe1   : > { %4095 = vst [vmem:[%s7339_s24 + $0x8] sm:$0xff] %v4079_v39  ;;  %v4572_v43 = vpop.f32.mrb[100].mxu1 }
 0xbe2   : > { %v4573_v32 = vpop.f32.mrb[101].mxu1 }
 0xbe3   : > { %v4574_v7 = vadd.f32 %v4573_v32, %v4572_v43  ;;  %v4575_v42 = vpop.f32.mrb[102].mxu1 }
 0xbe4   : > { %v4576_v0 = vpop.f32.mrb[103].mxu1 }
 0xbe5   : > { %v4080_v23 = vadd.f32 %v7136_v17, %v4574_v7  ;;  %v4577_v35 = vadd.f32 %v4576_v0, %v4575_v42 }
 0xbe7   : > { %4096 = vst [vmem:[%s7339_s24 + $0x10] sm:$0xff] %v4080_v23  ;;  %v4081_v53 = vadd.f32 %v7144_v51, %v4577_v35 }
 0xbe9   : > { %4097 = vst [vmem:[%s7339_s24 + $0x18] sm:$0xff] %v4081_v53  ;;  %v4578_v31 = vpop.f32.mrb[104].mxu1 }
 0xbea   : > { %v4579_v24 = vpop.f32.mrb[105].mxu1 }
 0xbeb   : > { %v4580_v61 = vadd.f32 %v4579_v24, %v4578_v31  ;;  %v4581_v59 = vpop.f32.mrb[106].mxu1 }
 0xbec   : > { %v4582_v50 = vpop.f32.mrb[107].mxu1 }
 0xbed   : > { %v4082_v36 = vadd.f32 %v7151_v25, %v4580_v61  ;;  %v4583_v44 = vadd.f32 %v4582_v50, %v4581_v59 }
 0xbef   : > { %4098 = vst [vmem:[%s7339_s24 + $0x20] sm:$0xff] %v4082_v36  ;;  %v4083_v13 = vadd.f32 %v7159_v54, %v4583_v44 }
 0xbf1   : > { %4099 = vst [vmem:[%s7339_s24 + $0x28] sm:$0xff] %v4083_v13  ;;  %v4584_v17 = vpop.f32.mrb[108].mxu1 }
 0xbf2   : > { %v4585_v38 = vpop.f32.mrb[109].mxu1 }
 0xbf3   : > { %v4586_v19 = vadd.f32 %v4585_v38, %v4584_v17  ;;  %v4587_v51 = vpop.f32.mrb[110].mxu1 }
 0xbf4   : > { %v4588_v60 = vpop.f32.mrb[111].mxu1 }
 0xbf5   : > { %v4084_v11 = vadd.f32 %v7156_v16, %v4586_v19  ;;  %v4589_v27 = vadd.f32 %v4588_v60, %v4587_v51 }
 0xbf7   : > { %4100 = vst [vmem:[%s7339_s24 + $0x30] sm:$0xff] %v4084_v11  ;;  %v4085_v15 = vadd.f32 %v7164_v22, %v4589_v27 }
 0xbf9   : > { %4101 = vst [vmem:[%s7339_s24 + $0x38] sm:$0xff] %v4085_v15 }
 0xc02   : > { %v4590_v25 = vpop.f32.mrb[112].mxu1 }
 0xc03   : > { %v4591_v5 = vpop.f32.mrb[113].mxu1 }
 0xc04   : > { %v4592_v28 = vadd.f32 %v4591_v5, %v4590_v25  ;;  %v4593_v54 = vpop.f32.mrb[114].mxu1 }
 0xc05   : > { %v4594_v9 = vpop.f32.mrb[115].mxu1 }
 0xc06   : > { %v4086_v33 = vadd.f32 %v7203_v48, %v4592_v28  ;;  %v4595_v46 = vadd.f32 %v4594_v9, %v4593_v54 }
 0xc08   : > { %4102 = vst [vmem:[%s7339_s24 + $0x40] sm:$0xff] %v4086_v33  ;;  %v4087_v10 = vadd.f32 %v7209_v45, %v4595_v46 }
 0xc0a   : > { %4103 = vst [vmem:[%s7339_s24 + $0x48] sm:$0xff] %v4087_v10  ;;  %v4596_v16 = vpop.f32.mrb[116].mxu1 }
 0xc0b   : > { %v4597_v56 = vpop.f32.mrb[117].mxu1 }
 0xc0c   : > { %v4598_v14 = vadd.f32 %v4597_v56, %v4596_v16  ;;  %v4599_v22 = vpop.f32.mrb[118].mxu1 }
 0xc0d   : > { %v4600_v52 = vpop.f32.mrb[119].mxu1 }
 0xc0e   : > { %v4088_v26 = vadd.f32 %v7206_v8, %v4598_v14  ;;  %v4601_v34 = vadd.f32 %v4600_v52, %v4599_v22 }
 0xc10   : > { %4104 = vst [vmem:[%s7339_s24 + $0x50] sm:$0xff] %v4088_v26  ;;  %v4089_v47 = vadd.f32 %v7214_v62, %v4601_v34 }
 0xc12   : > { %4105 = vst [vmem:[%s7339_s24 + $0x58] sm:$0xff] %v4089_v47 }
 0xc1d   : > { %v4602_v48 = vpop.f32.mrb[120].mxu1 }
 0xc1e   : > { %v4603_v6 = vpop.f32.mrb[121].mxu1 }
 0xc1f   : > { %v4604_v1 = vadd.f32 %v4603_v6, %v4602_v48  ;;  %v4605_v45 = vpop.f32.mrb[122].mxu1 }
 0xc20   : > { %v4606_v29 = vpop.f32.mrb[123].mxu1 }
 0xc21   : > { %v4090_v20 = vadd.f32 %v7223_v57, %v4604_v1  ;;  %v4607_v41 = vadd.f32 %v4606_v29, %v4605_v45 }
 0xc23   : > { %4106 = vst [vmem:[%s7339_s24 + $0x60] sm:$0xff] %v4090_v20  ;;  %v4091_v37 = vadd.f32 %v7229_v30, %v4607_v41 }
 0xc25   : > { %4107 = vst [vmem:[%s7339_s24 + $0x68] sm:$0xff] %v4091_v37  ;;  %v4608_v8 = vpop.f32.mrb[124].mxu1 }
 0xc26   : > { %v4609_v49 = vpop.f32.mrb[125].mxu1 }
 0xc27   : > { %v4610_v21 = vadd.f32 %v4609_v49, %v4608_v8  ;;  %v4611_v12 = vpop.f32.mrb[126].mxu1 }
 0xc28   : > { %v4612_v62 = vpop.f32.mrb[127].mxu1 }
 0xc29   : > { %v4092_v2 = vadd.f32 %v7226_v40, %v4610_v21  ;;  %v4613_v4 = vadd.f32 %v4612_v62, %v4611_v12 }
 0xc2b   : > { %4108 = vst [vmem:[%s7339_s24 + $0x70] sm:$0xff] %v4092_v2  ;;  %v4093_v63 = vadd.f32 %v7234_v55, %v4613_v4 }
 0xc2d   : > { %4109 = vst [vmem:[%s7339_s24 + $0x78] sm:$0xff] %v4093_v63 }
 0xc2e PF: > { %s19_s30 = sadd.s32 1, %s5513_s30  }
 0xc2f   : > { %p16_p4 = scmp.ge.s32.totalorder %s19_s30, 4  }
 0xc31   :  { %18 = sbr.rel (!%p16_p4) target bundleno = 1 (0x1), region = 92 }

</bundles_post_ra>
